<compile_context>
chip_gen: v7x
topology: tpu7x:2x2x1
jax: 0.10.0
libtpu: 0.0.40
codegen_flags: <defaults>
</compile_context>

<pallas_src>
import functools
import math

import jax
import jax.numpy as jnp
import numpy as np
from jax.experimental import pallas as pl
from jax.experimental.pallas import tpu as pltpu


_COMPILER_PARAMS = pltpu.CompilerParams(
    dimension_semantics=("parallel",),
    vmem_limit_bytes=32 * 1024 * 1024,
)


def _round_up(n, m):
    return ((n + m - 1) // m) * m


def _choose_tiles(B):
    """Pick batch tile tb (multiple of 16 for bf16 sublane alignment) and padded B."""
    TB_MAX = 128  # ~9 MiB/tile -> safe under the 32 MiB scoped VMEM limit on v7x too.
    if B >= 2 * TB_MAX:
        tb = TB_MAX
        Bp = _round_up(B, tb)
    else:
        # Small batch: force >=2 grid steps so ("parallel",) engages both v7x TCs.
        tb = max(16, _round_up((B + 1) // 2, 16))
        Bp = 2 * tb
    return tb, Bp


# ----------------------------------------------------------------------------
# Fully fused forward kernel (one batch tile per grid step)
# ----------------------------------------------------------------------------
def _net_fused_kernel(x_ref, w1_ref, b1_ref, w2_ref, b2_ref,
                      wf1_ref, bf1_ref, wf2_ref, bf2_ref, wf3_ref, bf3_ref,
                      o_ref, *, tb):
    """Fused conv1+ReLU+pool -> conv2+ReLU+pool -> fc1+ReLU -> fc2+ReLU -> fc3.

    x_ref : (1, 32*tb, 128) bf16   row = h*tb + t, lanes = w*3 + c (zero-pad to 128)
    w1/w2 : (5, 128, 256)   bf16   lowered conv weights; cols = dw*128 + pw*Cpad + co
    wf1   : (5, 128, 128)   bf16   fc1 weights per pooled row (NCHW flatten folded in)
    wf2/3 : (128, 128)      bf16   fc2 / fc3 weights, zero padded
    b*    : (1, 128)        f32    biases replicated per packed output column
    o_ref : (tb, 128)       f32    logits (first 10 lanes valid)
    """
    f32 = jnp.float32
    cdt = w1_ref.dtype  # bf16 compute dtype for MXU operands

    # ---- conv1 (5x5, 3->6) + bias + ReLU + 2x2/2 max-pool : 32x32 -> 14x14 ----
    # Un-pooled output rows h_out in [0,28): LHS slab for tap i is input rows
    # [i, i+28) -> contiguous ref slice.  Kernel-W taps and the pool W-phase are
    # folded into the 256 lowered-weight columns.
    acc = jnp.dot(x_ref[0, 0:28 * tb, :], w1_ref[0], preferred_element_type=f32)
    for i in range(1, 5):
        acc = acc + jnp.dot(x_ref[0, i * tb:(i + 28) * tb, :], w1_ref[i],
                            preferred_element_type=f32)
    a = acc.reshape(14, 2, tb, 256)                    # (ph, pool-H-phase, t, cols)
    m = jnp.maximum(a[:, 0], a[:, 1])                  # max over pool H-phase
    m = jnp.maximum(m[..., :128], m[..., 128:])        # max over pool W-phase halves
    y1 = jnp.maximum(m + b1_ref[...], 0.0).astype(cdt)  # bias+ReLU commute with max
    y1 = y1.reshape(14 * tb, 128)                      # row = ph*tb + t; lanes w*8+c

    # ---- conv2 (5x5, 6->16) + bias + ReLU + 2x2/2 max-pool : 14x14 -> 5x5 -----
    acc = jnp.dot(y1[0:10 * tb, :], w2_ref[0], preferred_element_type=f32)
    for i in range(1, 5):
        acc = acc + jnp.dot(y1[i * tb:(i + 10) * tb, :], w2_ref[i],
                            preferred_element_type=f32)
    a = acc.reshape(5, 2, tb, 256)
    m = jnp.maximum(a[:, 0], a[:, 1])
    m = jnp.maximum(m[..., :128], m[..., 128:])
    y2 = jnp.maximum(m + b2_ref[...], 0.0).astype(cdt)  # (5, tb, 128), lanes pw*16+co

    # ---- fc1 + ReLU : contract the 5 pooled-row slabs (K = 5 x 128) ----------
    h = jnp.dot(y2[0], wf1_ref[0], preferred_element_type=f32)
    for ph in range(1, 5):
        h = h + jnp.dot(y2[ph], wf1_ref[ph], preferred_element_type=f32)
    h = jnp.maximum(h + bf1_ref[...], 0.0)
    # TODO(synk): train-mode stochastic Dropout(0.25) not implemented (eval identity).

    # ---- fc2 + ReLU, fc3 -------------------------------------------------------
    h = jnp.dot(h.astype(cdt), wf2_ref[...], preferred_element_type=f32) + bf2_ref[...]
    h = jnp.maximum(h, 0.0)
    o = jnp.dot(h.astype(cdt), wf3_ref[...], preferred_element_type=f32) + bf3_ref[...]
    o_ref[...] = o.astype(o_ref.dtype)


def net_fused(x_packed, p, *, tb):
    nt = x_packed.shape[0]
    kernel = functools.partial(_net_fused_kernel, tb=tb)
    return pl.pallas_call(
        kernel,
        grid=(nt,),
        out_shape=jax.ShapeDtypeStruct((nt * tb, 128), jnp.float32),
        in_specs=[
            pl.BlockSpec((1, 32 * tb, 128), lambda g: (g, 0, 0)),   # packed input
            pl.BlockSpec((5, 128, 256), lambda g: (0, 0, 0)),       # conv1 W
            pl.BlockSpec((1, 128), lambda g: (0, 0)),               # conv1 b
            pl.BlockSpec((5, 128, 256), lambda g: (0, 0, 0)),       # conv2 W
            pl.BlockSpec((1, 128), lambda g: (0, 0)),               # conv2 b
            pl.BlockSpec((5, 128, 128), lambda g: (0, 0, 0)),       # fc1 W
            pl.BlockSpec((1, 128), lambda g: (0, 0)),               # fc1 b
            pl.BlockSpec((128, 128), lambda g: (0, 0)),             # fc2 W
            pl.BlockSpec((1, 128), lambda g: (0, 0)),               # fc2 b
            pl.BlockSpec((128, 128), lambda g: (0, 0)),             # fc3 W
            pl.BlockSpec((1, 128), lambda g: (0, 0)),               # fc3 b
        ],
        out_specs=pl.BlockSpec((tb, 128), lambda g: (g, 0)),
        compiler_params=_COMPILER_PARAMS,
    )(x_packed, p["conv1_w"], p["conv1_b"], p["conv2_w"], p["conv2_b"],
      p["fc1_w"], p["fc1_b"], p["fc2_w"], p["fc2_b"], p["fc3_w"], p["fc3_b"])


# ----------------------------------------------------------------------------
# One-time offline weight packing (outside jit)
# ----------------------------------------------------------------------------
def pack_params(p):
    """Pack PyTorch-layout params into padded, MXU-friendly lowered-conv / FC slabs."""
    w1 = np.asarray(p["conv1_w"], np.float32)   # (6, 3, 5, 5)
    b1 = np.asarray(p["conv1_b"], np.float32)   # (6,)
    w2 = np.asarray(p["conv2_w"], np.float32)   # (16, 6, 5, 5)
    b2 = np.asarray(p["conv2_b"], np.float32)   # (16,)
    f1w = np.asarray(p["fc1_w"], np.float32)    # (120, 400)
    f1b = np.asarray(p["fc1_b"], np.float32)
    f2w = np.asarray(p["fc2_w"], np.float32)    # (84, 120)
    f2b = np.asarray(p["fc2_b"], np.float32)
    f3w = np.asarray(p["fc3_w"], np.float32)    # (10, 84)
    f3b = np.asarray(p["fc3_b"], np.float32)

    # conv1 lowered weights: input rows = w_in*3 + c (w_in<32, c<3, zero-pad to 128);
    # output cols = dw*128 + pw*8 + co (pooled width pw<14, pool W-phase dw, co<6).
    W1 = np.zeros((5, 128, 256), np.float32)
    for i in range(5):
        for j in range(5):
            for dw in range(2):
                for pw in range(14):
                    w_in = 2 * pw + dw + j
                    W1[i, w_in * 3:w_in * 3 + 3,
                       dw * 128 + pw * 8:dw * 128 + pw * 8 + 6] = w1[:, :, i, j].T
    B1 = np.zeros((1, 128), np.float32)
    for pw in range(14):
        B1[0, pw * 8:pw * 8 + 6] = b1

    # conv2 lowered weights: input rows = w_in*8 + c (w_in<14, c<6, zero-pad to 128);
    # output cols = dw*128 + pw*16 + co (pw<5, co<16).
    W2 = np.zeros((5, 128, 256), np.float32)
    for i in range(5):
        for j in range(5):
            for dw in range(2):
                for pw in range(5):
                    w_in = 2 * pw + dw + j
                    W2[i, w_in * 8:w_in * 8 + 6,
                       dw * 128 + pw * 16:dw * 128 + pw * 16 + 16] = w2[:, :, i, j].T
    B2 = np.zeros((1, 128), np.float32)
    for pw in range(5):
        B2[0, pw * 16:pw * 16 + 16] = b2

    # fc1: one (128,128) slab per pooled row ph; rows indexed pw*16 + co, with the
    # PyTorch NCHW flatten order (co*25 + ph*5 + pw) folded in.  N padded to 128.
    Wf1 = np.zeros((5, 128, 128), np.float32)
    for ph in range(5):
        for pw in range(5):
            for co in range(16):
                Wf1[ph, pw * 16 + co, :120] = f1w[:, co * 25 + ph * 5 + pw]
    Bf1 = np.zeros((1, 128), np.float32)
    Bf1[0, :120] = f1b
    Wf2 = np.zeros((128, 128), np.float32)
    Wf2[:120, :84] = f2w.T
    Bf2 = np.zeros((1, 128), np.float32)
    Bf2[0, :84] = f2b
    Wf3 = np.zeros((128, 128), np.float32)
    Wf3[:84, :10] = f3w.T
    Bf3 = np.zeros((1, 128), np.float32)
    Bf3[0, :10] = f3b

    bf16 = jnp.bfloat16
    return {
        "conv1_w": jnp.asarray(W1, bf16), "conv1_b": jnp.asarray(B1),
        "conv2_w": jnp.asarray(W2, bf16), "conv2_b": jnp.asarray(B2),
        "fc1_w": jnp.asarray(Wf1, bf16), "fc1_b": jnp.asarray(Bf1),
        "fc2_w": jnp.asarray(Wf2, bf16), "fc2_b": jnp.asarray(Bf2),
        "fc3_w": jnp.asarray(Wf3, bf16), "fc3_b": jnp.asarray(Bf3),
    }


# ----------------------------------------------------------------------------
# Parameters (deterministic init, PyTorch-like uniform(-1/sqrt(fan_in), 1/sqrt(fan_in)))
# ----------------------------------------------------------------------------
def init_params(key):
    def u(k, shape, fan_in):
        bound = 1.0 / math.sqrt(fan_in)
        return jax.random.uniform(k, shape, jnp.float32, -bound, bound)

    ks = jax.random.split(key, 10)
    return {
        "conv1_w": u(ks[0], (6, 3, 5, 5), 3 * 5 * 5),
        "conv1_b": u(ks[1], (6,), 3 * 5 * 5),
        "conv2_w": u(ks[2], (16, 6, 5, 5), 6 * 5 * 5),
        "conv2_b": u(ks[3], (16,), 6 * 5 * 5),
        "fc1_w": u(ks[4], (120, 400), 400),
        "fc1_b": u(ks[5], (120,), 400),
        "fc2_w": u(ks[6], (84, 120), 120),
        "fc2_b": u(ks[7], (84,), 120),
        "fc3_w": u(ks[8], (10, 84), 84),
        "fc3_b": u(ks[9], (10,), 84),
    }


# ----------------------------------------------------------------------------
# Forward pass (matches PyTorch Net.forward semantics in eval mode)
# ----------------------------------------------------------------------------
@jax.jit
def net_forward(x_nchw, packed):
    B = x_nchw.shape[0]
    tb, Bp = _choose_tiles(B)
    nt = Bp // tb

    # Single packing transform: NCHW -> lane-dense (nt, 32*tb, 128) bf16 slabs with
    # row = h*tb + t and lanes = w*3 + c zero-padded 96 -> 128.  No even/odd split
    # or post-conv relayouts are needed anymore -- XLA fuses this into 1-2 copies.
    x = jnp.transpose(x_nchw, (0, 2, 3, 1)).reshape(B, 32, 96)
    x = jnp.pad(x, ((0, Bp - B), (0, 0), (0, 32))).astype(jnp.bfloat16)
    x = x.reshape(nt, tb, 32, 128).transpose(0, 2, 1, 3).reshape(nt, 32 * tb, 128)

    logits = net_fused(x, packed, tb=tb)     # one fused pallas_call for the whole net
    return logits[:B, :10]


if __name__ == "__main__":
    key = jax.random.PRNGKey(0)
    k_x, k_p = jax.random.split(key)
    x = jax.random.normal(k_x, (2, 3, 32, 32), dtype=jnp.float32)  # NCHW, CIFAR-sized
    params = init_params(k_p)
    packed = pack_params(params)          # one-time offline weight packing (outside jit)

    out = net_forward(x, packed)
    out = jax.block_until_ready(out)
    assert out.shape == (2, 10), out.shape
    assert bool(jnp.all(jnp.isfinite(out)))
    print("KERNEL_OK")
</pallas_src>

<mosaic_0001>
module attributes {stable_mosaic.version = 11 : i64} {
  func.func @_net_fused_kernel(%arg0: i32, %arg1: memref<1x512x128xbf16, #tpu.memory_space<vmem>>, %arg2: memref<5x128x256xbf16, #tpu.memory_space<vmem>>, %arg3: memref<1x128xf32, #tpu.memory_space<vmem>>, %arg4: memref<5x128x256xbf16, #tpu.memory_space<vmem>>, %arg5: memref<1x128xf32, #tpu.memory_space<vmem>>, %arg6: memref<5x128x128xbf16, #tpu.memory_space<vmem>>, %arg7: memref<1x128xf32, #tpu.memory_space<vmem>>, %arg8: memref<128x128xbf16, #tpu.memory_space<vmem>>, %arg9: memref<1x128xf32, #tpu.memory_space<vmem>>, %arg10: memref<128x128xbf16, #tpu.memory_space<vmem>>, %arg11: memref<1x128xf32, #tpu.memory_space<vmem>>, %arg12: memref<16x128xf32, #tpu.memory_space<vmem>>) attributes {dimension_semantics = [#tpu.dimension_semantics<parallel>], iteration_bounds = array<i64: 2>, scalar_prefetch = 0 : i64, scratch_operands = 0 : i64, tpu.core_type = #tpu.core_type<tc>, window_params = [{transform_indices = @transform_0, window_bounds = array<i64: 1, 512, 128>}, {pipeline_mode = #tpu.pipeline_mode<synchronous>, transform_indices = @transform_1, window_bounds = array<i64: 5, 128, 256>}, {pipeline_mode = #tpu.pipeline_mode<synchronous>, transform_indices = @transform_2, window_bounds = array<i64: 1, 128>}, {pipeline_mode = #tpu.pipeline_mode<synchronous>, transform_indices = @transform_3, window_bounds = array<i64: 5, 128, 256>}, {pipeline_mode = #tpu.pipeline_mode<synchronous>, transform_indices = @transform_4, window_bounds = array<i64: 1, 128>}, {pipeline_mode = #tpu.pipeline_mode<synchronous>, transform_indices = @transform_5, window_bounds = array<i64: 5, 128, 128>}, {pipeline_mode = #tpu.pipeline_mode<synchronous>, transform_indices = @transform_6, window_bounds = array<i64: 1, 128>}, {pipeline_mode = #tpu.pipeline_mode<synchronous>, transform_indices = @transform_7, window_bounds = array<i64: 128, 128>}, {pipeline_mode = #tpu.pipeline_mode<synchronous>, transform_indices = @transform_8, window_bounds = array<i64: 1, 128>}, {pipeline_mode = #tpu.pipeline_mode<synchronous>, transform_indices = @transform_9, window_bounds = array<i64: 128, 128>}, {pipeline_mode = #tpu.pipeline_mode<synchronous>, transform_indices = @transform_10, window_bounds = array<i64: 1, 128>}, {transform_indices = @transform_11, window_bounds = array<i64: 16, 128>}]} {
    %c0 = arith.constant 0 : index
    %c0_0 = arith.constant 0 : index
    %c0_1 = arith.constant 0 : index
    %0 = vector.load %arg1[%c0, %c0_0, %c0_1] : memref<1x512x128xbf16, #tpu.memory_space<vmem>>, vector<1x448x128xbf16>
    %1 = vector.shape_cast %0 : vector<1x448x128xbf16> to vector<448x128xbf16>
    %c0_2 = arith.constant 0 : index
    %c0_3 = arith.constant 0 : index
    %c0_4 = arith.constant 0 : index
    %2 = vector.load %arg2[%c0_2, %c0_3, %c0_4] : memref<5x128x256xbf16, #tpu.memory_space<vmem>>, vector<1x128x256xbf16>
    %3 = vector.shape_cast %2 : vector<1x128x256xbf16> to vector<128x256xbf16>
    %cst = arith.constant dense<0.000000e+00> : vector<448x256xf32>
    %4 = tpu.matmul %1, %3, %cst {dimension_numbers = #tpu.dot_dimension_numbers<[1], [0], [0], [1], [0, 0, 1, 1], [], []>} : vector<448x128xbf16>, vector<128x256xbf16>, vector<448x256xf32> -> vector<448x256xf32>
    %c0_5 = arith.constant 0 : index
    %c16 = arith.constant 16 : index
    %c0_6 = arith.constant 0 : index
    %5 = vector.load %arg1[%c0_5, %c16, %c0_6] : memref<1x512x128xbf16, #tpu.memory_space<vmem>>, vector<1x448x128xbf16>
    %6 = vector.shape_cast %5 : vector<1x448x128xbf16> to vector<448x128xbf16>
    %c1 = arith.constant 1 : index
    %c0_7 = arith.constant 0 : index
    %c0_8 = arith.constant 0 : index
    %7 = vector.load %arg2[%c1, %c0_7, %c0_8] : memref<5x128x256xbf16, #tpu.memory_space<vmem>>, vector<1x128x256xbf16>
    %8 = vector.shape_cast %7 : vector<1x128x256xbf16> to vector<128x256xbf16>
    %cst_9 = arith.constant dense<0.000000e+00> : vector<448x256xf32>
    %9 = tpu.matmul %6, %8, %cst_9 {dimension_numbers = #tpu.dot_dimension_numbers<[1], [0], [0], [1], [0, 0, 1, 1], [], []>} : vector<448x128xbf16>, vector<128x256xbf16>, vector<448x256xf32> -> vector<448x256xf32>
    %10 = arith.addf %4, %9 : vector<448x256xf32>
    %c0_10 = arith.constant 0 : index
    %c32 = arith.constant 32 : index
    %c0_11 = arith.constant 0 : index
    %11 = vector.load %arg1[%c0_10, %c32, %c0_11] : memref<1x512x128xbf16, #tpu.memory_space<vmem>>, vector<1x448x128xbf16>
    %12 = vector.shape_cast %11 : vector<1x448x128xbf16> to vector<448x128xbf16>
    %c2 = arith.constant 2 : index
    %c0_12 = arith.constant 0 : index
    %c0_13 = arith.constant 0 : index
    %13 = vector.load %arg2[%c2, %c0_12, %c0_13] : memref<5x128x256xbf16, #tpu.memory_space<vmem>>, vector<1x128x256xbf16>
    %14 = vector.shape_cast %13 : vector<1x128x256xbf16> to vector<128x256xbf16>
    %cst_14 = arith.constant dense<0.000000e+00> : vector<448x256xf32>
    %15 = tpu.matmul %12, %14, %cst_14 {dimension_numbers = #tpu.dot_dimension_numbers<[1], [0], [0], [1], [0, 0, 1, 1], [], []>} : vector<448x128xbf16>, vector<128x256xbf16>, vector<448x256xf32> -> vector<448x256xf32>
    %16 = arith.addf %10, %15 : vector<448x256xf32>
    %c0_15 = arith.constant 0 : index
    %c48 = arith.constant 48 : index
    %c0_16 = arith.constant 0 : index
    %17 = vector.load %arg1[%c0_15, %c48, %c0_16] : memref<1x512x128xbf16, #tpu.memory_space<vmem>>, vector<1x448x128xbf16>
    %18 = vector.shape_cast %17 : vector<1x448x128xbf16> to vector<448x128xbf16>
    %c3 = arith.constant 3 : index
    %c0_17 = arith.constant 0 : index
    %c0_18 = arith.constant 0 : index
    %19 = vector.load %arg2[%c3, %c0_17, %c0_18] : memref<5x128x256xbf16, #tpu.memory_space<vmem>>, vector<1x128x256xbf16>
    %20 = vector.shape_cast %19 : vector<1x128x256xbf16> to vector<128x256xbf16>
    %cst_19 = arith.constant dense<0.000000e+00> : vector<448x256xf32>
    %21 = tpu.matmul %18, %20, %cst_19 {dimension_numbers = #tpu.dot_dimension_numbers<[1], [0], [0], [1], [0, 0, 1, 1], [], []>} : vector<448x128xbf16>, vector<128x256xbf16>, vector<448x256xf32> -> vector<448x256xf32>
    %22 = arith.addf %16, %21 : vector<448x256xf32>
    %c0_20 = arith.constant 0 : index
    %c64 = arith.constant 64 : index
    %c0_21 = arith.constant 0 : index
    %23 = vector.load %arg1[%c0_20, %c64, %c0_21] : memref<1x512x128xbf16, #tpu.memory_space<vmem>>, vector<1x448x128xbf16>
    %24 = vector.shape_cast %23 : vector<1x448x128xbf16> to vector<448x128xbf16>
    %c4 = arith.constant 4 : index
    %c0_22 = arith.constant 0 : index
    %c0_23 = arith.constant 0 : index
    %25 = vector.load %arg2[%c4, %c0_22, %c0_23] : memref<5x128x256xbf16, #tpu.memory_space<vmem>>, vector<1x128x256xbf16>
    %26 = vector.shape_cast %25 : vector<1x128x256xbf16> to vector<128x256xbf16>
    %cst_24 = arith.constant dense<0.000000e+00> : vector<448x256xf32>
    %27 = tpu.matmul %24, %26, %cst_24 {dimension_numbers = #tpu.dot_dimension_numbers<[1], [0], [0], [1], [0, 0, 1, 1], [], []>} : vector<448x128xbf16>, vector<128x256xbf16>, vector<448x256xf32> -> vector<448x256xf32>
    %28 = arith.addf %22, %27 : vector<448x256xf32>
    %29 = vector.shape_cast %28 : vector<448x256xf32> to vector<14x2x16x256xf32>
    %30 = vector.extract_strided_slice %29 {offsets = [0, 0, 0, 0], sizes = [14, 1, 16, 256], strides = [1, 1, 1, 1]} : vector<14x2x16x256xf32> to vector<14x1x16x256xf32>
    %31 = vector.shape_cast %30 : vector<14x1x16x256xf32> to vector<14x16x256xf32>
    %32 = vector.extract_strided_slice %29 {offsets = [0, 1, 0, 0], sizes = [14, 1, 16, 256], strides = [1, 1, 1, 1]} : vector<14x2x16x256xf32> to vector<14x1x16x256xf32>
    %33 = vector.shape_cast %32 : vector<14x1x16x256xf32> to vector<14x16x256xf32>
    %34 = arith.maximumf %31, %33 : vector<14x16x256xf32>
    %35 = vector.extract_strided_slice %34 {offsets = [0, 0, 0], sizes = [14, 16, 128], strides = [1, 1, 1]} : vector<14x16x256xf32> to vector<14x16x128xf32>
    %36 = vector.extract_strided_slice %34 {offsets = [0, 0, 128], sizes = [14, 16, 128], strides = [1, 1, 1]} : vector<14x16x256xf32> to vector<14x16x128xf32>
    %37 = arith.maximumf %35, %36 : vector<14x16x128xf32>
    %c0_25 = arith.constant 0 : index
    %c0_26 = arith.constant 0 : index
    %38 = vector.load %arg3[%c0_25, %c0_26] : memref<1x128xf32, #tpu.memory_space<vmem>>, vector<1x128xf32>
    %39 = vector.shape_cast %38 : vector<1x128xf32> to vector<1x1x128xf32>
    %40 = vector.broadcast %39 : vector<1x1x128xf32> to vector<14x16x128xf32>
    %41 = arith.addf %37, %40 : vector<14x16x128xf32>
    %cst_27 = arith.constant 0.000000e+00 : f32
    %42 = vector.broadcast %cst_27 : f32 to vector<14x16x128xf32>
    %43 = arith.maximumf %41, %42 : vector<14x16x128xf32>
    %44 = arith.truncf %43 : vector<14x16x128xf32> to vector<14x16x128xbf16>
    %45 = vector.shape_cast %44 : vector<14x16x128xbf16> to vector<224x128xbf16>
    %46 = vector.extract_strided_slice %45 {offsets = [0, 0], sizes = [160, 128], strides = [1, 1]} : vector<224x128xbf16> to vector<160x128xbf16>
    %c0_28 = arith.constant 0 : index
    %c0_29 = arith.constant 0 : index
    %c0_30 = arith.constant 0 : index
    %47 = vector.load %arg4[%c0_28, %c0_29, %c0_30] : memref<5x128x256xbf16, #tpu.memory_space<vmem>>, vector<1x128x256xbf16>
    %48 = vector.shape_cast %47 : vector<1x128x256xbf16> to vector<128x256xbf16>
    %cst_31 = arith.constant dense<0.000000e+00> : vector<160x256xf32>
    %49 = tpu.matmul %46, %48, %cst_31 {dimension_numbers = #tpu.dot_dimension_numbers<[1], [0], [0], [1], [0, 0, 1, 1], [], []>} : vector<160x128xbf16>, vector<128x256xbf16>, vector<160x256xf32> -> vector<160x256xf32>
    %50 = vector.extract_strided_slice %45 {offsets = [16, 0], sizes = [160, 128], strides = [1, 1]} : vector<224x128xbf16> to vector<160x128xbf16>
    %c1_32 = arith.constant 1 : index
    %c0_33 = arith.constant 0 : index
    %c0_34 = arith.constant 0 : index
    %51 = vector.load %arg4[%c1_32, %c0_33, %c0_34] : memref<5x128x256xbf16, #tpu.memory_space<vmem>>, vector<1x128x256xbf16>
    %52 = vector.shape_cast %51 : vector<1x128x256xbf16> to vector<128x256xbf16>
    %cst_35 = arith.constant dense<0.000000e+00> : vector<160x256xf32>
    %53 = tpu.matmul %50, %52, %cst_35 {dimension_numbers = #tpu.dot_dimension_numbers<[1], [0], [0], [1], [0, 0, 1, 1], [], []>} : vector<160x128xbf16>, vector<128x256xbf16>, vector<160x256xf32> -> vector<160x256xf32>
    %54 = arith.addf %49, %53 : vector<160x256xf32>
    %55 = vector.extract_strided_slice %45 {offsets = [32, 0], sizes = [160, 128], strides = [1, 1]} : vector<224x128xbf16> to vector<160x128xbf16>
    %c2_36 = arith.constant 2 : index
    %c0_37 = arith.constant 0 : index
    %c0_38 = arith.constant 0 : index
    %56 = vector.load %arg4[%c2_36, %c0_37, %c0_38] : memref<5x128x256xbf16, #tpu.memory_space<vmem>>, vector<1x128x256xbf16>
    %57 = vector.shape_cast %56 : vector<1x128x256xbf16> to vector<128x256xbf16>
    %cst_39 = arith.constant dense<0.000000e+00> : vector<160x256xf32>
    %58 = tpu.matmul %55, %57, %cst_39 {dimension_numbers = #tpu.dot_dimension_numbers<[1], [0], [0], [1], [0, 0, 1, 1], [], []>} : vector<160x128xbf16>, vector<128x256xbf16>, vector<160x256xf32> -> vector<160x256xf32>
    %59 = arith.addf %54, %58 : vector<160x256xf32>
    %60 = vector.extract_strided_slice %45 {offsets = [48, 0], sizes = [160, 128], strides = [1, 1]} : vector<224x128xbf16> to vector<160x128xbf16>
    %c3_40 = arith.constant 3 : index
    %c0_41 = arith.constant 0 : index
    %c0_42 = arith.constant 0 : index
    %61 = vector.load %arg4[%c3_40, %c0_41, %c0_42] : memref<5x128x256xbf16, #tpu.memory_space<vmem>>, vector<1x128x256xbf16>
    %62 = vector.shape_cast %61 : vector<1x128x256xbf16> to vector<128x256xbf16>
    %cst_43 = arith.constant dense<0.000000e+00> : vector<160x256xf32>
    %63 = tpu.matmul %60, %62, %cst_43 {dimension_numbers = #tpu.dot_dimension_numbers<[1], [0], [0], [1], [0, 0, 1, 1], [], []>} : vector<160x128xbf16>, vector<128x256xbf16>, vector<160x256xf32> -> vector<160x256xf32>
    %64 = arith.addf %59, %63 : vector<160x256xf32>
    %65 = vector.extract_strided_slice %45 {offsets = [64, 0], sizes = [160, 128], strides = [1, 1]} : vector<224x128xbf16> to vector<160x128xbf16>
    %c4_44 = arith.constant 4 : index
    %c0_45 = arith.constant 0 : index
    %c0_46 = arith.constant 0 : index
    %66 = vector.load %arg4[%c4_44, %c0_45, %c0_46] : memref<5x128x256xbf16, #tpu.memory_space<vmem>>, vector<1x128x256xbf16>
    %67 = vector.shape_cast %66 : vector<1x128x256xbf16> to vector<128x256xbf16>
    %cst_47 = arith.constant dense<0.000000e+00> : vector<160x256xf32>
    %68 = tpu.matmul %65, %67, %cst_47 {dimension_numbers = #tpu.dot_dimension_numbers<[1], [0], [0], [1], [0, 0, 1, 1], [], []>} : vector<160x128xbf16>, vector<128x256xbf16>, vector<160x256xf32> -> vector<160x256xf32>
    %69 = arith.addf %64, %68 : vector<160x256xf32>
    %70 = vector.shape_cast %69 : vector<160x256xf32> to vector<5x2x16x256xf32>
    %71 = vector.extract_strided_slice %70 {offsets = [0, 0, 0, 0], sizes = [5, 1, 16, 256], strides = [1, 1, 1, 1]} : vector<5x2x16x256xf32> to vector<5x1x16x256xf32>
    %72 = vector.shape_cast %71 : vector<5x1x16x256xf32> to vector<5x16x256xf32>
    %73 = vector.extract_strided_slice %70 {offsets = [0, 1, 0, 0], sizes = [5, 1, 16, 256], strides = [1, 1, 1, 1]} : vector<5x2x16x256xf32> to vector<5x1x16x256xf32>
    %74 = vector.shape_cast %73 : vector<5x1x16x256xf32> to vector<5x16x256xf32>
    %75 = arith.maximumf %72, %74 : vector<5x16x256xf32>
    %76 = vector.extract_strided_slice %75 {offsets = [0, 0, 0], sizes = [5, 16, 128], strides = [1, 1, 1]} : vector<5x16x256xf32> to vector<5x16x128xf32>
    %77 = vector.extract_strided_slice %75 {offsets = [0, 0, 128], sizes = [5, 16, 128], strides = [1, 1, 1]} : vector<5x16x256xf32> to vector<5x16x128xf32>
    %78 = arith.maximumf %76, %77 : vector<5x16x128xf32>
    %c0_48 = arith.constant 0 : index
    %c0_49 = arith.constant 0 : index
    %79 = vector.load %arg5[%c0_48, %c0_49] : memref<1x128xf32, #tpu.memory_space<vmem>>, vector<1x128xf32>
    %80 = vector.shape_cast %79 : vector<1x128xf32> to vector<1x1x128xf32>
    %81 = vector.broadcast %80 : vector<1x1x128xf32> to vector<5x16x128xf32>
    %82 = arith.addf %78, %81 : vector<5x16x128xf32>
    %cst_50 = arith.constant 0.000000e+00 : f32
    %83 = vector.broadcast %cst_50 : f32 to vector<5x16x128xf32>
    %84 = arith.maximumf %82, %83 : vector<5x16x128xf32>
    %85 = arith.truncf %84 : vector<5x16x128xf32> to vector<5x16x128xbf16>
    %86 = vector.extract_strided_slice %85 {offsets = [0, 0, 0], sizes = [1, 16, 128], strides = [1, 1, 1]} : vector<5x16x128xbf16> to vector<1x16x128xbf16>
    %87 = vector.shape_cast %86 : vector<1x16x128xbf16> to vector<16x128xbf16>
    %c0_51 = arith.constant 0 : index
    %c0_52 = arith.constant 0 : index
    %c0_53 = arith.constant 0 : index
    %88 = vector.load %arg6[%c0_51, %c0_52, %c0_53] : memref<5x128x128xbf16, #tpu.memory_space<vmem>>, vector<1x128x128xbf16>
    %89 = vector.shape_cast %88 : vector<1x128x128xbf16> to vector<128x128xbf16>
    %cst_54 = arith.constant dense<0.000000e+00> : vector<16x128xf32>
    %90 = tpu.matmul %87, %89, %cst_54 {dimension_numbers = #tpu.dot_dimension_numbers<[1], [0], [0], [1], [0, 0, 1, 1], [], []>} : vector<16x128xbf16>, vector<128x128xbf16>, vector<16x128xf32> -> vector<16x128xf32>
    %91 = vector.extract_strided_slice %85 {offsets = [1, 0, 0], sizes = [1, 16, 128], strides = [1, 1, 1]} : vector<5x16x128xbf16> to vector<1x16x128xbf16>
    %92 = vector.shape_cast %91 : vector<1x16x128xbf16> to vector<16x128xbf16>
    %c1_55 = arith.constant 1 : index
    %c0_56 = arith.constant 0 : index
    %c0_57 = arith.constant 0 : index
    %93 = vector.load %arg6[%c1_55, %c0_56, %c0_57] : memref<5x128x128xbf16, #tpu.memory_space<vmem>>, vector<1x128x128xbf16>
    %94 = vector.shape_cast %93 : vector<1x128x128xbf16> to vector<128x128xbf16>
    %cst_58 = arith.constant dense<0.000000e+00> : vector<16x128xf32>
    %95 = tpu.matmul %92, %94, %cst_58 {dimension_numbers = #tpu.dot_dimension_numbers<[1], [0], [0], [1], [0, 0, 1, 1], [], []>} : vector<16x128xbf16>, vector<128x128xbf16>, vector<16x128xf32> -> vector<16x128xf32>
    %96 = arith.addf %90, %95 : vector<16x128xf32>
    %97 = vector.extract_strided_slice %85 {offsets = [2, 0, 0], sizes = [1, 16, 128], strides = [1, 1, 1]} : vector<5x16x128xbf16> to vector<1x16x128xbf16>
    %98 = vector.shape_cast %97 : vector<1x16x128xbf16> to vector<16x128xbf16>
    %c2_59 = arith.constant 2 : index
    %c0_60 = arith.constant 0 : index
    %c0_61 = arith.constant 0 : index
    %99 = vector.load %arg6[%c2_59, %c0_60, %c0_61] : memref<5x128x128xbf16, #tpu.memory_space<vmem>>, vector<1x128x128xbf16>
    %100 = vector.shape_cast %99 : vector<1x128x128xbf16> to vector<128x128xbf16>
    %cst_62 = arith.constant dense<0.000000e+00> : vector<16x128xf32>
    %101 = tpu.matmul %98, %100, %cst_62 {dimension_numbers = #tpu.dot_dimension_numbers<[1], [0], [0], [1], [0, 0, 1, 1], [], []>} : vector<16x128xbf16>, vector<128x128xbf16>, vector<16x128xf32> -> vector<16x128xf32>
    %102 = arith.addf %96, %101 : vector<16x128xf32>
    %103 = vector.extract_strided_slice %85 {offsets = [3, 0, 0], sizes = [1, 16, 128], strides = [1, 1, 1]} : vector<5x16x128xbf16> to vector<1x16x128xbf16>
    %104 = vector.shape_cast %103 : vector<1x16x128xbf16> to vector<16x128xbf16>
    %c3_63 = arith.constant 3 : index
    %c0_64 = arith.constant 0 : index
    %c0_65 = arith.constant 0 : index
    %105 = vector.load %arg6[%c3_63, %c0_64, %c0_65] : memref<5x128x128xbf16, #tpu.memory_space<vmem>>, vector<1x128x128xbf16>
    %106 = vector.shape_cast %105 : vector<1x128x128xbf16> to vector<128x128xbf16>
    %cst_66 = arith.constant dense<0.000000e+00> : vector<16x128xf32>
    %107 = tpu.matmul %104, %106, %cst_66 {dimension_numbers = #tpu.dot_dimension_numbers<[1], [0], [0], [1], [0, 0, 1, 1], [], []>} : vector<16x128xbf16>, vector<128x128xbf16>, vector<16x128xf32> -> vector<16x128xf32>
    %108 = arith.addf %102, %107 : vector<16x128xf32>
    %109 = vector.extract_strided_slice %85 {offsets = [4, 0, 0], sizes = [1, 16, 128], strides = [1, 1, 1]} : vector<5x16x128xbf16> to vector<1x16x128xbf16>
    %110 = vector.shape_cast %109 : vector<1x16x128xbf16> to vector<16x128xbf16>
    %c4_67 = arith.constant 4 : index
    %c0_68 = arith.constant 0 : index
    %c0_69 = arith.constant 0 : index
    %111 = vector.load %arg6[%c4_67, %c0_68, %c0_69] : memref<5x128x128xbf16, #tpu.memory_space<vmem>>, vector<1x128x128xbf16>
    %112 = vector.shape_cast %111 : vector<1x128x128xbf16> to vector<128x128xbf16>
    %cst_70 = arith.constant dense<0.000000e+00> : vector<16x128xf32>
    %113 = tpu.matmul %110, %112, %cst_70 {dimension_numbers = #tpu.dot_dimension_numbers<[1], [0], [0], [1], [0, 0, 1, 1], [], []>} : vector<16x128xbf16>, vector<128x128xbf16>, vector<16x128xf32> -> vector<16x128xf32>
    %114 = arith.addf %108, %113 : vector<16x128xf32>
    %c0_71 = arith.constant 0 : index
    %c0_72 = arith.constant 0 : index
    %115 = vector.load %arg7[%c0_71, %c0_72] : memref<1x128xf32, #tpu.memory_space<vmem>>, vector<1x128xf32>
    %116 = vector.broadcast %115 : vector<1x128xf32> to vector<16x128xf32>
    %117 = arith.addf %114, %116 : vector<16x128xf32>
    %cst_73 = arith.constant 0.000000e+00 : f32
    %118 = vector.broadcast %cst_73 : f32 to vector<16x128xf32>
    %119 = arith.maximumf %117, %118 : vector<16x128xf32>
    %120 = arith.truncf %119 : vector<16x128xf32> to vector<16x128xbf16>
    %c0_74 = arith.constant 0 : index
    %c0_75 = arith.constant 0 : index
    %121 = vector.load %arg8[%c0_74, %c0_75] : memref<128x128xbf16, #tpu.memory_space<vmem>>, vector<128x128xbf16>
    %cst_76 = arith.constant dense<0.000000e+00> : vector<16x128xf32>
    %122 = tpu.matmul %120, %121, %cst_76 {dimension_numbers = #tpu.dot_dimension_numbers<[1], [0], [0], [1], [0, 0, 1, 1], [], []>} : vector<16x128xbf16>, vector<128x128xbf16>, vector<16x128xf32> -> vector<16x128xf32>
    %c0_77 = arith.constant 0 : index
    %c0_78 = arith.constant 0 : index
    %123 = vector.load %arg9[%c0_77, %c0_78] : memref<1x128xf32, #tpu.memory_space<vmem>>, vector<1x128xf32>
    %124 = vector.broadcast %123 : vector<1x128xf32> to vector<16x128xf32>
    %125 = arith.addf %122, %124 : vector<16x128xf32>
    %cst_79 = arith.constant 0.000000e+00 : f32
    %126 = vector.broadcast %cst_79 : f32 to vector<16x128xf32>
    %127 = arith.maximumf %125, %126 : vector<16x128xf32>
    %128 = arith.truncf %127 : vector<16x128xf32> to vector<16x128xbf16>
    %c0_80 = arith.constant 0 : index
    %c0_81 = arith.constant 0 : index
    %129 = vector.load %arg10[%c0_80, %c0_81] : memref<128x128xbf16, #tpu.memory_space<vmem>>, vector<128x128xbf16>
    %cst_82 = arith.constant dense<0.000000e+00> : vector<16x128xf32>
    %130 = tpu.matmul %128, %129, %cst_82 {dimension_numbers = #tpu.dot_dimension_numbers<[1], [0], [0], [1], [0, 0, 1, 1], [], []>} : vector<16x128xbf16>, vector<128x128xbf16>, vector<16x128xf32> -> vector<16x128xf32>
    %c0_83 = arith.constant 0 : index
    %c0_84 = arith.constant 0 : index
    %131 = vector.load %arg11[%c0_83, %c0_84] : memref<1x128xf32, #tpu.memory_space<vmem>>, vector<1x128xf32>
    %132 = vector.broadcast %131 : vector<1x128xf32> to vector<16x128xf32>
    %133 = arith.addf %130, %132 : vector<16x128xf32>
    %c0_85 = arith.constant 0 : index
    %c0_86 = arith.constant 0 : index
    %134 = vector.load %arg12[%c0_85, %c0_86] : memref<16x128xf32, #tpu.memory_space<vmem>>, vector<16x128xf32>
    tpu.vector_store %arg12[%c0_85, %c0_86], %133 {strides = array<i32>} : memref<16x128xf32, #tpu.memory_space<vmem>>, vector<16x128xf32>,
    return
  }
  func.func @transform_0(%arg0: i32) -> (i32, i32, i32) {
    %c0_i32 = arith.constant 0 : i32
    %c0_i32_0 = arith.constant 0 : i32
    %c0_i32_1 = arith.constant 0 : i32
    return %arg0, %c0_i32, %c0_i32_0 : i32, i32, i32
  }
  func.func @transform_1(%arg0: i32) -> (i32, i32, i32) {
    %c0_i32 = arith.constant 0 : i32
    %c0_i32_0 = arith.constant 0 : i32
    %c0_i32_1 = arith.constant 0 : i32
    %c0_i32_2 = arith.constant 0 : i32
    return %c0_i32, %c0_i32_0, %c0_i32_1 : i32, i32, i32
  }
  func.func @transform_2(%arg0: i32) -> (i32, i32) {
    %c0_i32 = arith.constant 0 : i32
    %c0_i32_0 = arith.constant 0 : i32
    %c0_i32_1 = arith.constant 0 : i32
    return %c0_i32, %c0_i32_0 : i32, i32
  }
  func.func @transform_3(%arg0: i32) -> (i32, i32, i32) {
    %c0_i32 = arith.constant 0 : i32
    %c0_i32_0 = arith.constant 0 : i32
    %c0_i32_1 = arith.constant 0 : i32
    %c0_i32_2 = arith.constant 0 : i32
    return %c0_i32, %c0_i32_0, %c0_i32_1 : i32, i32, i32
  }
  func.func @transform_4(%arg0: i32) -> (i32, i32) {
    %c0_i32 = arith.constant 0 : i32
    %c0_i32_0 = arith.constant 0 : i32
    %c0_i32_1 = arith.constant 0 : i32
    return %c0_i32, %c0_i32_0 : i32, i32
  }
  func.func @transform_5(%arg0: i32) -> (i32, i32, i32) {
    %c0_i32 = arith.constant 0 : i32
    %c0_i32_0 = arith.constant 0 : i32
    %c0_i32_1 = arith.constant 0 : i32
    %c0_i32_2 = arith.constant 0 : i32
    return %c0_i32, %c0_i32_0, %c0_i32_1 : i32, i32, i32
  }
  func.func @transform_6(%arg0: i32) -> (i32, i32) {
    %c0_i32 = arith.constant 0 : i32
    %c0_i32_0 = arith.constant 0 : i32
    %c0_i32_1 = arith.constant 0 : i32
    return %c0_i32, %c0_i32_0 : i32, i32
  }
  func.func @transform_7(%arg0: i32) -> (i32, i32) {
    %c0_i32 = arith.constant 0 : i32
    %c0_i32_0 = arith.constant 0 : i32
    %c0_i32_1 = arith.constant 0 : i32
    return %c0_i32, %c0_i32_0 : i32, i32
  }
  func.func @transform_8(%arg0: i32) -> (i32, i32) {
    %c0_i32 = arith.constant 0 : i32
    %c0_i32_0 = arith.constant 0 : i32
    %c0_i32_1 = arith.constant 0 : i32
    return %c0_i32, %c0_i32_0 : i32, i32
  }
  func.func @transform_9(%arg0: i32) -> (i32, i32) {
    %c0_i32 = arith.constant 0 : i32
    %c0_i32_0 = arith.constant 0 : i32
    %c0_i32_1 = arith.constant 0 : i32
    return %c0_i32, %c0_i32_0 : i32, i32
  }
  func.func @transform_10(%arg0: i32) -> (i32, i32) {
    %c0_i32 = arith.constant 0 : i32
    %c0_i32_0 = arith.constant 0 : i32
    %c0_i32_1 = arith.constant 0 : i32
    return %c0_i32, %c0_i32_0 : i32, i32
  }
  func.func @transform_11(%arg0: i32) -> (i32, i32) {
    %c0_i32 = arith.constant 0 : i32
    %c0_i32_0 = arith.constant 0 : i32
    return %arg0, %c0_i32 : i32, i32
  }
}

</mosaic_0001>

<bundles_post_ra>
// kernel: net_forward.1
= control target key start
LH: loop header
LB: loop body
LE: loop exit
PB: predicated region body
PF: predicated region fallthrough
CT: control target
= control target key end

     0   :  { %s7885_s17 = smov 0   ;;  %s9520_s0 = inlined_call_operand.vmem [shape: bf16[2,512,128], index: 0, kind: input, shape index: {}]   ;;  %s9521_s1 = inlined_call_operand.vmem [shape: bf16[5,128,256], index: 1, kind: input, shape index: {}]   ;;  %s9522_s2 = inlined_call_operand.vmem [shape: f32[1,128], index: 2, kind: input, shape index: {}]   ;;  %s9523_s3 = inlined_call_operand.vmem [shape: bf16[5,128,256], index: 3, kind: input, shape index: {}]   ;;  %s9524_s4 = inlined_call_operand.vmem [shape: f32[1,128], index: 4, kind: input, shape index: {}]   ;;  %s9525_s5 = inlined_call_operand.vmem [shape: bf16[5,128,128], index: 5, kind: input, shape index: {}]   ;;  %s9526_s6 = inlined_call_operand.vmem [shape: f32[1,128], index: 6, kind: input, shape index: {}]   ;;  %s9527_s7 = inlined_call_operand.vmem [shape: bf16[128,128], index: 7, kind: input, shape index: {}]   ;;  %s9528_s8 = inlined_call_operand.vmem [shape: f32[1,128], index: 8, kind: input, shape index: {}]   ;;  %s9529_s9 = inlined_call_operand.vmem [shape: bf16[128,128], index: 9, kind: input, shape index: {}]   ;;  %s9530_s10 = inlined_call_operand.vmem [shape: f32[1,128], index: 10, kind: input, shape index: {}]   ;;  %s9531_s11 = inlined_call_operand.vmem [shape: f32[32,128], index: 11, kind: output, shape index: {}]  }
   0x1 LB: > { %s7891_s18 = sadd.s32 4294967295, %s7820_s17   ;;  %p6006_p0 = scmp.ge.s32.totalorder %s7820_s17, 1  ;;  %s7820_s17 = sphi %s7885_s17, %s21_s17  }
   0x2   : > { %p337_p1 = scmp.lt.s32.totalorder %s7820_s17, 3 }
   0x4   : > { %p338_p2 = pnand %p6006_p0, %p337_p1 }
   0x6   : > { %341 = sbr.rel (%p338_p2) target bundleno = 2366 (0x93e), region = 64 }
   0xd   : > { %v7378_v0 = vld [vmem:[%s9521_s1 + $0x4] ss:$8 sps:$4 sm:$0xff]   ;;  %p377_p3 = scmp.lt.s32.totalorder %s7891_s18, 1  ;;  %v7380_v1 = vld [vmem:[%s9521_s1] ss:$8 sps:$4 sm:$0xff]   ;;  %v9532_v2 = vmov 0  }
   0xe   : > { %1159 = vmatprep.mubr.bf16.mxu0 %v9532_v2  ;;  %760 = vmatprep.mubr.bf16.mxu1 %v9532_v2  ;;  %v7381_v3 = vld [vmem:[%s9521_s1 + $0x14] ss:$8 sps:$4 sm:$0xff]   ;;  %v7383_v4 = vld [vmem:[%s9521_s1 + $0x10] ss:$8 sps:$4 sm:$0xff]   ;;  %v7384_v5 = vld [vmem:[%s9521_s1 + $0x24] ss:$8 sps:$4 sm:$0xff]  }
   0xf   : > { %1127 = vmatprep.subr.bf16.mxu0 %v7378_v0  ;;  %s378_s25 = scalar_select %p377_p3, %s7891_s18, 1  ;;  %v7386_v6 = vld [vmem:[%s9521_s1 + $0x20] ss:$8 sps:$4 sm:$0xff]   ;;  %v7387_v7 = vld [vmem:[%s9521_s1 + $0x34] ss:$8 sps:$4 sm:$0xff]   ;;  %vm7824_vm0 = vmmov 0  }
  0x10   : > { %1128 = vmatpush1.bf16.msra.mxu0 %v7380_v1  ;;  %v7389_v8 = vld [vmem:[%s9521_s1 + $0x30] ss:$8 sps:$4 sm:$0xff]   ;;  %v7390_v9 = vld [vmem:[%s9521_s1 + $0x44] ss:$8 sps:$4 sm:$0xff]   ;;  %v7392_v10 = vld [vmem:[%s9521_s1 + $0x40] ss:$8 sps:$4 sm:$0xff]  }
  0x11   : > { %1129 = vmatprep.subr.bf16.mxu0 %v7381_v3  ;;  %s6539_s30 = sshll.u32 %s378_s25, 8  ;;  %v7393_v11 = vld [vmem:[%s9521_s1 + $0x54] ss:$8 sps:$4 sm:$0xff]   ;;  %v7395_v12 = vld [vmem:[%s9521_s1 + $0x50] ss:$8 sps:$4 sm:$0xff]   ;;  %s6009_s13 = sshll.u32 %s7891_s18, 1 }
  0x12   : > { %s7923_s20 = scalar_lea.vmem %s9520_s0, %s6539_s30  ;;  %v7396_v13 = vld [vmem:[%s9521_s1 + $0x64] ss:$8 sps:$4 sm:$0xff]   ;;  %v7398_v14 = vld [vmem:[%s9521_s1 + $0x60] ss:$8 sps:$4 sm:$0xff]   ;;  %v7399_v15 = vld [vmem:[%s9521_s1 + $0x74] ss:$8 sps:$4 sm:$0xff]  }
  0x13   : > { %v7401_v16 = vld [vmem:[%s9521_s1 + $0x70] ss:$8 sps:$4 sm:$0xff]   ;;  %v7405_v17 = vld [vmem:[%s9521_s1 + $0x104] ss:$8 sps:$4 sm:$0xff]   ;;  %v7403_v19 = vld [vmem:[%s9521_s1 + $0x100] ss:$8 sps:$4 sm:$0xff]  }
  0x14   : > { %1130 = vmatpush1.bf16.msra.mxu0 %v7383_v4  ;;  %v7402_v18 = vld [vmem:[%s7923_s20] sm:$0xff]   ;;  %v7411_v20 = vld [vmem:[%s9521_s1 + $0x114] ss:$8 sps:$4 sm:$0xff]   ;;  %v7409_v21 = vld [vmem:[%s9521_s1 + $0x110] ss:$8 sps:$4 sm:$0xff]   ;;  %p383_p4 = scmp.lt.s32.totalorder %s6009_s13, 3 }
  0x15   : > { %1131 = vmatprep.subr.bf16.mxu0 %v7384_v5  ;;  %v7406_v22 = vld [vmem:[%s7923_s20 + $0x8] sm:$0xff]   ;;  %v7423_v25 = vld [vmem:[%s9521_s1 + $0x134] ss:$8 sps:$4 sm:$0xff]   ;;  %v7421_v26 = vld [vmem:[%s9521_s1 + $0x130] ss:$8 sps:$4 sm:$0xff]  }
  0x16   : > { %v7417_v23 = vld [vmem:[%s9521_s1 + $0x124] ss:$8 sps:$4 sm:$0xff]   ;;  %v7415_v24 = vld [vmem:[%s9521_s1 + $0x120] ss:$8 sps:$4 sm:$0xff]   ;;  %v7407_v28 = vld [vmem:[%s7923_s20 + $0x10] sm:$0xff]   ;;  %s9610_s13 = smov (!%p383_p4, %s6009_s13), 3 }
  0x17   : > { %v7429_v27 = vld [vmem:[%s9521_s1 + $0x144] ss:$8 sps:$4 sm:$0xff]   ;;  %v7427_v29 = vld [vmem:[%s9521_s1 + $0x140] ss:$8 sps:$4 sm:$0xff]   ;;  %v7435_v30 = vld [vmem:[%s9521_s1 + $0x154] ss:$8 sps:$4 sm:$0xff]  }
  0x18   : > { %1132 = vmatpush1.bf16.msra.mxu0 %v7386_v6  ;;  %v7433_v31 = vld [vmem:[%s9521_s1 + $0x150] ss:$8 sps:$4 sm:$0xff]   ;;  %v7441_v32 = vld [vmem:[%s9521_s1 + $0x164] ss:$8 sps:$4 sm:$0xff]   ;;  %v7439_v34 = vld [vmem:[%s9521_s1 + $0x160] ss:$8 sps:$4 sm:$0xff]  }
  0x19   : > { %1133 = vmatprep.subr.bf16.mxu0 %v7387_v7  ;;  %v7408_v33 = vld [vmem:[%s7923_s20 + $0x18] sm:$0xff]   ;;  %v7412_v35 = vld [vmem:[%s7923_s20 + $0x20] sm:$0xff]   ;;  %v7413_v36 = vld [vmem:[%s7923_s20 + $0x28] sm:$0xff]   ;;  %s6010_s14 = sshll.u32 %s9610_s13, 3 }
  0x1a   : > { %v7445_v37 = vld [vmem:[%s9521_s1 + $0x170] ss:$8 sps:$4 sm:$0xff]   ;;  %v7447_v38 = vld [vmem:[%s9521_s1 + $0x174] ss:$8 sps:$4 sm:$0xff]   ;;  %v7419_v41 = vld [vmem:[%s7923_s20 + $0x40] sm:$0xff]   ;;  %s386_s22 = scalar_lea.vmem %s9531_s11, %s6010_s14 }
  0x1b   : > { %v7414_v39 = vld [vmem:[%s7923_s20 + $0x30] sm:$0xff]   ;;  %v7418_v40 = vld [vmem:[%s7923_s20 + $0x38] sm:$0xff]   ;;  %v7453_v42 = vld [vmem:[%s9521_s1 + $0x184] ss:$8 sps:$4 sm:$0xff]  }
  0x1c   : > { %1134 = vmatpush1.bf16.msra.mxu0 %v7389_v8  ;;  %v7420_v43 = vld [vmem:[%s7923_s20 + $0x48] sm:$0xff]   ;;  %v7424_v44 = vld [vmem:[%s7923_s20 + $0x50] sm:$0xff]   ;;  %v7425_v45 = vld [vmem:[%s7923_s20 + $0x58] sm:$0xff]  }
  0x1d   : > { %1135 = vmatprep.subr.bf16.mxu0 %v7390_v9  ;;  %v8028_v46 = vld [vmem:[%s7923_s20 + $0x60] sm:$0xff]   ;;  %v8033_v47 = vld [vmem:[%s7923_s20 + $0x68] sm:$0xff]   ;;  %v8038_v48 = vld [vmem:[%s7923_s20 + $0x70] sm:$0xff]  }
  0x1e   : > { %v8043_v49 = vld [vmem:[%s7923_s20 + $0x78] sm:$0xff]   ;;  %v8048_v50 = vld [vmem:[%s7923_s20 + $0x80] sm:$0xff]   ;;  %v8053_v51 = vld [vmem:[%s7923_s20 + $0x88] sm:$0xff]  }
  0x1f   : > { %v8058_v52 = vld [vmem:[%s7923_s20 + $0x90] sm:$0xff]   ;;  %v8063_v53 = vld [vmem:[%s7923_s20 + $0x98] sm:$0xff]   ;;  %v8068_v54 = vld [vmem:[%s7923_s20 + $0xa0] sm:$0xff]  }
  0x20   : > { %1136 = vmatpush1.bf16.msra.mxu0 %v7392_v10  ;;  %v8073_v55 = vld [vmem:[%s7923_s20 + $0xa8] sm:$0xff]   ;;  %v8078_v56 = vld [vmem:[%s7923_s20 + $0xb0] sm:$0xff]   ;;  %v8083_v57 = vld [vmem:[%s7923_s20 + $0xb8] sm:$0xff]  }
  0x21   : > { %1137 = vmatprep.subr.bf16.mxu0 %v7393_v11  ;;  %v7450_v58 = vld [vmem:[%s7923_s20 + $0x10] sm:$0xff]   ;;  %v7451_v59 = vld [vmem:[%s9521_s1 + $0x180] ss:$8 sps:$4 sm:$0xff]   ;;  %v7466_v62 = vld [vmem:[%s9521_s1 + $0x1a4] ss:$8 sps:$4 sm:$0xff]  }
  0x22   : > { %v7459_v60 = vld [vmem:[%s9521_s1 + $0x194] ss:$8 sps:$4 sm:$0xff]   ;;  %v7457_v61 = vld [vmem:[%s9521_s1 + $0x190] ss:$8 sps:$4 sm:$0xff]   ;;  %v7464_v0 = vld [vmem:[%s9521_s1 + $0x1a0] ss:$8 sps:$4 sm:$0xff]  }
  0x23   : > { %v7454_v63 = vld [vmem:[%s7923_s20 + $0x18] sm:$0xff]   ;;  %v7479_v4 = vld [vmem:[%s9521_s1 + $0x1c4] ss:$8 sps:$4 sm:$0xff]   ;;  %v7477_v6 = vld [vmem:[%s9521_s1 + $0x1c0] ss:$8 sps:$4 sm:$0xff]  }
  0x24   : > { %1138 = vmatpush1.bf16.msra.mxu0 %v7395_v12  ;;  %v7472_v1 = vld [vmem:[%s9521_s1 + $0x1b4] ss:$8 sps:$4 sm:$0xff]   ;;  %v7470_v3 = vld [vmem:[%s9521_s1 + $0x1b0] ss:$8 sps:$4 sm:$0xff]   ;;  %v7455_v5 = vld [vmem:[%s7923_s20 + $0x20] sm:$0xff]  }
  0x25   : > { %1139 = vmatprep.subr.bf16.mxu0 %v7396_v13  ;;  %v7485_v7 = vld [vmem:[%s9521_s1 + $0x1d4] ss:$8 sps:$4 sm:$0xff]   ;;  %v7483_v8 = vld [vmem:[%s9521_s1 + $0x1d0] ss:$8 sps:$4 sm:$0xff]   ;;  %v7456_v9 = vld [vmem:[%s7923_s20 + $0x28] sm:$0xff]  }
  0x26   : > { %v7460_v10 = vld [vmem:[%s7923_s20 + $0x30] sm:$0xff]   ;;  %v7461_v11 = vld [vmem:[%s7923_s20 + $0x38] sm:$0xff]   ;;  %v7490_v12 = vld [vmem:[%s9521_s1 + $0x1e0] ss:$8 sps:$4 sm:$0xff]  }
  0x27   : > { %v7492_v13 = vld [vmem:[%s9521_s1 + $0x1e4] ss:$8 sps:$4 sm:$0xff]  }
  0x28   : > { %1140 = vmatpush1.bf16.msra.mxu0 %v7398_v14  ;;  %v7462_v14 = vld [vmem:[%s7923_s20 + $0x40] sm:$0xff]  }
  0x29   : > { %1141 = vmatprep.subr.bf16.mxu0 %v7399_v15  ;;  %v7463_v15 = vld [vmem:[%s7923_s20 + $0x48] sm:$0xff]  }
  0x2c   : > { %1142 = vmatpush1.bf16.msra.mxu0 %v7401_v16  ;;  %v7467_v16 = vld [vmem:[%s7923_s20 + $0x50] sm:$0xff]  }
  0x2d   : > { %1761 = vmatprep.subr.bf16.mxu0 %v7405_v17  ;;  %v7496_v17 = vld [vmem:[%s9521_s1 + $0x1f0] ss:$8 sps:$4 sm:$0xff]  }
  0x2f   : > { %1160 = vmatmul.mubr.bf16.vlgmr.msra.gmra.mrb[0].mxu0 %v7402_v18  ;;  %v7498_v18 = vld [vmem:[%s9521_s1 + $0x1f4] ss:$8 sps:$4 sm:$0xff]  }
  0x30   : > { %1762 = vmatpush1.bf16.msra.mxu0 %v7403_v19  ;;  %1169 = vmatprep.mubr.bf16.mxu0 %v9532_v2  ;;  %v7468_v19 = vld [vmem:[%s7923_s20 + $0x58] sm:$0xff]  }
  0x31   : > { %1763 = vmatprep.subr.bf16.mxu0 %v7411_v20  ;;  %v7469_v20 = vld [vmem:[%s7923_s20 + $0x60] sm:$0xff]  }
  0x34   : > { %1764 = vmatpush1.bf16.msra.mxu0 %v7409_v21  ;;  %v7473_v21 = vld [vmem:[%s7923_s20 + $0x68] sm:$0xff]  }
  0x35   : > { %1765 = vmatprep.subr.bf16.mxu0 %v7417_v23  ;;  %v7505_v23 = vld [vmem:[%s9521_s1 + $0x204] ss:$8 sps:$4 sm:$0xff]  }
  0x37   : > { %1170 = vmatmul.mubr.bf16.gmra.mrb[4].mxu0 %v7406_v22  ;;  %v7474_v22 = vld [vmem:[%s7923_s20 + $0x70] sm:$0xff]  }
  0x38   : > { %1179 = vmatprep.mubr.bf16.mxu0 %v9532_v2  ;;  %1766 = vmatpush1.bf16.msra.mxu0 %v7415_v24  ;;  %v7475_v24 = vld [vmem:[%s7923_s20 + $0x78] sm:$0xff]  }
  0x39   : > { %1767 = vmatprep.subr.bf16.mxu0 %v7423_v25  ;;  %v7476_v25 = vld [vmem:[%s7923_s20 + $0x80] sm:$0xff]  }
  0x3c   : > { %1768 = vmatpush1.bf16.msra.mxu0 %v7421_v26  ;;  %v7480_v26 = vld [vmem:[%s7923_s20 + $0x88] sm:$0xff]  }
  0x3d   : > { %1769 = vmatprep.subr.bf16.mxu0 %v7429_v27  ;;  %v7481_v27 = vld [vmem:[%s7923_s20 + $0x90] sm:$0xff]  }
  0x3f   : > { %1180 = vmatmul.mubr.bf16.gmra.mrb[8].mxu0 %v7407_v28  ;;  %v7482_v28 = vld [vmem:[%s7923_s20 + $0x98] sm:$0xff]  }
  0x40   : > { %1189 = vmatprep.mubr.bf16.mxu0 %v9532_v2  ;;  %1770 = vmatpush1.bf16.msra.mxu0 %v7427_v29  ;;  %v7486_v29 = vld [vmem:[%s7923_s20 + $0xa0] sm:$0xff]  }
  0x41   : > { %1771 = vmatprep.subr.bf16.mxu0 %v7435_v30  ;;  %v7487_v30 = vld [vmem:[%s7923_s20 + $0xa8] sm:$0xff]  }
  0x44   : > { %1772 = vmatpush1.bf16.msra.mxu0 %v7433_v31  ;;  %v7488_v31 = vld [vmem:[%s7923_s20 + $0xb0] sm:$0xff]  }
  0x45   : > { %1773 = vmatprep.subr.bf16.mxu0 %v7441_v32  ;;  %v7489_v32 = vld [vmem:[%s7923_s20 + $0xb8] sm:$0xff]  }
  0x47   : > { %1190 = vmatmul.mubr.bf16.gmra.mrb[12].mxu0 %v7408_v33  ;;  %v7493_v33 = vld [vmem:[%s7923_s20 + $0xc0] sm:$0xff]  }
  0x48   : > { %1199 = vmatprep.mubr.bf16.mxu0 %v9532_v2  ;;  %1774 = vmatpush1.bf16.msra.mxu0 %v7439_v34  ;;  %v7494_v34 = vld [vmem:[%s7923_s20 + $0xc8] sm:$0xff]  }
  0x49   : > { %1775 = vmatprep.subr.bf16.mxu0 %v7447_v38  ;;  %v7501_v38 = vld [vmem:[%s7923_s20 + $0xe8] sm:$0xff]  }
  0x4c   : > { %1776 = vmatpush1.bf16.msra.mxu0 %v7445_v37  ;;  %v7500_v37 = vld [vmem:[%s7923_s20 + $0xe0] sm:$0xff]  }
  0x4d   : > { %2507 = vmatprep.subr.bf16.mxu0 %v7453_v42  ;;  %v7509_v42 = vld [vmem:[%s9521_s1 + $0x210] ss:$8 sps:$4 sm:$0xff]  }
  0x4f   : > { %1200 = vmatmul.mubr.bf16.gmra.mrb[16].mxu0 %v7412_v35  ;;  %v7495_v35 = vld [vmem:[%s7923_s20 + $0xd0] sm:$0xff]  }
  0x50   : > { %1209 = vmatprep.mubr.bf16.mxu0 %v9532_v2 }
  0x57   : > { %1210 = vmatmul.mubr.bf16.gmra.mrb[20].mxu0 %v7413_v36  ;;  %v7499_v36 = vld [vmem:[%s7923_s20 + $0xd8] sm:$0xff]  }
  0x58   : > { %1219 = vmatprep.mubr.bf16.mxu0 %v9532_v2 }
  0x5f   : > { %1220 = vmatmul.mubr.bf16.gmra.mrb[24].mxu0 %v7414_v39  ;;  %v7502_v39 = vld [vmem:[%s7923_s20 + $0x18] sm:$0xff]  }
  0x60   : > { %1229 = vmatprep.mubr.bf16.mxu0 %v9532_v2 }
  0x67   : > { %1230 = vmatmul.mubr.bf16.gmra.mrb[28].mxu0 %v7418_v40  ;;  %v7503_v40 = vld [vmem:[%s9521_s1 + $0x200] ss:$8 sps:$4 sm:$0xff]  }
  0x68   : > { %1239 = vmatprep.mubr.bf16.mxu0 %v9532_v2 }
  0x6f   : > { %1240 = vmatmul.mubr.bf16.gmra.mrb[32].mxu0 %v7419_v41  ;;  %v7511_v41 = vld [vmem:[%s9521_s1 + $0x214] ss:$8 sps:$4 sm:$0xff]  }
  0x70   : > { %1249 = vmatprep.mubr.bf16.mxu0 %v9532_v2 }
  0x77   : > { %1250 = vmatmul.mubr.bf16.gmra.mrb[36].mxu0 %v7420_v43  ;;  %v7518_v43 = vld [vmem:[%s9521_s1 + $0x224] ss:$8 sps:$4 sm:$0xff]  }
  0x78   : > { %1259 = vmatprep.mubr.bf16.mxu0 %v9532_v2 }
  0x7f   : > { %1260 = vmatmul.mubr.bf16.gmra.mrb[40].mxu0 %v7424_v44  ;;  %v7506_v44 = vld [vmem:[%s7923_s20 + $0x20] sm:$0xff]  }
  0x80   : > { %1269 = vmatprep.mubr.bf16.mxu0 %v9532_v2 }
  0x87   : > { %1270 = vmatmul.mubr.bf16.gmra.mrb[44].mxu0 %v7425_v45  ;;  %v7516_v45 = vld [vmem:[%s9521_s1 + $0x220] ss:$8 sps:$4 sm:$0xff]  }
  0x88   : > { %1279 = vmatprep.mubr.bf16.mxu0 %v9532_v2 }
  0x8f   : > { %1280 = vmatmul.mubr.bf16.gmra.mrb[48].mxu0 %v8028_v46 }
  0x90   : > { %1289 = vmatprep.mubr.bf16.mxu0 %v9532_v2 }
  0x97   : > { %1290 = vmatmul.mubr.bf16.gmra.mrb[52].mxu0 %v8033_v47 }
  0x98   : > { %1299 = vmatprep.mubr.bf16.mxu0 %v9532_v2 }
  0x9f   : > { %1300 = vmatmul.mubr.bf16.gmra.mrb[56].mxu0 %v8038_v48 }
  0xa0   : > { %1309 = vmatprep.mubr.bf16.mxu0 %v9532_v2 }
  0xa7   : > { %1310 = vmatmul.mubr.bf16.gmra.mrb[60].mxu0 %v8043_v49 }
  0xa8   : > { %1319 = vmatprep.mubr.bf16.mxu0 %v9532_v2 }
  0xaf   : > { %1320 = vmatmul.mubr.bf16.gmra.mrb[64].mxu0 %v8048_v50 }
  0xb0   : > { %1329 = vmatprep.mubr.bf16.mxu0 %v9532_v2 }
  0xb7   : > { %1330 = vmatmul.mubr.bf16.gmra.mrb[68].mxu0 %v8053_v51 }
  0xb8   : > { %1339 = vmatprep.mubr.bf16.mxu0 %v9532_v2 }
  0xbf   : > { %1340 = vmatmul.mubr.bf16.gmra.mrb[72].mxu0 %v8058_v52 }
  0xc0   : > { %1349 = vmatprep.mubr.bf16.mxu0 %v9532_v2 }
  0xc7   : > { %1350 = vmatmul.mubr.bf16.gmra.mrb[76].mxu0 %v8063_v53 }
  0xc8   : > { %1359 = vmatprep.mubr.bf16.mxu0 %v9532_v2 }
  0xcf   : > { %1360 = vmatmul.mubr.bf16.gmra.mrb[80].mxu0 %v8068_v54 }
  0xd0   : > { %1369 = vmatprep.mubr.bf16.mxu0 %v9532_v2 }
  0xd7   : > { %1370 = vmatmul.mubr.bf16.gmra.mrb[84].mxu0 %v8073_v55 }
  0xd8   : > { %1379 = vmatprep.mubr.bf16.mxu0 %v9532_v2 }
  0xdf   : > { %1380 = vmatmul.mubr.bf16.gmra.mrb[88].mxu0 %v8078_v56 }
  0xe0   : > { %1389 = vmatprep.mubr.bf16.mxu0 %v9532_v2 }
  0xe7   : > { %1390 = vmatmul.mubr.bf16.gmra.mrb[92].mxu0 %v8083_v57 }
  0xe8   : > { %1793 = vmatprep.mubr.bf16.mxu0 %v9532_v2 }
  0xef   : > { %1794 = vmatmul.mubr.bf16.vlgmr.msra.gmra.mrb[0].mxu0 %v7450_v58  ;;  %v7524_v58 = vld [vmem:[%s9521_s1 + $0x234] ss:$8 sps:$4 sm:$0xff]  }
  0xf0   : > { %2508 = vmatpush1.bf16.msra.mxu0 %v7451_v59  ;;  %1803 = vmatprep.mubr.bf16.mxu0 %v9532_v2  ;;  %v7522_v59 = vld [vmem:[%s9521_s1 + $0x230] ss:$8 sps:$4 sm:$0xff]  }
  0xf1   : > { %2509 = vmatprep.subr.bf16.mxu0 %v7459_v60  ;;  %v7531_v60 = vld [vmem:[%s9521_s1 + $0x244] ss:$8 sps:$4 sm:$0xff]  }
  0xf4   : > { %2510 = vmatpush1.bf16.msra.mxu0 %v7457_v61  ;;  %v7507_v61 = vld [vmem:[%s7923_s20 + $0x28] sm:$0xff]  }
  0xf5   : > { %2511 = vmatprep.subr.bf16.mxu0 %v7466_v62  ;;  %v7529_v62 = vld [vmem:[%s9521_s1 + $0x240] ss:$8 sps:$4 sm:$0xff]  }
  0xf7   : > { %1804 = vmatmul.mubr.bf16.gmra.mrb[4].mxu0 %v7454_v63  ;;  %v7537_v63 = vld [vmem:[%s9521_s1 + $0x254] ss:$8 sps:$4 sm:$0xff]  }
  0xf8   : > { %1813 = vmatprep.mubr.bf16.mxu0 %v9532_v2  ;;  %2512 = vmatpush1.bf16.msra.mxu0 %v7464_v0  ;;  %v7535_v0 = vld [vmem:[%s9521_s1 + $0x250] ss:$8 sps:$4 sm:$0xff]  }
  0xf9   : > { %2513 = vmatprep.subr.bf16.mxu0 %v7472_v1  ;;  %v7508_v1 = vld [vmem:[%s7923_s20 + $0x30] sm:$0xff]  }
  0xfc   : > { %2514 = vmatpush1.bf16.msra.mxu0 %v7470_v3  ;;  %v7540_v3 = vld [vmem:[%s9521_s1 + $0x84] ss:$8 sps:$4 sm:$0xff]  }
  0xfd   : > { %2515 = vmatprep.subr.bf16.mxu0 %v7479_v4  ;;  %728 = vmatprep.subr.bf16.mxu1 %v7540_v3  ;;  %v7512_v4 = vld [vmem:[%s7923_s20 + $0x38] sm:$0xff]   ;;  %v7808_v3 = vld [vmem:[%s7923_s20 + $0x30] sm:$0xff]  }
  0xff   : > { %1814 = vmatmul.mubr.bf16.gmra.mrb[8].mxu0 %v7455_v5  ;;  %v7543_v5 = vld [vmem:[%s9521_s1 + $0x80] ss:$8 sps:$4 sm:$0xff]  }
 0x100   : > { %1823 = vmatprep.mubr.bf16.mxu0 %v9532_v2  ;;  %2516 = vmatpush1.bf16.msra.mxu0 %v7477_v6  ;;  %v7544_v6 = vld [vmem:[%s9521_s1 + $0x94] ss:$8 sps:$4 sm:$0xff]  }
 0x101   : > { %2517 = vmatprep.subr.bf16.mxu0 %v7485_v7  ;;  %729 = vmatpush1.bf16.msra.mxu1 %v7543_v5  ;;  %v7546_v7 = vld [vmem:[%s9521_s1 + $0x90] ss:$8 sps:$4 sm:$0xff]  }
 0x102   : > { %730 = vmatprep.subr.bf16.mxu1 %v7544_v6  ;;  %v7809_v5 = vld [vmem:[%s7923_s20 + $0x38] sm:$0xff]   ;;  %v7532_v6 = vld [vmem:[%s7923_s20 + $0x90] sm:$0xff]  }
 0x104   : > { %2518 = vmatpush1.bf16.msra.mxu0 %v7483_v8  ;;  %v7547_v8 = vld [vmem:[%s9521_s1 + $0xa4] ss:$8 sps:$4 sm:$0xff]  }
 0x105   : > { %2519 = vmatprep.subr.bf16.mxu0 %v7492_v13  ;;  %731 = vmatpush1.bf16.msra.mxu1 %v7546_v7  ;;  %v7554_v13 = vld [vmem:[%s9521_s1 + $0xb4] ss:$8 sps:$4 sm:$0xff]   ;;  %v7810_v7 = vld [vmem:[%s7923_s20 + $0x40] sm:$0xff]  }
 0x106   : > { %732 = vmatprep.subr.bf16.mxu1 %v7547_v8  ;;  %v7533_v8 = vld [vmem:[%s7923_s20 + $0x98] sm:$0xff]  }
 0x107   : > { %1824 = vmatmul.mubr.bf16.gmra.mrb[12].mxu0 %v7456_v9  ;;  %v7513_v9 = vld [vmem:[%s7923_s20 + $0x40] sm:$0xff]  }
 0x108   : > { %1833 = vmatprep.mubr.bf16.mxu0 %v9532_v2  ;;  %2520 = vmatpush1.bf16.msra.mxu0 %v7490_v12  ;;  %v7552_v12 = vld [vmem:[%s9521_s1 + $0x264] ss:$8 sps:$4 sm:$0xff]  }
 0x109   : > { %2521 = vmatprep.subr.bf16.mxu0 %v7498_v18  ;;  %v7561_v18 = vld [vmem:[%s9521_s1 + $0xd4] ss:$8 sps:$4 sm:$0xff]  }
 0x10c   : > { %2522 = vmatpush1.bf16.msra.mxu0 %v7496_v17  ;;  %v7560_v17 = vld [vmem:[%s9521_s1 + $0xc0] ss:$8 sps:$4 sm:$0xff]  }
 0x10d   : > { %3253 = vmatprep.subr.bf16.mxu0 %v7505_v23  ;;  %v7568_v23 = vld [vmem:[%s9521_s1 + $0xf4] ss:$8 sps:$4 sm:$0xff]  }
 0x10f   : > { %1834 = vmatmul.mubr.bf16.gmra.mrb[16].mxu0 %v7460_v10  ;;  %v7553_v10 = vld [vmem:[%s9521_s1 + $0xa0] ss:$8 sps:$4 sm:$0xff]  }
 0x110   : > { %1843 = vmatprep.mubr.bf16.mxu0 %v9532_v2  ;;  %733 = vmatpush1.bf16.msra.mxu1 %v7553_v10  ;;  %v7534_v10 = vld [vmem:[%s7923_s20 + $0xa0] sm:$0xff]  }
 0x111   : > { %734 = vmatprep.subr.bf16.mxu1 %v7554_v13  ;;  %v7813_v13 = vld [vmem:[%s7923_s20 + $0x58] sm:$0xff]  }
 0x117   : > { %1844 = vmatmul.mubr.bf16.gmra.mrb[20].mxu0 %v7461_v11  ;;  %v7550_v11 = vld [vmem:[%s9521_s1 + $0x260] ss:$8 sps:$4 sm:$0xff]  }
 0x118   : > { %1853 = vmatprep.mubr.bf16.mxu0 %v9532_v2 }
 0x11f   : > { %1854 = vmatmul.mubr.bf16.gmra.mrb[24].mxu0 %v7462_v14  ;;  %v7556_v14 = vld [vmem:[%s9521_s1 + $0xb0] ss:$8 sps:$4 sm:$0xff]  }
 0x120   : > { %1863 = vmatprep.mubr.bf16.mxu0 %v9532_v2  ;;  %735 = vmatpush1.bf16.msra.mxu1 %v7556_v14  ;;  %v7539_v14 = vld [vmem:[%s7923_s20 + $0xb0] sm:$0xff]  }
 0x127   : > { %1864 = vmatmul.mubr.bf16.gmra.mrb[28].mxu0 %v7463_v15  ;;  %v7557_v15 = vld [vmem:[%s9521_s1 + $0xc4] ss:$8 sps:$4 sm:$0xff]  }
 0x128   : > { %1873 = vmatprep.mubr.bf16.mxu0 %v9532_v2  ;;  %736 = vmatprep.subr.bf16.mxu1 %v7557_v15  ;;  %v7542_v15 = vld [vmem:[%s7923_s20 + $0xb8] sm:$0xff]  }
 0x129   : > { %737 = vmatpush1.bf16.msra.mxu1 %v7560_v17  ;;  %v7597_v17 = vld [vmem:[%s7923_s20 + $0xc0] sm:$0xff]  }
 0x12a   : > { %738 = vmatprep.subr.bf16.mxu1 %v7561_v18  ;;  %v7599_v18 = vld [vmem:[%s7923_s20 + $0xc8] sm:$0xff]  }
 0x12f   : > { %1874 = vmatmul.mubr.bf16.gmra.mrb[32].mxu0 %v7467_v16  ;;  %v7514_v16 = vld [vmem:[%s7923_s20 + $0x48] sm:$0xff]  }
 0x130   : > { %1883 = vmatprep.mubr.bf16.mxu0 %v9532_v2 }
 0x137   : > { %1884 = vmatmul.mubr.bf16.gmra.mrb[36].mxu0 %v7468_v19  ;;  %v7563_v19 = vld [vmem:[%s9521_s1 + $0xd0] ss:$8 sps:$4 sm:$0xff]  }
 0x138   : > { %1893 = vmatprep.mubr.bf16.mxu0 %v9532_v2  ;;  %739 = vmatpush1.bf16.msra.mxu1 %v7563_v19  ;;  %v7601_v19 = vld [vmem:[%s7923_s20 + $0xd0] sm:$0xff]  }
 0x13f   : > { %1894 = vmatmul.mubr.bf16.gmra.mrb[40].mxu0 %v7469_v20  ;;  %v7564_v20 = vld [vmem:[%s9521_s1 + $0xe4] ss:$8 sps:$4 sm:$0xff]  }
 0x140   : > { %1903 = vmatprep.mubr.bf16.mxu0 %v9532_v2  ;;  %740 = vmatprep.subr.bf16.mxu1 %v7564_v20  ;;  %v7584_v20 = vld [vmem:[%s7923_s20 + $0x50] sm:$0xff]  }
 0x147   : > { %1904 = vmatmul.mubr.bf16.gmra.mrb[44].mxu0 %v7473_v21  ;;  %v7515_v21 = vld [vmem:[%s7923_s20 + $0x50] sm:$0xff]  }
 0x148   : > { %1913 = vmatprep.mubr.bf16.mxu0 %v9532_v2 }
 0x14f   : > { %1914 = vmatmul.mubr.bf16.gmra.mrb[48].mxu0 %v7474_v22  ;;  %v7567_v22 = vld [vmem:[%s9521_s1 + $0xe0] ss:$8 sps:$4 sm:$0xff]  }
 0x150   : > { %1923 = vmatprep.mubr.bf16.mxu0 %v9532_v2  ;;  %741 = vmatpush1.bf16.msra.mxu1 %v7567_v22  ;;  %v7585_v22 = vld [vmem:[%s7923_s20 + $0x58] sm:$0xff]  }
 0x151   : > { %742 = vmatprep.subr.bf16.mxu1 %v7568_v23  ;;  %v7605_v23 = vld [vmem:[%s7923_s20 + $0xe0] sm:$0xff]  }
 0x157   : > { %1924 = vmatmul.mubr.bf16.gmra.mrb[52].mxu0 %v7475_v24  ;;  %v7570_v24 = vld [vmem:[%s9521_s1 + $0xf0] ss:$8 sps:$4 sm:$0xff]  }
 0x158   : > { %1933 = vmatprep.mubr.bf16.mxu0 %v9532_v2  ;;  %743 = vmatpush1.bf16.msra.mxu1 %v7570_v24  ;;  %v7586_v24 = vld [vmem:[%s7923_s20 + $0x60] sm:$0xff]  }
 0x15f   : > { %1934 = vmatmul.mubr.bf16.gmra.mrb[56].mxu0 %v7476_v25  ;;  %v7519_v25 = vld [vmem:[%s7923_s20 + $0x58] sm:$0xff]  }
 0x160   : > { %1943 = vmatprep.mubr.bf16.mxu0 %v9532_v2 }
 0x167   : > { %1944 = vmatmul.mubr.bf16.gmra.mrb[60].mxu0 %v7480_v26  ;;  %v7787_v26 = vld [vmem:[%s9521_s1 + $0x4] ss:$8 sps:$4 sm:$0xff]  }
 0x168   : > { %1953 = vmatprep.mubr.bf16.mxu0 %v9532_v2  ;;  %6743 = vmatprep.subr.bf16.mxu1 %v7787_v26  ;;  %v7588_v26 = vld [vmem:[%s7923_s20 + $0x70] sm:$0xff]  }
 0x16f   : > { %1954 = vmatmul.mubr.bf16.gmra.mrb[64].mxu0 %v7481_v27  ;;  %v7788_v27 = vld [vmem:[%s7923_s20 + $0x8] sm:$0xff]  }
 0x170   : > { %1963 = vmatprep.mubr.bf16.mxu0 %v9532_v2  ;;  %761 = vmatmul.mubr.bf16.vlgmr.msra.gmra.mrb[0].mxu1 %v7788_v27 }
 0x171   : > { %770 = vmatprep.mubr.bf16.mxu1 %v9532_v2 }
 0x177   : > { %1964 = vmatmul.mubr.bf16.gmra.mrb[68].mxu0 %v7482_v28  ;;  %v7572_v28 = vld [vmem:[%s9521_s1 + $0x270] ss:$8 sps:$4 sm:$0xff]  }
 0x178   : > { %1973 = vmatprep.mubr.bf16.mxu0 %v9532_v2 }
 0x17f   : > { %1974 = vmatmul.mubr.bf16.gmra.mrb[72].mxu0 %v7486_v29  ;;  %v7574_v29 = vld [vmem:[%s9521_s1 + $0x274] ss:$8 sps:$4 sm:$0xff]  }
 0x180   : > { %1983 = vmatprep.mubr.bf16.mxu0 %v9532_v2 }
 0x187   : > { %1984 = vmatmul.mubr.bf16.gmra.mrb[76].mxu0 %v7487_v30  ;;  %v7789_v30 = vld [vmem:[%s9521_s1] ss:$8 sps:$4 sm:$0xff]  }
 0x188   : > { %1993 = vmatprep.mubr.bf16.mxu0 %v9532_v2  ;;  %6751 = vmatpush1.bf16.msra.mxu1 %v7789_v30 }
 0x18f   : > { %1994 = vmatmul.mubr.bf16.gmra.mrb[80].mxu0 %v7488_v31  ;;  %v7790_v31 = vld [vmem:[%s9521_s1 + $0x14] ss:$8 sps:$4 sm:$0xff]  }
 0x190   : > { %2003 = vmatprep.mubr.bf16.mxu0 %v9532_v2  ;;  %6744 = vmatprep.subr.bf16.mxu1 %v7790_v31  ;;  %v7589_v31 = vld [vmem:[%s7923_s20 + $0x78] sm:$0xff]  }
 0x197   : > { %2004 = vmatmul.mubr.bf16.gmra.mrb[84].mxu0 %v7489_v32  ;;  %v7520_v32 = vld [vmem:[%s7923_s20 + $0x60] sm:$0xff]  }
 0x198   : > { %2013 = vmatprep.mubr.bf16.mxu0 %v9532_v2 }
 0x19f   : > { %2014 = vmatmul.mubr.bf16.gmra.mrb[88].mxu0 %v7493_v33  ;;  %v7791_v33 = vld [vmem:[%s9521_s1 + $0x10] ss:$8 sps:$4 sm:$0xff]  }
 0x1a0   : > { %2023 = vmatprep.mubr.bf16.mxu0 %v9532_v2  ;;  %6752 = vmatpush1.bf16.msra.mxu1 %v7791_v33 }
 0x1a7   : > { %2024 = vmatmul.mubr.bf16.gmra.mrb[92].mxu0 %v7494_v34  ;;  %v7792_v34 = vld [vmem:[%s9521_s1 + $0x24] ss:$8 sps:$4 sm:$0xff]  }
 0x1a8   : > { %2033 = vmatprep.mubr.bf16.mxu0 %v9532_v2  ;;  %6745 = vmatprep.subr.bf16.mxu1 %v7792_v34  ;;  %v7613_v34 = vld [vmem:[%s9523_s3 + $0x84] ss:$8 sps:$4 sm:$0xff]  }
 0x1af   : > { %2034 = vmatmul.mubr.bf16.gmra.mrb[96].mxu0 %v7495_v35  ;;  %v7793_v35 = vld [vmem:[%s7923_s20 + $0x10] sm:$0xff]  }
 0x1b0   : > { %2043 = vmatprep.mubr.bf16.mxu0 %v9532_v2  ;;  %771 = vmatmul.mubr.bf16.gmra.mrb[4].mxu1 %v7793_v35 }
 0x1b1   : > { %780 = vmatprep.mubr.bf16.mxu1 %v9532_v2 }
 0x1b7   : > { %2044 = vmatmul.mubr.bf16.gmra.mrb[100].mxu0 %v7499_v36  ;;  %v7794_v36 = vld [vmem:[%s9521_s1 + $0x20] ss:$8 sps:$4 sm:$0xff]  }
 0x1b8   : > { %2053 = vmatprep.mubr.bf16.mxu0 %v9532_v2  ;;  %6753 = vmatpush1.bf16.msra.mxu1 %v7794_v36  ;;  %v7611_v36 = vld [vmem:[%s9523_s3 + $0x80] ss:$8 sps:$4 sm:$0xff]  }
 0x1bf   : > { %2054 = vmatmul.mubr.bf16.gmra.mrb[104].mxu0 %v7500_v37  ;;  %v7795_v37 = vld [vmem:[%s9521_s1 + $0x34] ss:$8 sps:$4 sm:$0xff]  }
 0x1c0   : > { %2063 = vmatprep.mubr.bf16.mxu0 %v9532_v2  ;;  %6746 = vmatprep.subr.bf16.mxu1 %v7795_v37 }
 0x1c7   : > { %2064 = vmatmul.mubr.bf16.gmra.mrb[108].mxu0 %v7501_v38  ;;  %v7521_v38 = vld [vmem:[%s7923_s20 + $0x68] sm:$0xff]  }
 0x1c8   : > { %2539 = vmatprep.mubr.bf16.mxu0 %v9532_v2 }
 0x1cf   : > { %2540 = vmatmul.mubr.bf16.vlgmr.msra.gmra.mrb[0].mxu0 %v7502_v39  ;;  %v7796_v39 = vld [vmem:[%s9521_s1 + $0x30] ss:$8 sps:$4 sm:$0xff]  }
 0x1d0   : > { %3254 = vmatpush1.bf16.msra.mxu0 %v7503_v40  ;;  %2549 = vmatprep.mubr.bf16.mxu0 %v9532_v2  ;;  %v7797_v40 = vld [vmem:[%s9521_s1 + $0x44] ss:$8 sps:$4 sm:$0xff]  }
 0x1d1   : > { %3255 = vmatprep.subr.bf16.mxu0 %v7511_v41  ;;  %6754 = vmatpush1.bf16.msra.mxu1 %v7796_v39  ;;  %v7798_v41 = vld [vmem:[%s7923_s20 + $0x18] sm:$0xff]  }
 0x1d2   : > { %6747 = vmatprep.subr.bf16.mxu1 %v7797_v40  ;;  %781 = vmatmul.mubr.bf16.gmra.mrb[8].mxu1 %v7798_v41  ;;  %v7616_v39 = vld [vmem:[%s9523_s3 + $0x94] ss:$8 sps:$4 sm:$0xff]   ;;  %v7614_v40 = vld [vmem:[%s9523_s3 + $0x90] ss:$8 sps:$4 sm:$0xff]  }
 0x1d3   : > { %790 = vmatprep.mubr.bf16.mxu1 %v9532_v2 }
 0x1d4   : > { %3256 = vmatpush1.bf16.msra.mxu0 %v7509_v42  ;;  %v7799_v42 = vld [vmem:[%s9521_s1 + $0x40] ss:$8 sps:$4 sm:$0xff]  }
 0x1d5   : > { %3257 = vmatprep.subr.bf16.mxu0 %v7518_v43  ;;  %6755 = vmatpush1.bf16.msra.mxu1 %v7799_v42  ;;  %v7800_v43 = vld [vmem:[%s9521_s1 + $0x54] ss:$8 sps:$4 sm:$0xff]  }
 0x1d6   : > { %6748 = vmatprep.subr.bf16.mxu1 %v7800_v43  ;;  %v7619_v43 = vld [vmem:[%s9523_s3 + $0xa4] ss:$8 sps:$4 sm:$0xff]  }
 0x1d7   : > { %2550 = vmatmul.mubr.bf16.gmra.mrb[4].mxu0 %v7506_v44  ;;  %v7525_v44 = vld [vmem:[%s7923_s20 + $0x70] sm:$0xff]  }
 0x1d8   : > { %2559 = vmatprep.mubr.bf16.mxu0 %v9532_v2  ;;  %3258 = vmatpush1.bf16.msra.mxu0 %v7516_v45  ;;  %v7801_v45 = vld [vmem:[%s9521_s1 + $0x50] ss:$8 sps:$4 sm:$0xff]  }
 0x1d9   : > { %3259 = vmatprep.subr.bf16.mxu0 %v7524_v58  ;;  %6756 = vmatpush1.bf16.msra.mxu1 %v7801_v45  ;;  %v7802_v58 = vld [vmem:[%s9521_s1 + $0x64] ss:$8 sps:$4 sm:$0xff]   ;;  %v7617_v45 = vld [vmem:[%s9523_s3 + $0xa0] ss:$8 sps:$4 sm:$0xff]  }
 0x1da   : > { %6749 = vmatprep.subr.bf16.mxu1 %v7802_v58 }
 0x1dc   : > { %3260 = vmatpush1.bf16.msra.mxu0 %v7522_v59  ;;  %v7803_v59 = vld [vmem:[%s7923_s20 + $0x20] sm:$0xff]  }
 0x1dd   : > { %3261 = vmatprep.subr.bf16.mxu0 %v7531_v60  ;;  %791 = vmatmul.mubr.bf16.gmra.mrb[12].mxu1 %v7803_v59  ;;  %v7804_v60 = vld [vmem:[%s9521_s1 + $0x60] ss:$8 sps:$4 sm:$0xff]  }
 0x1de   : > { %800 = vmatprep.mubr.bf16.mxu1 %v9532_v2  ;;  %6757 = vmatpush1.bf16.msra.mxu1 %v7804_v60  ;;  %v7591_v59 = vld [vmem:[%s7923_s20 + $0x88] sm:$0xff]   ;;  %v7622_v60 = vld [vmem:[%s9523_s3 + $0xb4] ss:$8 sps:$4 sm:$0xff]  }
 0x1df   : > { %2560 = vmatmul.mubr.bf16.gmra.mrb[8].mxu0 %v7507_v61  ;;  %v7805_v61 = vld [vmem:[%s9521_s1 + $0x74] ss:$8 sps:$4 sm:$0xff]  }
 0x1e0   : > { %2569 = vmatprep.mubr.bf16.mxu0 %v9532_v2  ;;  %3262 = vmatpush1.bf16.msra.mxu0 %v7529_v62  ;;  %v7526_v62 = vld [vmem:[%s7923_s20 + $0x78] sm:$0xff]  }
 0x1e1   : > { %3263 = vmatprep.subr.bf16.mxu0 %v7537_v63  ;;  %6750 = vmatprep.subr.bf16.mxu1 %v7805_v61  ;;  %v7806_v63 = vld [vmem:[%s9521_s1 + $0x70] ss:$8 sps:$4 sm:$0xff]  }
 0x1e2   : > { %6758 = vmatpush1.bf16.msra.mxu1 %v7806_v63  ;;  %v7620_v61 = vld [vmem:[%s9523_s3 + $0xb0] ss:$8 sps:$4 sm:$0xff]  }
 0x1e3   : > { %3952 = vmatprep.subr.bf16.mxu1 %v7613_v34 }
 0x1e4   : > { %3264 = vmatpush1.bf16.msra.mxu0 %v7535_v0  ;;  %v7807_v0 = vld [vmem:[%s7923_s20 + $0x28] sm:$0xff]  }
 0x1e5   : > { %3265 = vmatprep.subr.bf16.mxu0 %v7552_v12  ;;  %801 = vmatmul.mubr.bf16.gmra.mrb[16].mxu1 %v7807_v0  ;;  %v7538_v12 = vld [vmem:[%s7923_s20 + $0xa8] sm:$0xff]  }
 0x1e6   : > { %810 = vmatprep.mubr.bf16.mxu1 %v9532_v2  ;;  %v7625_v0 = vld [vmem:[%s9523_s3 + $0xc4] ss:$8 sps:$4 sm:$0xff]  }
 0x1e7   : > { %2570 = vmatmul.mubr.bf16.gmra.mrb[12].mxu0 %v7508_v1  ;;  %v7527_v1 = vld [vmem:[%s7923_s20 + $0x80] sm:$0xff]  }
 0x1e8   : > { %2579 = vmatprep.mubr.bf16.mxu0 %v9532_v2  ;;  %3266 = vmatpush1.bf16.msra.mxu0 %v7550_v11  ;;  %v7812_v11 = vld [vmem:[%s7923_s20 + $0x50] sm:$0xff]  }
 0x1e9   : > { %3267 = vmatprep.subr.bf16.mxu0 %v7574_v29 }
 0x1ec   : > { %3268 = vmatpush1.bf16.msra.mxu0 %v7572_v28 }
 0x1ed   : > { %811 = vmatmul.mubr.bf16.gmra.mrb[20].mxu1 %v7808_v3  ;;  %v7623_v3 = vld [vmem:[%s9523_s3 + $0xc0] ss:$8 sps:$4 sm:$0xff]  }
 0x1ee   : > { %820 = vmatprep.mubr.bf16.mxu1 %v9532_v2 }
 0x1ef   : > { %2580 = vmatmul.mubr.bf16.gmra.mrb[16].mxu0 %v7512_v4  ;;  %v7528_v4 = vld [vmem:[%s7923_s20 + $0x88] sm:$0xff]  }
 0x1f0   : > { %2589 = vmatprep.mubr.bf16.mxu0 %v9532_v2 }
 0x1f5   : > { %821 = vmatmul.mubr.bf16.gmra.mrb[24].mxu1 %v7809_v5  ;;  %v7592_v5 = vld [vmem:[%s7923_s20 + $0x90] sm:$0xff]  }
 0x1f6   : > { %830 = vmatprep.mubr.bf16.mxu1 %v9532_v2 }
 0x1f7   : > { %2590 = vmatmul.mubr.bf16.gmra.mrb[20].mxu0 %v7513_v9  ;;  %v7811_v9 = vld [vmem:[%s7923_s20 + $0x48] sm:$0xff]  }
 0x1f8   : > { %2599 = vmatprep.mubr.bf16.mxu0 %v9532_v2 }
 0x1fd   : > { %831 = vmatmul.mubr.bf16.gmra.mrb[28].mxu1 %v7810_v7  ;;  %v7626_v7 = vld [vmem:[%s9523_s3 + $0xd0] ss:$8 sps:$4 sm:$0xff]  }
 0x1fe   : > { %840 = vmatprep.mubr.bf16.mxu1 %v9532_v2 }
 0x1ff   : > { %2600 = vmatmul.mubr.bf16.gmra.mrb[24].mxu0 %v7514_v16  ;;  %v7549_v16 = vld [vmem:[%s7923_s20 + $0xc0] sm:$0xff]  }
 0x200   : > { %2609 = vmatprep.mubr.bf16.mxu0 %v9532_v2 }
 0x205   : > { %841 = vmatmul.mubr.bf16.gmra.mrb[32].mxu1 %v7811_v9 }
 0x206   : > { %850 = vmatprep.mubr.bf16.mxu1 %v9532_v2 }
 0x207   : > { %2610 = vmatmul.mubr.bf16.gmra.mrb[28].mxu0 %v7515_v21  ;;  %v7603_v21 = vld [vmem:[%s7923_s20 + $0xd8] sm:$0xff]  }
 0x208   : > { %2619 = vmatprep.mubr.bf16.mxu0 %v9532_v2 }
 0x20d   : > { %851 = vmatmul.mubr.bf16.gmra.mrb[36].mxu1 %v7812_v11 }
 0x20e   : > { %860 = vmatprep.mubr.bf16.mxu1 %v9532_v2 }
 0x20f   : > { %2620 = vmatmul.mubr.bf16.gmra.mrb[32].mxu0 %v7519_v25  ;;  %v7587_v25 = vld [vmem:[%s7923_s20 + $0x68] sm:$0xff]  }
 0x210   : > { %2629 = vmatprep.mubr.bf16.mxu0 %v9532_v2 }
 0x215   : > { %861 = vmatmul.mubr.bf16.gmra.mrb[40].mxu1 %v7813_v13 }
 0x216   : > { %870 = vmatprep.mubr.bf16.mxu1 %v9532_v2 }
 0x217   : > { %2630 = vmatmul.mubr.bf16.gmra.mrb[36].mxu0 %v7520_v32 }
 0x218   : > { %2639 = vmatprep.mubr.bf16.mxu0 %v9532_v2 }
 0x21d   : > { %871 = vmatmul.mubr.bf16.gmra.mrb[44].mxu1 %v8028_v46  ;;  %v7559_v46 = vld [vmem:[%s7923_s20 + $0xc8] sm:$0xff]  }
 0x21e   : > { %880 = vmatprep.mubr.bf16.mxu1 %v9532_v2 }
 0x21f   : > { %2640 = vmatmul.mubr.bf16.gmra.mrb[40].mxu0 %v7521_v38  ;;  %v7590_v38 = vld [vmem:[%s7923_s20 + $0x80] sm:$0xff]  }
 0x220   : > { %2649 = vmatprep.mubr.bf16.mxu0 %v9532_v2 }
 0x225   : > { %881 = vmatmul.mubr.bf16.gmra.mrb[48].mxu1 %v8033_v47  ;;  %v7566_v47 = vld [vmem:[%s7923_s20 + $0xd0] sm:$0xff]  }
 0x226   : > { %890 = vmatprep.mubr.bf16.mxu1 %v9532_v2 }
 0x227   : > { %2650 = vmatmul.mubr.bf16.gmra.mrb[44].mxu0 %v7525_v44 }
 0x228   : > { %2659 = vmatprep.mubr.bf16.mxu0 %v9532_v2 }
 0x22d   : > { %891 = vmatmul.mubr.bf16.gmra.mrb[52].mxu1 %v8038_v48  ;;  %v7571_v48 = vld [vmem:[%s7923_s20 + $0xd8] sm:$0xff]  }
 0x22e   : > { %900 = vmatprep.mubr.bf16.mxu1 %v9532_v2 }
 0x22f   : > { %2660 = vmatmul.mubr.bf16.gmra.mrb[48].mxu0 %v7526_v62 }
 0x230   : > { %2669 = vmatprep.mubr.bf16.mxu0 %v9532_v2 }
 0x235   : > { %901 = vmatmul.mubr.bf16.gmra.mrb[56].mxu1 %v8043_v49  ;;  %v7575_v49 = vld [vmem:[%s7923_s20 + $0xe0] sm:$0xff]  }
 0x236   : > { %910 = vmatprep.mubr.bf16.mxu1 %v9532_v2 }
 0x237   : > { %2670 = vmatmul.mubr.bf16.gmra.mrb[52].mxu0 %v7527_v1 }
 0x238   : > { %2679 = vmatprep.mubr.bf16.mxu0 %v9532_v2 }
 0x23d   : > { %911 = vmatmul.mubr.bf16.gmra.mrb[60].mxu1 %v8048_v50  ;;  %v7576_v50 = vld [vmem:[%s7923_s20 + $0xe8] sm:$0xff]  }
 0x23e   : > { %920 = vmatprep.mubr.bf16.mxu1 %v9532_v2 }
 0x23f   : > { %2680 = vmatmul.mubr.bf16.gmra.mrb[56].mxu0 %v7528_v4 }
 0x240   : > { %2689 = vmatprep.mubr.bf16.mxu0 %v9532_v2 }
 0x243   : > { %v8467_v27 = vpop.f32.mrb[0].mxu1 }
 0x244   : > { %v8470_v28 = vpop.f32.mrb[1].mxu1 }
 0x245   : > { %921 = vmatmul.mubr.bf16.gmra.mrb[64].mxu1 %v8053_v51  ;;  %v7577_v51 = vld [vmem:[%s7923_s20 + $0xf0] sm:$0xff]   ;;  %v8473_v29 = vpop.f32.mrb[2].mxu1 }
 0x246   : > { %930 = vmatprep.mubr.bf16.mxu1 %v9532_v2  ;;  %v8475_v30 = vpop.f32.mrb[3].mxu1 }
 0x247   : > { %2690 = vmatmul.mubr.bf16.gmra.mrb[60].mxu0 %v7532_v6  ;;  %v7628_v6 = vld [vmem:[%s9523_s3 + $0xd4] ss:$8 sps:$4 sm:$0xff]  }
 0x248   : > { %2699 = vmatprep.mubr.bf16.mxu0 %v9532_v2 }
 0x24d   : > { %931 = vmatmul.mubr.bf16.gmra.mrb[68].mxu1 %v8058_v52  ;;  %v7578_v52 = vld [vmem:[%s7923_s20 + $0x20] sm:$0xff]  }
 0x24e   : > { %940 = vmatprep.mubr.bf16.mxu1 %v9532_v2 }
 0x24f   : > { %2700 = vmatmul.mubr.bf16.gmra.mrb[64].mxu0 %v7533_v8 }
 0x250   : > { %2709 = vmatprep.mubr.bf16.mxu0 %v9532_v2 }
 0x255   : > { %941 = vmatmul.mubr.bf16.gmra.mrb[72].mxu1 %v8063_v53  ;;  %v7579_v53 = vld [vmem:[%s7923_s20 + $0x28] sm:$0xff]  }
 0x256   : > { %950 = vmatprep.mubr.bf16.mxu1 %v9532_v2 }
 0x257   : > { %2710 = vmatmul.mubr.bf16.gmra.mrb[68].mxu0 %v7534_v10  ;;  %v7631_v10 = vld [vmem:[%s9523_s3 + $0xe4] ss:$8 sps:$4 sm:$0xff]  }
 0x258   : > { %2719 = vmatprep.mubr.bf16.mxu0 %v9532_v2 }
 0x25d   : > { %951 = vmatmul.mubr.bf16.gmra.mrb[76].mxu1 %v8068_v54  ;;  %v7580_v54 = vld [vmem:[%s7923_s20 + $0x30] sm:$0xff]  }
 0x25e   : > { %960 = vmatprep.mubr.bf16.mxu1 %v9532_v2 }
 0x25f   : > { %2720 = vmatmul.mubr.bf16.gmra.mrb[72].mxu0 %v7538_v12  ;;  %v7629_v12 = vld [vmem:[%s9523_s3 + $0xe0] ss:$8 sps:$4 sm:$0xff]  }
 0x260   : > { %2729 = vmatprep.mubr.bf16.mxu0 %v9532_v2 }
 0x265   : > { %961 = vmatmul.mubr.bf16.gmra.mrb[80].mxu1 %v8073_v55  ;;  %v7581_v55 = vld [vmem:[%s7923_s20 + $0x38] sm:$0xff]  }
 0x266   : > { %970 = vmatprep.mubr.bf16.mxu1 %v9532_v2 }
 0x267   : > { %2730 = vmatmul.mubr.bf16.gmra.mrb[76].mxu0 %v7539_v14  ;;  %v7593_v14 = vld [vmem:[%s7923_s20 + $0x98] sm:$0xff]  }
 0x268   : > { %2739 = vmatprep.mubr.bf16.mxu0 %v9532_v2 }
 0x26d   : > { %971 = vmatmul.mubr.bf16.gmra.mrb[84].mxu1 %v8078_v56  ;;  %v7582_v56 = vld [vmem:[%s7923_s20 + $0x40] sm:$0xff]  }
 0x26e   : > { %980 = vmatprep.mubr.bf16.mxu1 %v9532_v2 }
 0x26f   : > { %2740 = vmatmul.mubr.bf16.gmra.mrb[80].mxu0 %v7542_v15  ;;  %v7634_v15 = vld [vmem:[%s9523_s3 + $0xf4] ss:$8 sps:$4 sm:$0xff]  }
 0x270   : > { %2749 = vmatprep.mubr.bf16.mxu0 %v9532_v2 }
 0x275   : > { %981 = vmatmul.mubr.bf16.gmra.mrb[88].mxu1 %v8083_v57  ;;  %v7583_v57 = vld [vmem:[%s7923_s20 + $0x48] sm:$0xff]  }
 0x276   : > { %990 = vmatprep.mubr.bf16.mxu1 %v9532_v2 }
 0x277   : > { %2750 = vmatmul.mubr.bf16.gmra.mrb[84].mxu0 %v7549_v16  ;;  %v7632_v16 = vld [vmem:[%s9523_s3 + $0xf0] ss:$8 sps:$4 sm:$0xff]  }
 0x278   : > { %2759 = vmatprep.mubr.bf16.mxu0 %v9532_v2 }
 0x27d   : > { %991 = vmatmul.mubr.bf16.gmra.mrb[92].mxu1 %v7597_v17 }
 0x27e   : > { %1000 = vmatprep.mubr.bf16.mxu1 %v9532_v2 }
 0x27f   : > { %2760 = vmatmul.mubr.bf16.gmra.mrb[88].mxu0 %v7559_v46 }
 0x280   : > { %2769 = vmatprep.mubr.bf16.mxu0 %v9532_v2 }
 0x283   : > { %v8478_v32 = vpop.f32.mrb[4].mxu1 }
 0x284   : > { %v8481_v33 = vpop.f32.mrb[5].mxu1 }
 0x285   : > { %1001 = vmatmul.mubr.bf16.gmra.mrb[96].mxu1 %v7599_v18  ;;  %v8487_v35 = vpop.f32.mrb[6].mxu1 }
 0x286   : > { %1010 = vmatprep.mubr.bf16.mxu1 %v9532_v2  ;;  %v8492_v37 = vpop.f32.mrb[7].mxu1 }
 0x287   : > { %2770 = vmatmul.mubr.bf16.gmra.mrb[92].mxu0 %v7566_v47 }
 0x288   : > { %2779 = vmatprep.mubr.bf16.mxu0 %v9532_v2 }
 0x28d   : > { %1011 = vmatmul.mubr.bf16.gmra.mrb[100].mxu1 %v7601_v19 }
 0x28e   : > { %1020 = vmatprep.mubr.bf16.mxu1 %v9532_v2 }
 0x28f   : > { %2780 = vmatmul.mubr.bf16.gmra.mrb[96].mxu0 %v7571_v48 }
 0x290   : > { %2789 = vmatprep.mubr.bf16.mxu0 %v9532_v2 }
 0x295   : > { %1021 = vmatmul.mubr.bf16.gmra.mrb[104].mxu1 %v7603_v21 }
 0x296   : > { %1030 = vmatprep.mubr.bf16.mxu1 %v9532_v2 }
 0x297   : > { %2790 = vmatmul.mubr.bf16.gmra.mrb[100].mxu0 %v7575_v49 }
 0x298   : > { %2799 = vmatprep.mubr.bf16.mxu0 %v9532_v2 }
 0x29d   : > { %1031 = vmatmul.mubr.bf16.gmra.mrb[108].mxu1 %v7605_v23 }
 0x29e   : > { %1399 = vmatprep.mubr.bf16.mxu1 %v9532_v2 }
 0x29f   : > { %2800 = vmatmul.mubr.bf16.gmra.mrb[104].mxu0 %v7576_v50  ;;  %v7594_v50 = vld [vmem:[%s7923_s20 + $0xa0] sm:$0xff]  }
 0x2a0   : > { %2809 = vmatprep.mubr.bf16.mxu0 %v9532_v2 }
 0x2a5   : > { %1400 = vmatmul.mubr.bf16.vlgmr.msra.gmra.mrb[96].mxu1 %v7597_v17  ;;  %v8501_v41 = vpop.f32.mrb[8].mxu1 }
 0x2a6   : > { %1409 = vmatprep.mubr.bf16.mxu1 %v9532_v2  ;;  %3953 = vmatpush1.bf16.msra.mxu1 %v7611_v36  ;;  %v8504_v42 = vpop.f32.mrb[9].mxu1  ;;  %v7600_v36 = vld [vmem:[%s7923_s20 + $0xc0] sm:$0xff]  }
 0x2a7   : > { %2810 = vmatmul.mubr.bf16.gmra.mrb[108].mxu0 %v7577_v51  ;;  %3954 = vmatprep.subr.bf16.mxu1 %v7616_v39  ;;  %v8509_v44 = vpop.f32.mrb[10].mxu1 }
 0x2a8   : > { %3285 = vmatprep.mubr.bf16.mxu0 %v9532_v2  ;;  %v8514_v58 = vpop.f32.mrb[11].mxu1 }
 0x2aa   : > { %3955 = vmatpush1.bf16.msra.mxu1 %v7614_v40 }
 0x2ab   : > { %3956 = vmatprep.subr.bf16.mxu1 %v7619_v43 }
 0x2ad   : > { %1410 = vmatmul.mubr.bf16.gmra.mrb[100].mxu1 %v7599_v18 }
 0x2ae   : > { %1419 = vmatprep.mubr.bf16.mxu1 %v9532_v2  ;;  %3957 = vmatpush1.bf16.msra.mxu1 %v7617_v45  ;;  %v7602_v45 = vld [vmem:[%s7923_s20 + $0xc8] sm:$0xff]  }
 0x2af   : > { %3286 = vmatmul.mubr.bf16.vlgmr.msra.gmra.mrb[0].mxu0 %v7578_v52  ;;  %3958 = vmatprep.subr.bf16.mxu1 %v7622_v60 }
 0x2b0   : > { %3295 = vmatprep.mubr.bf16.mxu0 %v9532_v2  ;;  %v8523_v62 = vpop.f32.mrb[12].mxu1 }
 0x2b1   : > { %v8526_v63 = vpop.f32.mrb[13].mxu1 }
 0x2b2   : > { %3959 = vmatpush1.bf16.msra.mxu1 %v7620_v61  ;;  %v8531_v1 = vpop.f32.mrb[14].mxu1 }
 0x2b3   : > { %3960 = vmatprep.subr.bf16.mxu1 %v7625_v0  ;;  %v8536_v4 = vpop.f32.mrb[15].mxu1 }
 0x2b5   : > { %1420 = vmatmul.mubr.bf16.gmra.mrb[104].mxu1 %v7601_v19  ;;  %v7596_v19 = vld [vmem:[%s7923_s20 + $0xb0] sm:$0xff]  }
 0x2b6   : > { %1429 = vmatprep.mubr.bf16.mxu1 %v9532_v2  ;;  %3961 = vmatpush1.bf16.msra.mxu1 %v7623_v3  ;;  %v7604_v3 = vld [vmem:[%s7923_s20 + $0xd0] sm:$0xff]  }
 0x2b7   : > { %3296 = vmatmul.mubr.bf16.gmra.mrb[4].mxu0 %v7579_v53  ;;  %3962 = vmatprep.subr.bf16.mxu1 %v7628_v6 }
 0x2b8   : > { %3305 = vmatprep.mubr.bf16.mxu0 %v9532_v2  ;;  %v8545_v8 = vpop.f32.mrb[16].mxu1 }
 0x2b9   : > { %v8548_v9 = vpop.f32.mrb[17].mxu1 }
 0x2ba   : > { %3963 = vmatpush1.bf16.msra.mxu1 %v7626_v7  ;;  %v8553_v11 = vpop.f32.mrb[18].mxu1 }
 0x2bb   : > { %3964 = vmatprep.subr.bf16.mxu1 %v7631_v10  ;;  %v8558_v13 = vpop.f32.mrb[19].mxu1 }
 0x2bd   : > { %1430 = vmatmul.mubr.bf16.gmra.mrb[108].mxu1 %v7603_v21 }
 0x2be   : > { %3984 = vmatprep.mubr.bf16.mxu1 %v9532_v2  ;;  %3965 = vmatpush1.bf16.msra.mxu1 %v7629_v12  ;;  %v7606_v12 = vld [vmem:[%s7923_s20 + $0xd8] sm:$0xff]  }
 0x2bf   : > { %3306 = vmatmul.mubr.bf16.gmra.mrb[8].mxu0 %v7580_v54  ;;  %3966 = vmatprep.subr.bf16.mxu1 %v7634_v15 }
 0x2c0   : > { %3315 = vmatprep.mubr.bf16.mxu0 %v9532_v2  ;;  %v8567_v46 = vpop.f32.mrb[20].mxu1 }
 0x2c1   : > { %v8570_v47 = vpop.f32.mrb[21].mxu1 }
 0x2c2   : > { %3967 = vmatpush1.bf16.msra.mxu1 %v7632_v16  ;;  %v8572_v48 = vpop.f32.mrb[22].mxu1 }
 0x2c3   : > { %v8574_v49 = vpop.f32.mrb[23].mxu1 }
 0x2c7   : > { %3316 = vmatmul.mubr.bf16.gmra.mrb[12].mxu0 %v7581_v55  ;;  %v7595_v55 = vld [vmem:[%s7923_s20 + $0xa8] sm:$0xff]  }
 0x2c8   : > { %3325 = vmatprep.mubr.bf16.mxu0 %v9532_v2  ;;  %v8577_v51 = vpop.f32.mrb[24].mxu1 }
 0x2c9   : > { %v8580_v52 = vpop.f32.mrb[25].mxu1 }
 0x2ca   : > { %v8582_v53 = vpop.f32.mrb[26].mxu1 }
 0x2cb   : > { %v8584_v54 = vpop.f32.mrb[27].mxu1 }
 0x2cf   : > { %3326 = vmatmul.mubr.bf16.gmra.mrb[16].mxu0 %v7582_v56 }
 0x2d0   : > { %3335 = vmatprep.mubr.bf16.mxu0 %v9532_v2  ;;  %v8587_v17 = vpop.f32.mrb[28].mxu1 }
 0x2d1   : > { %v8589_v56 = vpop.f32.mrb[29].mxu1 }
 0x2d2   : > { %v8592_v18 = vpop.f32.mrb[30].mxu1 }
 0x2d7   : > { %3336 = vmatmul.mubr.bf16.gmra.mrb[20].mxu0 %v7583_v57  ;;  %v8594_v57 = vpop.f32.mrb[31].mxu1 }
 0x2d8   : > { %3345 = vmatprep.mubr.bf16.mxu0 %v9532_v2 }
 0x2df   : > { %3346 = vmatmul.mubr.bf16.gmra.mrb[24].mxu0 %v7584_v20  ;;  %v8597_v20 = vpop.f32.mrb[32].mxu1 }
 0x2e0   : > { %3355 = vmatprep.mubr.bf16.mxu0 %v9532_v2  ;;  %v8600_v21 = vpop.f32.mrb[33].mxu1 }
 0x2e7   : > { %3356 = vmatmul.mubr.bf16.gmra.mrb[28].mxu0 %v7585_v22  ;;  %v8602_v22 = vpop.f32.mrb[34].mxu1 }
 0x2e8   : > { %3365 = vmatprep.mubr.bf16.mxu0 %v9532_v2  ;;  %v8604_v23 = vpop.f32.mrb[35].mxu1 }
 0x2ef   : > { %3366 = vmatmul.mubr.bf16.gmra.mrb[32].mxu0 %v7586_v24  ;;  %v7598_v24 = vld [vmem:[%s7923_s20 + $0xb8] sm:$0xff]  }
 0x2f0   : > { %3375 = vmatprep.mubr.bf16.mxu0 %v9532_v2 }
 0x2f7   : > { %3376 = vmatmul.mubr.bf16.gmra.mrb[36].mxu0 %v7587_v25  ;;  %v8607_v25 = vpop.f32.mrb[36].mxu1 }
 0x2f8   : > { %3385 = vmatprep.mubr.bf16.mxu0 %v9532_v2 }
 0x2ff   : > { %3386 = vmatmul.mubr.bf16.gmra.mrb[40].mxu0 %v7588_v26  ;;  %v8609_v26 = vpop.f32.mrb[37].mxu1 }
 0x300   : > { %3395 = vmatprep.mubr.bf16.mxu0 %v9532_v2 }
 0x307   : > { %3396 = vmatmul.mubr.bf16.gmra.mrb[44].mxu0 %v7589_v31  ;;  %v8612_v31 = vpop.f32.mrb[38].mxu1 }
 0x308   : > { %3405 = vmatprep.mubr.bf16.mxu0 %v9532_v2  ;;  %v8614_v34 = vpop.f32.mrb[39].mxu1 }
 0x30f   : > { %3406 = vmatmul.mubr.bf16.gmra.mrb[48].mxu0 %v7590_v38  ;;  %v8617_v38 = vpop.f32.mrb[40].mxu1 }
 0x310   : > { %3415 = vmatprep.mubr.bf16.mxu0 %v9532_v2  ;;  %v8620_v39 = vpop.f32.mrb[41].mxu1 }
 0x311   : > { %v8622_v40 = vpop.f32.mrb[42].mxu1 }
 0x312   : > { %v8624_v43 = vpop.f32.mrb[43].mxu1 }
 0x317   : > { %3416 = vmatmul.mubr.bf16.gmra.mrb[52].mxu0 %v7591_v59  ;;  %v8627_v59 = vpop.f32.mrb[44].mxu1 }
 0x318   : > { %3425 = vmatprep.mubr.bf16.mxu0 %v9532_v2  ;;  %v8630_v60 = vpop.f32.mrb[45].mxu1 }
 0x319   : > { %v8632_v61 = vpop.f32.mrb[46].mxu1 }
 0x31a   : > { %v8634_v0 = vpop.f32.mrb[47].mxu1 }
 0x31f   : > { %3426 = vmatmul.mubr.bf16.gmra.mrb[56].mxu0 %v7592_v5  ;;  %v8637_v5 = vpop.f32.mrb[48].mxu1 }
 0x320   : > { %3435 = vmatprep.mubr.bf16.mxu0 %v9532_v2  ;;  %v8640_v6 = vpop.f32.mrb[49].mxu1 }
 0x321   : > { %v8642_v7 = vpop.f32.mrb[50].mxu1 }
 0x322   : > { %9544 = vst [vmem:[#allocation2_spill] sm:$0xff] %v8642_v7  ;;  %v8644_v10 = vpop.f32.mrb[51].mxu1 }
 0x323   : > { %9545 = vst [vmem:[#allocation3_spill] sm:$0xff] %v8644_v10 }
 0x327   : > { %3436 = vmatmul.mubr.bf16.gmra.mrb[60].mxu0 %v7593_v14  ;;  %v8647_v14 = vpop.f32.mrb[52].mxu1 }
 0x328   : > { %3445 = vmatprep.mubr.bf16.mxu0 %v9532_v2  ;;  %9546 = vst [vmem:[#allocation4_spill] sm:$0xff] %v8647_v14  ;;  %v8650_v15 = vpop.f32.mrb[53].mxu1 }
 0x329   : > { %9547 = vst [vmem:[#allocation5_spill] sm:$0xff] %v8650_v15  ;;  %v8652_v16 = vpop.f32.mrb[54].mxu1 }
 0x32a   : > { %9548 = vst [vmem:[#allocation6_spill] sm:$0xff] %v8652_v16 }
 0x32f   : > { %3446 = vmatmul.mubr.bf16.gmra.mrb[64].mxu0 %v7594_v50  ;;  %v8654_v50 = vpop.f32.mrb[55].mxu1 }
 0x330   : > { %3455 = vmatprep.mubr.bf16.mxu0 %v9532_v2  ;;  %9549 = vst [vmem:[#allocation7_spill] sm:$0xff] %v8654_v50 }
 0x337   : > { %3456 = vmatmul.mubr.bf16.gmra.mrb[68].mxu0 %v7595_v55  ;;  %v7607_v55 = vld [vmem:[%s7923_s20 + $0xe0] sm:$0xff]  }
 0x338   : > { %3465 = vmatprep.mubr.bf16.mxu0 %v9532_v2 }
 0x33f   : > { %3466 = vmatmul.mubr.bf16.gmra.mrb[72].mxu0 %v7596_v19  ;;  %v8657_v19 = vpop.f32.mrb[56].mxu1 }
 0x340   : > { %3475 = vmatprep.mubr.bf16.mxu0 %v9532_v2  ;;  %9550 = vst [vmem:[#allocation8_spill] sm:$0xff] %v8657_v19 }
 0x347   : > { %3476 = vmatmul.mubr.bf16.gmra.mrb[76].mxu0 %v7598_v24  ;;  %v8660_v24 = vpop.f32.mrb[57].mxu1 }
 0x348   : > { %3485 = vmatprep.mubr.bf16.mxu0 %v9532_v2  ;;  %9551 = vst [vmem:[#allocation9_spill] sm:$0xff] %v8660_v24 }
 0x34f   : > { %3486 = vmatmul.mubr.bf16.gmra.mrb[80].mxu0 %v7600_v36  ;;  %v8662_v36 = vpop.f32.mrb[58].mxu1 }
 0x350   : > { %3495 = vmatprep.mubr.bf16.mxu0 %v9532_v2  ;;  %9552 = vst [vmem:[#allocation10_spill] sm:$0xff] %v8662_v36  ;;  %v7609_v36 = vld [vmem:[%s7923_s20 + $0xf0] sm:$0xff]  }
 0x357   : > { %3496 = vmatmul.mubr.bf16.gmra.mrb[84].mxu0 %v7602_v45  ;;  %v8664_v45 = vpop.f32.mrb[59].mxu1 }
 0x358   : > { %3505 = vmatprep.mubr.bf16.mxu0 %v9532_v2  ;;  %9553 = vst [vmem:[#allocation11_spill] sm:$0xff] %v8664_v45 }
 0x35f   : > { %3506 = vmatmul.mubr.bf16.gmra.mrb[88].mxu0 %v7604_v3  ;;  %v7608_v3 = vld [vmem:[%s7923_s20 + $0xe8] sm:$0xff]  }
 0x360   : > { %3515 = vmatprep.mubr.bf16.mxu0 %v9532_v2 }
 0x367   : > { %3516 = vmatmul.mubr.bf16.gmra.mrb[92].mxu0 %v7606_v12  ;;  %v8667_v12 = vpop.f32.mrb[60].mxu1 }
 0x368   : > { %3525 = vmatprep.mubr.bf16.mxu0 %v9532_v2  ;;  %9554 = vst [vmem:[#allocation12_spill] sm:$0xff] %v8667_v12  ;;  %v8673_v19 = vpop.f32.mrb[61].mxu1 }
 0x369   : > { %9555 = vst [vmem:[#allocation13_spill] sm:$0xff] %v8673_v19  ;;  %v8675_v50 = vpop.f32.mrb[62].mxu1 }
 0x36a   : > { %9556 = vst [vmem:[#allocation14_spill] sm:$0xff] %v8675_v50  ;;  %v8677_v24 = vpop.f32.mrb[63].mxu1  ;;  %v7610_v50 = vld [vmem:[%s7923_s20 + $0xf8] sm:$0xff]  }
 0x36b   : > { %9557 = vst [vmem:[#allocation15_spill] sm:$0xff] %v8677_v24  ;;  %v8680_v45 = vpop.f32.mrb[64].mxu1 }
 0x36c   : > { %9558 = vst [vmem:[#allocation16_spill] sm:$0xff] %v8680_v45 }
 0x36f   : > { %3526 = vmatmul.mubr.bf16.gmra.mrb[96].mxu0 %v7607_v55  ;;  %v7637_v55 = vld [vmem:[%s9523_s3 + $0x4] ss:$8 sps:$4 sm:$0xff]  }
 0x370   : > { %3535 = vmatprep.mubr.bf16.mxu0 %v9532_v2  ;;  %4165 = vmatprep.subr.bf16.mxu1 %v7637_v55 }
 0x377   : > { %3536 = vmatmul.mubr.bf16.gmra.mrb[100].mxu0 %v7608_v3  ;;  %v8683_v3 = vpop.f32.mrb[65].mxu1 }
 0x378   : > { %3545 = vmatprep.mubr.bf16.mxu0 %v9532_v2  ;;  %9559 = vst [vmem:[#allocation17_spill] sm:$0xff] %v8683_v3  ;;  %v8685_v12 = vpop.f32.mrb[66].mxu1 }
 0x379   : > { %9560 = vst [vmem:[#allocation18_spill] sm:$0xff] %v8685_v12  ;;  %v8687_v15 = vpop.f32.mrb[67].mxu1 }
 0x37a   : > { %9561 = vst [vmem:[#allocation19_spill] sm:$0xff] %v8687_v15 }
 0x37f   : > { %3546 = vmatmul.mubr.bf16.gmra.mrb[104].mxu0 %v7609_v36 }
 0x380   : > { %3555 = vmatprep.mubr.bf16.mxu0 %v9532_v2  ;;  %v8694_v2 = vpop.f32.mrb[68].mxu1 }
 0x381   : > { %9562 = vst [vmem:[#allocation20_spill] sm:$0xff] %v8694_v2  ;;  %v8696_v3 = vpop.f32.mrb[69].mxu1 }
 0x382   : > { %v3287_v16 = vpop.f32.mrb[0].mxu0  ;;  %9563 = vst [vmem:[#allocation21_spill] sm:$0xff] %v8696_v3  ;;  %v8698_v12 = vpop.f32.mrb[70].mxu1 }
 0x383   : > { %v6759_v19 = vadd.f32 %v3287_v16, %v8467_v27  ;;  %v3289_v14 = vpop.f32.mrb[1].mxu0  ;;  %9564 = vst [vmem:[#allocation22_spill] sm:$0xff] %v8698_v12  ;;  %v8700_v7 = vpop.f32.mrb[71].mxu1  ;;  %v8709_v12 = vld [vmem:[%s9522_s2] ss:$0 sm:$0xff] }
 0x384   : > { %v6760_v55 = vadd.f32 %v3289_v14, %v8470_v28  ;;  %v3291_v24 = vpop.f32.mrb[2].mxu0  ;;  %9565 = vst [vmem:[#allocation23_spill] sm:$0xff] %v8700_v7  ;;  %v8711_v7 = vpop.f32.mrb[72].mxu1 }
 0x385   : > { %v6761_v36 = vadd.f32 %v3291_v24, %v8473_v29  ;;  %v3293_v10 = vpop.f32.mrb[3].mxu0  ;;  %v8713_v2 = vpop.f32.mrb[73].mxu1 }
 0x386   : > { %v6762_v45 = vadd.f32 %v3293_v10, %v8475_v30 }
 0x387   : > { %3556 = vmatmul.mubr.bf16.gmra.mrb[108].mxu0 %v7610_v50 }
 0x38a   : > { %v3297_v15 = vpop.f32.mrb[4].mxu0 }
 0x38b   : > { %v6763_v27 = vadd.f32 %v3297_v15, %v8478_v32  ;;  %v3299_v16 = vpop.f32.mrb[5].mxu0 }
 0x38c   : > { %v6764_v28 = vadd.f32 %v3299_v16, %v8481_v33  ;;  %v3301_v14 = vpop.f32.mrb[6].mxu0  ;;  %v8715_v33 = vpop.f32.mrb[74].mxu1 }
 0x38d   : > { %v3678_v29 = vmax.f32 %v6759_v19, %v6763_v27  ;;  %v6765_v24 = vadd.f32 %v3301_v14, %v8487_v35  ;;  %v3303_v30 = vpop.f32.mrb[7].mxu0  ;;  %v8718_v27 = vpop.f32.mrb[75].mxu1 }
 0x38e   : > { %v3679_v10 = vmax.f32 %v6760_v55, %v6764_v28  ;;  %v6766_v50 = vadd.f32 %v3303_v30, %v8492_v37 }
 0x38f   : > { %v3680_v3 = vmax.f32 %v6761_v36, %v6765_v24 }
 0x390   : > { %v3734_v32 = vmax.f32 %v3678_v29, %v3679_v10  ;;  %v3681_v15 = vmax.f32 %v6762_v45, %v6766_v50  ;;  %v8725_v50 = vpop.f32.mrb[76].mxu1 }
 0x392   : > { %v3769_v35 = vadd.f32 %v8709_v12, %v3734_v32  ;;  %v3735_v19 = vmax.f32 %v3680_v3, %v3681_v15  ;;  %v3307_v55 = vpop.f32.mrb[8].mxu0  ;;  %v8729_v32 = vpop.f32.mrb[77].mxu1 }
 0x393   : > { %v6767_v37 = vadd.f32 %v3307_v55, %v8501_v41  ;;  %v3309_v16 = vpop.f32.mrb[9].mxu0  ;;  %9567 = vst [vmem:[#allocation25_spill] sm:$0xff] %v8729_v32  ;;  %v8731_v41 = vpop.f32.mrb[78].mxu1 }
 0x394   : > { %v3770_v28 = vadd.f32 %v8709_v12, %v3735_v19  ;;  %v6768_v36 = vadd.f32 %v3309_v16, %v8504_v42  ;;  %v3311_v14 = vpop.f32.mrb[10].mxu0  ;;  %v3797_v24 = vmax.f32 %v3769_v35, 0.0  ;;  %9568 = vst [vmem:[#allocation26_spill] sm:$0xff] %v8731_v41  ;;  %v8733_v19 = vpop.f32.mrb[79].mxu1 }
 0x395   : > { %v6769_v45 = vadd.f32 %v3311_v14, %v8509_v44  ;;  %v3313_v29 = vpop.f32.mrb[11].mxu0  ;;  %9569 = vst [vmem:[#allocation27_spill] sm:$0xff] %v8733_v19 }
 0x396   : > { %v3798_v30 = vmax.f32 %v3770_v28, 0.0  ;;  %v6770_v10 = vadd.f32 %v3313_v29, %v8514_v58 }
 0x398   : > { %v8727_v3 = vpack.c.bf16 %v3798_v30, %v3797_v24  ;;  %v8739_v30 = vpop.f32.mrb[80].mxu1 }
 0x399   : > { %v8741_v32 = vpop.f32.mrb[81].mxu1 }
 0x39a   : > { %9566 = vst [vmem:[#allocation24_spill] sm:$0xff] %v8727_v3  ;;  %v3317_v15 = vpop.f32.mrb[12].mxu0  ;;  %v8743_v19 = vpop.f32.mrb[82].mxu1 }
 0x39b   : > { %v6771_v42 = vadd.f32 %v3317_v15, %v8523_v62  ;;  %v3319_v55 = vpop.f32.mrb[13].mxu0 }
 0x39c   : > { %v6772_v44 = vadd.f32 %v3319_v55, %v8526_v63  ;;  %v3321_v35 = vpop.f32.mrb[14].mxu0 }
 0x39d   : > { %v3682_v16 = vmax.f32 %v6767_v37, %v6771_v42  ;;  %v6773_v58 = vadd.f32 %v3321_v35, %v8531_v1  ;;  %v3323_v28 = vpop.f32.mrb[15].mxu0  ;;  %v8746_v37 = vpop.f32.mrb[83].mxu1 }
 0x39e   : > { %v3683_v14 = vmax.f32 %v6768_v36, %v6772_v44  ;;  %v6774_v29 = vadd.f32 %v3323_v28, %v8536_v4 }
 0x39f   : > { %v3684_v24 = vmax.f32 %v6769_v45, %v6773_v58 }
 0x3a0   : > { %v3736_v3 = vmax.f32 %v3682_v16, %v3683_v14  ;;  %v3685_v41 = vmax.f32 %v6770_v10, %v6774_v29 }
 0x3a2   : > { %v3771_v62 = vadd.f32 %v8709_v12, %v3736_v3  ;;  %v3737_v63 = vmax.f32 %v3684_v24, %v3685_v41  ;;  %v3327_v15 = vpop.f32.mrb[16].mxu0  ;;  %v7635_v3 = vld [vmem:[%s9523_s3] ss:$8 sps:$4 sm:$0xff]   ;;  %v8756_v41 = vpop.f32.mrb[84].mxu1  ;;  %v9570_v24 = vmov 0  }
 0x3a3   : > { %v6775_v1 = vadd.f32 %v3327_v15, %v8545_v8  ;;  %v3329_v36 = vpop.f32.mrb[17].mxu0  ;;  %v8763_v58 = vpop.f32.mrb[85].mxu1 }
 0x3a4   : > { %v3772_v4 = vadd.f32 %v8709_v12, %v3737_v63  ;;  %v6776_v45 = vadd.f32 %v3329_v36, %v8548_v9  ;;  %v3331_v42 = vpop.f32.mrb[18].mxu0  ;;  %v3799_v44 = vmax.f32 %v3771_v62, 0.0  ;;  %v7640_v9 = vld [vmem:[%s9523_s3 + $0x14] ss:$8 sps:$4 sm:$0xff]   ;;  %v7638_v62 = vld [vmem:[%s9523_s3 + $0x10] ss:$8 sps:$4 sm:$0xff]  }
 0x3a5   : > { %v6777_v10 = vadd.f32 %v3331_v42, %v8553_v11  ;;  %v3333_v55 = vpop.f32.mrb[19].mxu0  ;;  %v8765_v11 = vpop.f32.mrb[86].mxu1  ;;  %v7643_v36 = vld [vmem:[%s9523_s3 + $0x24] ss:$8 sps:$4 sm:$0xff]  }
 0x3a6   : > { %v3800_v35 = vmax.f32 %v3772_v4, 0.0  ;;  %v6778_v16 = vadd.f32 %v3333_v55, %v8558_v13  ;;  %v8768_v13 = vpop.f32.mrb[87].mxu1 }
 0x3a8   : > { %v8758_v8 = vpack.c.bf16 %v3800_v35, %v3799_v44 }
 0x3aa   : > { %v3337_v28 = vpop.f32.mrb[20].mxu0  ;;  %3985 = vmatmul.mubr.bf16.vlgmr.msra.gmra.mrb[112].mxu1 %v8758_v8 }
 0x3ab   : > { %v6779_v14 = vadd.f32 %v3337_v28, %v8567_v46  ;;  %v3339_v29 = vpop.f32.mrb[21].mxu0  ;;  %3994 = vmatprep.mubr.bf16.mxu1 %v9570_v24  ;;  %4166 = vmatpush1.bf16.msra.mxu1 %v7635_v3  ;;  %v7641_v3 = vld [vmem:[%s9523_s3 + $0x20] ss:$8 sps:$4 sm:$0xff]  }
 0x3ac   : > { %v6780_v63 = vadd.f32 %v3339_v29, %v8570_v47  ;;  %v3341_v15 = vpop.f32.mrb[22].mxu0  ;;  %4167 = vmatprep.subr.bf16.mxu1 %v7640_v9  ;;  %v7646_v9 = vld [vmem:[%s9523_s3 + $0x34] ss:$8 sps:$4 sm:$0xff]   ;;  %v7644_v29 = vld [vmem:[%s9523_s3 + $0x30] ss:$8 sps:$4 sm:$0xff]  }
 0x3ad   : > { %v3686_v4 = vmax.f32 %v6775_v1, %v6779_v14  ;;  %v6781_v42 = vadd.f32 %v3341_v15, %v8572_v48  ;;  %v3343_v46 = vpop.f32.mrb[23].mxu0 }
 0x3ae   : > { %v3687_v55 = vmax.f32 %v6776_v45, %v6780_v63  ;;  %v6782_v44 = vadd.f32 %v3343_v46, %v8574_v49  ;;  %v8788_v45 = vpop.f32.mrb[88].mxu1 }
 0x3af   : > { %v3688_v35 = vmax.f32 %v6777_v10, %v6781_v42  ;;  %4168 = vmatpush1.bf16.msra.mxu1 %v7638_v62 }
 0x3b0   : > { %v3738_v47 = vmax.f32 %v3686_v4, %v3687_v55  ;;  %v3689_v28 = vmax.f32 %v6778_v16, %v6782_v44  ;;  %4169 = vmatprep.subr.bf16.mxu1 %v7643_v36  ;;  %v8794_v16 = vpop.f32.mrb[89].mxu1  ;;  %v7649_v36 = vld [vmem:[%s9523_s3 + $0x44] ss:$8 sps:$4 sm:$0xff]  }
 0x3b1   : > { %v8801_v4 = vpop.f32.mrb[90].mxu1 }
 0x3b2   : > { %v3739_v1 = vmax.f32 %v3688_v35, %v3689_v28  ;;  %v3347_v14 = vpop.f32.mrb[24].mxu0  ;;  %v3773_v48 = vadd.f32 %v8709_v12, %v3738_v47  ;;  %v8804_v46 = vpop.f32.mrb[91].mxu1 }
 0x3b3   : > { %v6783_v49 = vadd.f32 %v3347_v14, %v8577_v51  ;;  %v3349_v10 = vpop.f32.mrb[25].mxu0  ;;  %4170 = vmatpush1.bf16.msra.mxu1 %v7641_v3  ;;  %v7647_v3 = vld [vmem:[%s9523_s3 + $0x40] ss:$8 sps:$4 sm:$0xff]  }
 0x3b4   : > { %v6784_v62 = vadd.f32 %v3349_v10, %v8580_v52  ;;  %v3351_v63 = vpop.f32.mrb[26].mxu0  ;;  %v3774_v15 = vadd.f32 %v8709_v12, %v3739_v1  ;;  %4171 = vmatprep.subr.bf16.mxu1 %v7646_v9  ;;  %v3801_v44 = vmax.f32 %v3773_v48, 0.0  ;;  %v8807_v52 = vpop.f32.mrb[92].mxu1  ;;  %v7650_v1 = vld [vmem:[%s9523_s3 + $0x50] ss:$8 sps:$4 sm:$0xff]  }
 0x3b5   : > { %v6785_v51 = vadd.f32 %v3351_v63, %v8582_v53  ;;  %v3353_v42 = vpop.f32.mrb[27].mxu0  ;;  %v7652_v53 = vld [vmem:[%s9523_s3 + $0x54] ss:$8 sps:$4 sm:$0xff]   ;;  %v8823_v14 = vpop.f32.mrb[93].mxu1 }
 0x3b6   : > { %v6786_v55 = vadd.f32 %v3353_v42, %v8584_v54  ;;  %v3802_v35 = vmax.f32 %v3774_v15, 0.0  ;;  %v8829_v63 = vpop.f32.mrb[94].mxu1 }
 0x3b7   : > { %4172 = vmatpush1.bf16.msra.mxu1 %v7644_v29  ;;  %v7655_v29 = vld [vmem:[%s9523_s3 + $0x64] ss:$8 sps:$4 sm:$0xff]   ;;  %v8832_v42 = vpop.f32.mrb[95].mxu1 }
 0x3b8   : > { %v8812_v47 = vpack.c.bf16 %v3802_v35, %v3801_v44  ;;  %4173 = vmatprep.subr.bf16.mxu1 %v7649_v36 }
 0x3ba   : > { %9571 = vst [vmem:[#allocation28_spill] sm:$0xff] %v8812_v47  ;;  %v3357_v28 = vpop.f32.mrb[28].mxu0  ;;  %3995 = vmatmul.mubr.bf16.gmra.mrb[116].mxu1 %v8812_v47 }
 0x3bb   : > { %v6787_v54 = vadd.f32 %v3357_v28, %v8587_v17  ;;  %v3359_v9 = vpop.f32.mrb[29].mxu0  ;;  %4004 = vmatprep.mubr.bf16.mxu1 %v9570_v24  ;;  %4174 = vmatpush1.bf16.msra.mxu1 %v7647_v3 }
 0x3bc   : > { %v6788_v48 = vadd.f32 %v3359_v9, %v8589_v56  ;;  %v3361_v10 = vpop.f32.mrb[30].mxu0  ;;  %4175 = vmatprep.subr.bf16.mxu1 %v7652_v53  ;;  %v7653_v56 = vld [vmem:[%s9523_s3 + $0x60] ss:$8 sps:$4 sm:$0xff]  }
 0x3bd   : > { %v3690_v17 = vmax.f32 %v6783_v49, %v6787_v54  ;;  %v6789_v15 = vadd.f32 %v3361_v10, %v8592_v18  ;;  %v3363_v36 = vpop.f32.mrb[31].mxu0  ;;  %v7658_v49 = vld [vmem:[%s9523_s3 + $0x74] ss:$8 sps:$4 sm:$0xff]  }
 0x3be   : > { %v3691_v44 = vmax.f32 %v6784_v62, %v6788_v48  ;;  %v6790_v35 = vadd.f32 %v3363_v36, %v8594_v57  ;;  %v8842_v62 = vpop.f32.mrb[96].mxu1 }
 0x3bf   : > { %v3692_v3 = vmax.f32 %v6785_v51, %v6789_v15  ;;  %4176 = vmatpush1.bf16.msra.mxu1 %v7650_v1  ;;  %v7656_v1 = vld [vmem:[%s9523_s3 + $0x70] ss:$8 sps:$4 sm:$0xff]  }
 0x3c0   : > { %v3740_v53 = vmax.f32 %v3690_v17, %v3691_v44  ;;  %v3693_v28 = vmax.f32 %v6786_v55, %v6790_v35  ;;  %4177 = vmatprep.subr.bf16.mxu1 %v7655_v29  ;;  %v8848_v55 = vpop.f32.mrb[97].mxu1  ;;  %v7661_v17 = vld [vmem:[%s9523_s3 + $0x104] ss:$8 sps:$4 sm:$0xff]  }
 0x3c1   : > { %v8855_v15 = vpop.f32.mrb[98].mxu1 }
 0x3c2   : > { %v3775_v18 = vadd.f32 %v8709_v12, %v3740_v53  ;;  %v3741_v54 = vmax.f32 %v3692_v3, %v3693_v28  ;;  %v3367_v9 = vpop.f32.mrb[32].mxu0  ;;  %v8858_v44 = vpop.f32.mrb[99].mxu1 }
 0x3c3   : > { %v6791_v57 = vadd.f32 %v3367_v9, %v8597_v20  ;;  %v3369_v51 = vpop.f32.mrb[33].mxu0  ;;  %4178 = vmatpush1.bf16.msra.mxu1 %v7653_v56  ;;  %v8864_v28 = vpop.f32.mrb[100].mxu1 }
 0x3c4   : > { %v3776_v48 = vadd.f32 %v8709_v12, %v3741_v54  ;;  %v6792_v10 = vadd.f32 %v3369_v51, %v8600_v21  ;;  %v3371_v29 = vpop.f32.mrb[34].mxu0  ;;  %4179 = vmatprep.subr.bf16.mxu1 %v7658_v49  ;;  %v3803_v35 = vmax.f32 %v3775_v18, 0.0 }
 0x3c5   : > { %v6793_v20 = vadd.f32 %v3371_v29, %v8602_v22  ;;  %v3373_v36 = vpop.f32.mrb[35].mxu0  ;;  %v8868_v22 = vpop.f32.mrb[101].mxu1 }
 0x3c6   : > { %v3804_v3 = vmax.f32 %v3776_v48, 0.0  ;;  %v6794_v56 = vadd.f32 %v3373_v36, %v8604_v23  ;;  %v8871_v23 = vpop.f32.mrb[102].mxu1 }
 0x3c7   : > { %4180 = vmatpush1.bf16.msra.mxu1 %v7656_v1  ;;  %v8874_v29 = vpop.f32.mrb[103].mxu1 }
 0x3c8   : > { %v8861_v53 = vpack.c.bf16 %v3804_v3, %v3803_v35  ;;  %4395 = vmatprep.subr.bf16.mxu1 %v7661_v17 }
 0x3ca   : > { %9572 = vst [vmem:[#allocation29_spill] sm:$0xff] %v8861_v53  ;;  %v3377_v21 = vpop.f32.mrb[36].mxu0  ;;  %4005 = vmatmul.mubr.bf16.gmra.mrb[120].mxu1 %v8861_v53 }
 0x3cb   : > { %v6795_v49 = vadd.f32 %v3377_v21, %v8607_v25  ;;  %v3379_v54 = vpop.f32.mrb[37].mxu0  ;;  %4014 = vmatprep.mubr.bf16.mxu1 %v9570_v24 }
 0x3cc   : > { %v6796_v18 = vadd.f32 %v3379_v54, %v8609_v26  ;;  %v3381_v9 = vpop.f32.mrb[38].mxu0  ;;  %v8878_v26 = vpop.f32.mrb[104].mxu1 }
 0x3cd   : > { %v3694_v51 = vmax.f32 %v6791_v57, %v6795_v49  ;;  %v6797_v1 = vadd.f32 %v3381_v9, %v8612_v31  ;;  %v3383_v48 = vpop.f32.mrb[39].mxu0  ;;  %v8881_v49 = vpop.f32.mrb[105].mxu1 }
 0x3ce   : > { %v3695_v17 = vmax.f32 %v6792_v10, %v6796_v18  ;;  %v6798_v36 = vadd.f32 %v3383_v48, %v8614_v34  ;;  %v8885_v34 = vpop.f32.mrb[106].mxu1 }
 0x3cf   : > { %v3696_v25 = vmax.f32 %v6793_v20, %v6797_v1  ;;  %v8888_v9 = vpop.f32.mrb[107].mxu1 }
 0x3d0   : > { %v3742_v35 = vmax.f32 %v3694_v51, %v3695_v17  ;;  %v3697_v3 = vmax.f32 %v6794_v56, %v6798_v36 }
 0x3d2   : > { %v3777_v21 = vadd.f32 %v8709_v12, %v3742_v35  ;;  %v3743_v53 = vmax.f32 %v3696_v25, %v3697_v3  ;;  %v3387_v47 = vpop.f32.mrb[40].mxu0 }
 0x3d3   : > { %v6799_v54 = vadd.f32 %v3387_v47, %v8617_v38  ;;  %v3389_v57 = vpop.f32.mrb[41].mxu0 }
 0x3d4   : > { %v3778_v31 = vadd.f32 %v8709_v12, %v3743_v53  ;;  %v6800_v10 = vadd.f32 %v3389_v57, %v8620_v39  ;;  %v3391_v18 = vpop.f32.mrb[42].mxu0  ;;  %v3805_v51 = vmax.f32 %v3777_v21, 0.0  ;;  %v8894_v53 = vpop.f32.mrb[108].mxu1 }
 0x3d5   : > { %v6801_v20 = vadd.f32 %v3391_v18, %v8622_v40  ;;  %v3393_v56 = vpop.f32.mrb[43].mxu0  ;;  %v8898_v40 = vpop.f32.mrb[109].mxu1 }
 0x3d6   : > { %v3806_v1 = vmax.f32 %v3778_v31, 0.0  ;;  %v6802_v48 = vadd.f32 %v3393_v56, %v8624_v43  ;;  %v8901_v35 = vpop.f32.mrb[110].mxu1 }
 0x3d7   : > { %v8904_v57 = vpop.f32.mrb[111].mxu1 }
 0x3d8   : > { %v8891_v38 = vpack.c.bf16 %v3806_v1, %v3805_v51  ;;  %9574 = vst [vmem:[#allocation31_spill] sm:$0xff] %v8904_v57 }
 0x3da   : > { %9573 = vst [vmem:[#allocation30_spill] sm:$0xff] %v8891_v38  ;;  %v3397_v47 = vpop.f32.mrb[44].mxu0  ;;  %4015 = vmatmul.mubr.bf16.gmra.mrb[124].mxu1 %v8891_v38 }
 0x3db   : > { %v6803_v39 = vadd.f32 %v3397_v47, %v8627_v59  ;;  %v3399_v17 = vpop.f32.mrb[45].mxu0  ;;  %4024 = vmatprep.mubr.bf16.mxu1 %v9570_v24 }
 0x3dc   : > { %v6804_v36 = vadd.f32 %v3399_v17, %v8630_v60  ;;  %v3401_v25 = vpop.f32.mrb[46].mxu0 }
 0x3dd   : > { %v3698_v43 = vmax.f32 %v6799_v54, %v6803_v39  ;;  %v6805_v3 = vadd.f32 %v3401_v25, %v8632_v61  ;;  %v3403_v21 = vpop.f32.mrb[47].mxu0  ;;  %v9575_v25 = vld [vmem:[#allocation2_spill] sm:$0xff] }
 0x3de   : > { %v3699_v31 = vmax.f32 %v6800_v10, %v6804_v36  ;;  %v6806_v18 = vadd.f32 %v3403_v21, %v8634_v0  ;;  %v9578_v21 = vld [vmem:[#allocation4_spill] sm:$0xff] }
 0x3df   : > { %v3700_v59 = vmax.f32 %v6801_v20, %v6805_v3  ;;  %v9576_v20 = vld [vmem:[#allocation3_spill] sm:$0xff] }
 0x3e0   : > { %v3744_v56 = vmax.f32 %v3698_v43, %v3699_v31  ;;  %v3701_v51 = vmax.f32 %v6802_v48, %v6806_v18  ;;  %v9579_v31 = vld [vmem:[#allocation5_spill] sm:$0xff] }
 0x3e2   : > { %v3779_v1 = vadd.f32 %v8709_v12, %v3744_v56  ;;  %v3745_v47 = vmax.f32 %v3700_v59, %v3701_v51  ;;  %v3407_v38 = vpop.f32.mrb[48].mxu0  ;;  %v9580_v56 = vld [vmem:[#allocation6_spill] sm:$0xff] }
 0x3e3   : > { %v6807_v60 = vadd.f32 %v3407_v38, %v8637_v5  ;;  %v3409_v17 = vpop.f32.mrb[49].mxu0 }
 0x3e4   : > { %v3780_v54 = vadd.f32 %v8709_v12, %v3745_v47  ;;  %v6808_v61 = vadd.f32 %v3409_v17, %v8640_v6  ;;  %v3411_v39 = vpop.f32.mrb[50].mxu0  ;;  %v3807_v36 = vmax.f32 %v3779_v1, 0.0  ;;  %v9581_v17 = vld [vmem:[#allocation7_spill] sm:$0xff] }
 0x3e5   : > { %v6809_v57 = vadd.f32 %v3411_v39, %v9575_v25  ;;  %v3413_v10 = vpop.f32.mrb[51].mxu0 }
 0x3e6   : > { %v3808_v0 = vmax.f32 %v3780_v54, 0.0  ;;  %v6810_v43 = vadd.f32 %v3413_v10, %v9576_v20 }
 0x3e8   : > { %v8913_v48 = vpack.c.bf16 %v3808_v0, %v3807_v36 }
 0x3ea   : > { %9577 = vst [vmem:[#allocation2_spill] sm:$0xff] %v8913_v48  ;;  %v3417_v3 = vpop.f32.mrb[52].mxu0  ;;  %4025 = vmatmul.mubr.bf16.gmra.mrb[128].mxu1 %v8913_v48 }
 0x3eb   : > { %v6811_v5 = vadd.f32 %v3417_v3, %v9578_v21  ;;  %v3419_v38 = vpop.f32.mrb[53].mxu0  ;;  %4034 = vmatprep.mubr.bf16.mxu1 %v9570_v24  ;;  %v9582_v3 = vld [vmem:[#allocation8_spill] sm:$0xff] }
 0x3ec   : > { %v6812_v6 = vadd.f32 %v3419_v38, %v9579_v31  ;;  %v3421_v18 = vpop.f32.mrb[54].mxu0  ;;  %v9583_v31 = vld [vmem:[#allocation9_spill] sm:$0xff] }
 0x3ed   : > { %v3702_v59 = vmax.f32 %v6807_v60, %v6811_v5  ;;  %v6813_v51 = vadd.f32 %v3421_v18, %v9580_v56  ;;  %v3423_v1 = vpop.f32.mrb[55].mxu0  ;;  %v9584_v18 = vld [vmem:[#allocation10_spill] sm:$0xff] }
 0x3ee   : > { %v3703_v47 = vmax.f32 %v6808_v61, %v6812_v6  ;;  %v6814_v54 = vadd.f32 %v3423_v1, %v9581_v17 }
 0x3ef   : > { %v3704_v39 = vmax.f32 %v6809_v57, %v6813_v51  ;;  %v9585_v57 = vld [vmem:[#allocation11_spill] sm:$0xff] }
 0x3f0   : > { %v3746_v25 = vmax.f32 %v3702_v59, %v3703_v47  ;;  %v3705_v10 = vmax.f32 %v6810_v43, %v6814_v54  ;;  %v9587_v47 = vld [vmem:[#allocation12_spill] sm:$0xff] }
 0x3f2   : > { %v3781_v36 = vadd.f32 %v8709_v12, %v3746_v25  ;;  %v3747_v0 = vmax.f32 %v3704_v39, %v3705_v10  ;;  %v3427_v20 = vpop.f32.mrb[56].mxu0  ;;  %v9588_v39 = vld [vmem:[#allocation13_spill] sm:$0xff] }
 0x3f3   : > { %v6815_v21 = vadd.f32 %v3427_v20, %v9582_v3  ;;  %v3429_v48 = vpop.f32.mrb[57].mxu0 }
 0x3f4   : > { %v3782_v38 = vadd.f32 %v8709_v12, %v3747_v0  ;;  %v6816_v60 = vadd.f32 %v3429_v48, %v9583_v31  ;;  %v3431_v5 = vpop.f32.mrb[58].mxu0  ;;  %v3809_v6 = vmax.f32 %v3781_v36, 0.0  ;;  %v9589_v0 = vld [vmem:[#allocation14_spill] sm:$0xff] }
 0x3f5   : > { %v6817_v56 = vadd.f32 %v3431_v5, %v9584_v18  ;;  %v3433_v61 = vpop.f32.mrb[59].mxu0 }
 0x3f6   : > { %v3810_v1 = vmax.f32 %v3782_v38, 0.0  ;;  %v6818_v59 = vadd.f32 %v3433_v61, %v9585_v57  ;;  %v9590_v38 = vld [vmem:[#allocation15_spill] sm:$0xff] }
 0x3f8   : > { %v8927_v43 = vpack.c.bf16 %v3810_v1, %v3809_v6 }
 0x3fa   : > { %9586 = vst [vmem:[#allocation3_spill] sm:$0xff] %v8927_v43  ;;  %v3437_v51 = vpop.f32.mrb[60].mxu0  ;;  %4035 = vmatmul.mubr.bf16.gmra.mrb[132].mxu1 %v8927_v43 }
 0x3fb   : > { %v6819_v17 = vadd.f32 %v3437_v51, %v9587_v47  ;;  %v3439_v54 = vpop.f32.mrb[61].mxu0  ;;  %4044 = vmatprep.mubr.bf16.mxu1 %v9570_v24  ;;  %v9591_v51 = vld [vmem:[#allocation16_spill] sm:$0xff] }
 0x3fc   : > { %v6820_v48 = vadd.f32 %v3439_v54, %v9588_v39  ;;  %v3441_v25 = vpop.f32.mrb[62].mxu0  ;;  %v9592_v39 = vld [vmem:[#allocation17_spill] sm:$0xff] }
 0x3fd   : > { %v3706_v10 = vmax.f32 %v6815_v21, %v6819_v17  ;;  %v6821_v20 = vadd.f32 %v3441_v25, %v9589_v0  ;;  %v3443_v36 = vpop.f32.mrb[63].mxu0  ;;  %v9593_v25 = vld [vmem:[#allocation18_spill] sm:$0xff] }
 0x3fe   : > { %v3707_v3 = vmax.f32 %v6816_v60, %v6820_v48  ;;  %v6822_v31 = vadd.f32 %v3443_v36, %v9590_v38 }
 0x3ff   : > { %v3708_v5 = vmax.f32 %v6817_v56, %v6821_v20  ;;  %v9594_v56 = vld [vmem:[#allocation19_spill] sm:$0xff] }
 0x400   : > { %v3748_v18 = vmax.f32 %v3706_v10, %v3707_v3  ;;  %v3709_v61 = vmax.f32 %v6818_v59, %v6822_v31  ;;  %v9595_v3 = vld [vmem:[#allocation20_spill] sm:$0xff] }
 0x402   : > { %v3783_v6 = vadd.f32 %v8709_v12, %v3748_v18  ;;  %v3749_v1 = vmax.f32 %v3708_v5, %v3709_v61  ;;  %v3447_v57 = vpop.f32.mrb[64].mxu0  ;;  %v9596_v5 = vld [vmem:[#allocation21_spill] sm:$0xff] }
 0x403   : > { %v6823_v47 = vadd.f32 %v3447_v57, %v9591_v51  ;;  %v3449_v43 = vpop.f32.mrb[65].mxu0 }
 0x404   : > { %v3784_v54 = vadd.f32 %v8709_v12, %v3749_v1  ;;  %v6824_v21 = vadd.f32 %v3449_v43, %v9592_v39  ;;  %v3451_v17 = vpop.f32.mrb[66].mxu0  ;;  %v3811_v48 = vmax.f32 %v3783_v6, 0.0  ;;  %v9597_v1 = vld [vmem:[#allocation22_spill] sm:$0xff] }
 0x405   : > { %v6825_v0 = vadd.f32 %v3451_v17, %v9593_v25  ;;  %v3453_v60 = vpop.f32.mrb[67].mxu0 }
 0x406   : > { %v3812_v36 = vmax.f32 %v3784_v54, 0.0  ;;  %v6826_v10 = vadd.f32 %v3453_v60, %v9594_v56  ;;  %v9598_v54 = vld [vmem:[#allocation23_spill] sm:$0xff] }
 0x408   : > { %v8941_v59 = vpack.c.bf16 %v3812_v36, %v3811_v48 }
 0x40a   : > { %v3457_v20 = vpop.f32.mrb[68].mxu0  ;;  %4045 = vmatmul.mubr.bf16.gmra.mrb[136].mxu1 %v8941_v59 }
 0x40b   : > { %v6827_v38 = vadd.f32 %v3457_v20, %v9595_v3  ;;  %v3459_v31 = vpop.f32.mrb[69].mxu0  ;;  %4054 = vmatprep.mubr.bf16.mxu1 %v9570_v24 }
 0x40c   : > { %v6828_v43 = vadd.f32 %v3459_v31, %v9596_v5  ;;  %v3461_v18 = vpop.f32.mrb[70].mxu0 }
 0x40d   : > { %v3710_v61 = vmax.f32 %v6823_v47, %v6827_v38  ;;  %v6829_v57 = vadd.f32 %v3461_v18, %v9597_v1  ;;  %v3463_v6 = vpop.f32.mrb[71].mxu0 }
 0x40e   : > { %v3711_v51 = vmax.f32 %v6824_v21, %v6828_v43  ;;  %v6830_v39 = vadd.f32 %v3463_v6, %v9598_v54 }
 0x40f   : > { %v3712_v17 = vmax.f32 %v6825_v0, %v6829_v57  ;;  %v9599_v57 = vld [vmem:[#allocation25_spill] sm:$0xff] }
 0x410   : > { %v3750_v25 = vmax.f32 %v3710_v61, %v3711_v51  ;;  %v3713_v60 = vmax.f32 %v6826_v10, %v6830_v39 }
 0x412   : > { %v3785_v48 = vadd.f32 %v8709_v12, %v3750_v25  ;;  %v3751_v36 = vmax.f32 %v3712_v17, %v3713_v60  ;;  %v3467_v56 = vpop.f32.mrb[72].mxu0  ;;  %v9601_v25 = vld [vmem:[#allocation27_spill] sm:$0xff] }
 0x413   : > { %v6831_v20 = vadd.f32 %v3467_v56, %v8711_v7  ;;  %v3469_v3 = vpop.f32.mrb[73].mxu0 }
 0x414   : > { %v3786_v31 = vadd.f32 %v8709_v12, %v3751_v36  ;;  %v6832_v47 = vadd.f32 %v3469_v3, %v8713_v2  ;;  %v3471_v38 = vpop.f32.mrb[74].mxu0  ;;  %v3813_v43 = vmax.f32 %v3785_v48, 0.0 }
 0x415   : > { %v6833_v5 = vadd.f32 %v3471_v38, %v8715_v33  ;;  %v3473_v21 = vpop.f32.mrb[75].mxu0  ;;  %v9600_v33 = vld [vmem:[#allocation26_spill] sm:$0xff] }
 0x416   : > { %v3814_v18 = vmax.f32 %v3786_v31, 0.0  ;;  %v6834_v0 = vadd.f32 %v3473_v21, %v8718_v27 }
 0x418   : > { %v8955_v10 = vpack.c.bf16 %v3814_v18, %v3813_v43 }
 0x41a   : > { %v3477_v61 = vpop.f32.mrb[76].mxu0  ;;  %4055 = vmatmul.mubr.bf16.gmra.mrb[140].mxu1 %v8955_v10 }
 0x41b   : > { %v6835_v7 = vadd.f32 %v3477_v61, %v8725_v50  ;;  %v3479_v1 = vpop.f32.mrb[77].mxu0  ;;  %4064 = vmatprep.mubr.bf16.mxu1 %v9570_v24 }
 0x41c   : > { %v6836_v2 = vadd.f32 %v3479_v1, %v9599_v57  ;;  %v3481_v6 = vpop.f32.mrb[78].mxu0 }
 0x41d   : > { %v3714_v51 = vmax.f32 %v6831_v20, %v6835_v7  ;;  %v6837_v54 = vadd.f32 %v3481_v6, %v9600_v33  ;;  %v3483_v39 = vpop.f32.mrb[79].mxu0 }
 0x41e   : > { %v3715_v17 = vmax.f32 %v6832_v47, %v6836_v2  ;;  %v6838_v27 = vadd.f32 %v3483_v39, %v9601_v25 }
 0x41f   : > { %v3716_v60 = vmax.f32 %v6833_v5, %v6837_v54 }
 0x420   : > { %v3752_v48 = vmax.f32 %v3714_v51, %v3715_v17  ;;  %v3717_v36 = vmax.f32 %v6834_v0, %v6838_v27 }
 0x422   : > { %v3787_v56 = vadd.f32 %v8709_v12, %v3752_v48  ;;  %v3753_v3 = vmax.f32 %v3716_v60, %v3717_v36  ;;  %v3487_v50 = vpop.f32.mrb[80].mxu0 }
 0x423   : > { %v6839_v31 = vadd.f32 %v3487_v50, %v8739_v30  ;;  %v3489_v38 = vpop.f32.mrb[81].mxu0 }
 0x424   : > { %v3788_v21 = vadd.f32 %v8709_v12, %v3753_v3  ;;  %v6840_v20 = vadd.f32 %v3489_v38, %v8741_v32  ;;  %v3491_v43 = vpop.f32.mrb[82].mxu0  ;;  %v3815_v61 = vmax.f32 %v3787_v56, 0.0 }
 0x425   : > { %v6841_v18 = vadd.f32 %v3491_v43, %v8743_v19  ;;  %v3493_v47 = vpop.f32.mrb[83].mxu0 }
 0x426   : > { %v3816_v7 = vmax.f32 %v3788_v21, 0.0  ;;  %v6842_v5 = vadd.f32 %v3493_v47, %v8746_v37 }
 0x428   : > { %v8969_v0 = vpack.c.bf16 %v3816_v7, %v3815_v61 }
 0x42a   : > { %v3497_v1 = vpop.f32.mrb[84].mxu0  ;;  %4065 = vmatmul.mubr.bf16.gmra.mrb[144].mxu1 %v8969_v0 }
 0x42b   : > { %v6843_v30 = vadd.f32 %v3497_v1, %v8756_v41  ;;  %v3499_v57 = vpop.f32.mrb[85].mxu0  ;;  %4074 = vmatprep.mubr.bf16.mxu1 %v9570_v24 }
 0x42c   : > { %v6844_v32 = vadd.f32 %v3499_v57, %v8763_v58  ;;  %v3501_v2 = vpop.f32.mrb[86].mxu0 }
 0x42d   : > { %v3718_v6 = vmax.f32 %v6839_v31, %v6843_v30  ;;  %v6845_v19 = vadd.f32 %v3501_v2, %v8765_v11  ;;  %v3503_v51 = vpop.f32.mrb[87].mxu0  ;;  %v7664_v30 = vld [vmem:[%s9523_s3 + $0x114] ss:$8 sps:$4 sm:$0xff]  }
 0x42e   : > { %v3719_v33 = vmax.f32 %v6840_v20, %v6844_v32  ;;  %v6846_v37 = vadd.f32 %v3503_v51, %v8768_v13  ;;  %v9602_v32 = vld [vmem:[#allocation24_spill] sm:$0xff] }
 0x42f   : > { %v3720_v54 = vmax.f32 %v6841_v18, %v6845_v19 }
 0x430   : > { %v3754_v39 = vmax.f32 %v3718_v6, %v3719_v33  ;;  %v3721_v17 = vmax.f32 %v6842_v5, %v6846_v37  ;;  %v7659_v5 = vld [vmem:[%s9523_s3 + $0x100] ss:$8 sps:$4 sm:$0xff]   ;;  %v7662_v6 = vld [vmem:[%s9523_s3 + $0x110] ss:$8 sps:$4 sm:$0xff]   ;;  %v7667_v33 = vld [vmem:[%s9523_s3 + $0x124] ss:$8 sps:$4 sm:$0xff]  }
 0x432   : > { %v3789_v25 = vadd.f32 %v8709_v12, %v3754_v39  ;;  %v3755_v27 = vmax.f32 %v3720_v54, %v3721_v17  ;;  %v3507_v41 = vpop.f32.mrb[88].mxu0 }
 0x433   : > { %v6847_v60 = vadd.f32 %v3507_v41, %v8788_v45  ;;  %v3509_v48 = vpop.f32.mrb[89].mxu0 }
 0x434   : > { %v3790_v58 = vadd.f32 %v8709_v12, %v3755_v27  ;;  %v6848_v36 = vadd.f32 %v3509_v48, %v8794_v16  ;;  %v3511_v56 = vpop.f32.mrb[90].mxu0  ;;  %v3817_v50 = vmax.f32 %v3789_v25, 0.0  ;;  %v7670_v27 = vld [vmem:[%s9523_s3 + $0x134] ss:$8 sps:$4 sm:$0xff]   ;;  %v7668_v48 = vld [vmem:[%s9523_s3 + $0x130] ss:$8 sps:$4 sm:$0xff]  }
 0x435   : > { %v6849_v11 = vadd.f32 %v3511_v56, %v8801_v4  ;;  %v3513_v3 = vpop.f32.mrb[91].mxu0  ;;  %v7673_v56 = vld [vmem:[%s9523_s3 + $0x144] ss:$8 sps:$4 sm:$0xff]  }
 0x436   : > { %v3818_v13 = vmax.f32 %v3790_v58, 0.0  ;;  %v6850_v31 = vadd.f32 %v3513_v3, %v8804_v46 }
 0x438   : > { %v8983_v38 = vpack.c.bf16 %v3818_v13, %v3817_v50 }
 0x43a   : > { %v3517_v21 = vpop.f32.mrb[92].mxu0  ;;  %4075 = vmatmul.mubr.bf16.gmra.mrb[148].mxu1 %v8983_v38 }
 0x43b   : > { %v6851_v45 = vadd.f32 %v3517_v21, %v8807_v52  ;;  %v3519_v20 = vpop.f32.mrb[93].mxu0  ;;  %4197 = vmatprep.mubr.bf16.mxu1 %v9570_v24 }
 0x43c   : > { %v6852_v16 = vadd.f32 %v3519_v20, %v8823_v14  ;;  %v3521_v43 = vpop.f32.mrb[94].mxu0 }
 0x43d   : > { %v3722_v18 = vmax.f32 %v6847_v60, %v6851_v45  ;;  %v6853_v4 = vadd.f32 %v3521_v43, %v8829_v63  ;;  %v3523_v47 = vpop.f32.mrb[95].mxu0  ;;  %v7676_v45 = vld [vmem:[%s9523_s3 + $0x154] ss:$8 sps:$4 sm:$0xff]  }
 0x43e   : > { %v3723_v61 = vmax.f32 %v6848_v36, %v6852_v16  ;;  %v6854_v46 = vadd.f32 %v3523_v47, %v8832_v42 }
 0x43f   : > { %v3724_v7 = vmax.f32 %v6849_v11, %v6853_v4  ;;  %v7674_v4 = vld [vmem:[%s9523_s3 + $0x150] ss:$8 sps:$4 sm:$0xff]  }
 0x440   : > { %v3756_v1 = vmax.f32 %v3722_v18, %v3723_v61  ;;  %v3725_v52 = vmax.f32 %v6850_v31, %v6854_v46  ;;  %v7671_v31 = vld [vmem:[%s9523_s3 + $0x140] ss:$8 sps:$4 sm:$0xff]   ;;  %v7679_v46 = vld [vmem:[%s9523_s3 + $0x164] ss:$8 sps:$4 sm:$0xff]  }
 0x442   : > { %v3757_v14 = vmax.f32 %v3724_v7, %v3725_v52  ;;  %v3527_v57 = vpop.f32.mrb[96].mxu0  ;;  %4198 = vmatmul.mubr.bf16.vlgmr.msra.gmra.mrb[112].mxu1 %v9602_v32  ;;  %v3791_v63 = vadd.f32 %v8709_v12, %v3756_v1 }
 0x443   : > { %v6855_v2 = vadd.f32 %v3527_v57, %v8842_v62  ;;  %v3529_v42 = vpop.f32.mrb[97].mxu0  ;;  %4396 = vmatpush1.bf16.msra.mxu1 %v7659_v5  ;;  %4207 = vmatprep.mubr.bf16.mxu1 %v9570_v24 }
 0x444   : > { %v6856_v19 = vadd.f32 %v3529_v42, %v8848_v55  ;;  %v3531_v51 = vpop.f32.mrb[98].mxu0  ;;  %4397 = vmatprep.subr.bf16.mxu1 %v7664_v30  ;;  %v3792_v37 = vadd.f32 %v8709_v12, %v3757_v14  ;;  %v3819_v17 = vmax.f32 %v3791_v63, 0.0  ;;  %v7665_v55 = vld [vmem:[%s9523_s3 + $0x120] ss:$8 sps:$4 sm:$0xff]   ;;  %v7682_v14 = vld [vmem:[%s9523_s3 + $0x174] ss:$8 sps:$4 sm:$0xff]  }
 0x445   : > { %v6857_v62 = vadd.f32 %v3531_v51, %v8855_v15  ;;  %v3533_v54 = vpop.f32.mrb[99].mxu0  ;;  %v9604_v63 = vld [vmem:[#allocation29_spill] sm:$0xff] }
 0x446   : > { %v6858_v39 = vadd.f32 %v3533_v54, %v8858_v44  ;;  %v3820_v25 = vmax.f32 %v3792_v37, 0.0 }
 0x447   : > { %4398 = vmatpush1.bf16.msra.mxu1 %v7662_v6 }
 0x448   : > { %4399 = vmatprep.subr.bf16.mxu1 %v7667_v33  ;;  %v9017_v41 = vpack.c.bf16 %v3820_v25, %v3819_v17 }
 0x44a   : > { %v3537_v60 = vpop.f32.mrb[100].mxu0  ;;  %4208 = vmatmul.mubr.bf16.gmra.mrb[116].mxu1 %v8758_v8 }
 0x44b   : > { %v6859_v15 = vadd.f32 %v3537_v60, %v8864_v28  ;;  %v3539_v44 = vpop.f32.mrb[101].mxu0  ;;  %4217 = vmatprep.mubr.bf16.mxu1 %v9570_v24  ;;  %4400 = vmatpush1.bf16.msra.mxu1 %v7665_v55 }
 0x44c   : > { %v6860_v58 = vadd.f32 %v3539_v44, %v8868_v22  ;;  %v3541_v36 = vpop.f32.mrb[102].mxu0  ;;  %4401 = vmatprep.subr.bf16.mxu1 %v7670_v27 }
 0x44d   : > { %v3726_v11 = vmax.f32 %v6855_v2, %v6859_v15  ;;  %v6861_v8 = vadd.f32 %v3541_v36, %v8871_v23  ;;  %v3543_v28 = vpop.f32.mrb[103].mxu0  ;;  %v9603_v23 = vld [vmem:[#allocation28_spill] sm:$0xff] }
 0x44e   : > { %v3727_v3 = vmax.f32 %v6856_v19, %v6860_v58  ;;  %v6862_v50 = vadd.f32 %v3543_v28, %v8874_v29  ;;  %v7680_v2 = vld [vmem:[%s9523_s3 + $0x170] ss:$8 sps:$4 sm:$0xff]   ;;  %v7685_v19 = vld [vmem:[%s9523_s3 + $0x184] ss:$8 sps:$4 sm:$0xff]   ;;  %v7688_v36 = vld [vmem:[%s9523_s3 + $0x194] ss:$8 sps:$4 sm:$0xff]  }
 0x44f   : > { %v3728_v13 = vmax.f32 %v6857_v62, %v6861_v8  ;;  %4402 = vmatpush1.bf16.msra.mxu1 %v7668_v48  ;;  %v9605_v62 = vld [vmem:[#allocation31_spill] sm:$0xff]  ;;  %v9607_v48 = vld [vmem:[#allocation2_spill] sm:$0xff]  ;;  %v7694_v28 = vld [vmem:[%s9523_s3 + $0x1b4] ss:$8 sps:$4 sm:$0xff]  }
 0x450   : > { %v3758_v22 = vmax.f32 %v3726_v11, %v3727_v3  ;;  %v3729_v21 = vmax.f32 %v6858_v39, %v6862_v50  ;;  %4403 = vmatprep.subr.bf16.mxu1 %v7673_v56  ;;  %v9608_v58 = vld [vmem:[#allocation3_spill] sm:$0xff]  ;;  %v7686_v56 = vld [vmem:[%s9523_s3 + $0x190] ss:$8 sps:$4 sm:$0xff]  }
 0x451   : > { %v7691_v11 = vld [vmem:[%s9523_s3 + $0x1a4] ss:$8 sps:$4 sm:$0xff]   ;;  %v7689_v8 = vld [vmem:[%s9523_s3 + $0x1a0] ss:$8 sps:$4 sm:$0xff]   ;;  %v7692_v3 = vld [vmem:[%s9523_s3 + $0x1b0] ss:$8 sps:$4 sm:$0xff]  }
 0x452   : > { %v3759_v20 = vmax.f32 %v3728_v13, %v3729_v21  ;;  %v3547_v16 = vpop.f32.mrb[104].mxu0  ;;  %4218 = vmatmul.mubr.bf16.gmra.mrb[120].mxu1 %v9603_v23  ;;  %v3793_v43 = vadd.f32 %v8709_v12, %v3758_v22  ;;  %v7697_v50 = vld [vmem:[%s9523_s3 + $0x1c4] ss:$8 sps:$4 sm:$0xff]   ;;  %v7695_v13 = vld [vmem:[%s9523_s3 + $0x1c0] ss:$8 sps:$4 sm:$0xff]  }
 0x453   : > { %v6863_v29 = vadd.f32 %v3547_v16, %v8878_v26  ;;  %v3549_v18 = vpop.f32.mrb[105].mxu0  ;;  %4227 = vmatprep.mubr.bf16.mxu1 %v9570_v24  ;;  %4404 = vmatpush1.bf16.msra.mxu1 %v7671_v31  ;;  %v7700_v31 = vld [vmem:[%s9523_s3 + $0x1d4] ss:$8 sps:$4 sm:$0xff]   ;;  %v7698_v22 = vld [vmem:[%s9523_s3 + $0x1d0] ss:$8 sps:$4 sm:$0xff]  }
 0x454   : > { %v6864_v47 = vadd.f32 %v3549_v18, %v8881_v49  ;;  %v3551_v61 = vpop.f32.mrb[106].mxu0  ;;  %4405 = vmatprep.subr.bf16.mxu1 %v7676_v45  ;;  %v3794_v7 = vadd.f32 %v8709_v12, %v3759_v20  ;;  %v3821_v52 = vmax.f32 %v3793_v43, 0.0  ;;  %v7677_v49 = vld [vmem:[%s9523_s3 + $0x160] ss:$8 sps:$4 sm:$0xff]   ;;  %v7703_v21 = vld [vmem:[%s9523_s3 + $0x1e4] ss:$8 sps:$4 sm:$0xff]  }
 0x455   : > { %v6865_v26 = vadd.f32 %v3551_v61, %v8885_v34  ;;  %v3553_v5 = vpop.f32.mrb[107].mxu0  ;;  %v7701_v45 = vld [vmem:[%s9523_s3 + $0x1e0] ss:$8 sps:$4 sm:$0xff]   ;;  %v7706_v20 = vld [vmem:[%s9523_s3 + $0x1f4] ss:$8 sps:$4 sm:$0xff]  }
 0x456   : > { %v6866_v1 = vadd.f32 %v3553_v5, %v8888_v9  ;;  %v3822_v30 = vmax.f32 %v3794_v7, 0.0  ;;  %v7704_v16 = vld [vmem:[%s9523_s3 + $0x1f0] ss:$8 sps:$4 sm:$0xff]   ;;  %v7707_v43 = vld [vmem:[%s9523_s3 + $0x200] ss:$8 sps:$4 sm:$0xff]  }
 0x457   : > { %4406 = vmatpush1.bf16.msra.mxu1 %v7674_v4  ;;  %v7710_v18 = vld [vmem:[%s9523_s3 + $0x210] ss:$8 sps:$4 sm:$0xff]   ;;  %v7715_v4 = vld [vmem:[%s9523_s3 + $0x224] ss:$8 sps:$4 sm:$0xff]   ;;  %v7718_v61 = vld [vmem:[%s9523_s3 + $0x234] ss:$8 sps:$4 sm:$0xff]  }
 0x458   : > { %4407 = vmatprep.subr.bf16.mxu1 %v7679_v46  ;;  %v9057_v57 = vpack.c.bf16 %v3822_v30, %v3821_v52  ;;  %v7716_v46 = vld [vmem:[%s9523_s3 + $0x230] ss:$8 sps:$4 sm:$0xff]   ;;  %v7721_v7 = vld [vmem:[%s9523_s3 + $0x244] ss:$8 sps:$4 sm:$0xff]   ;;  %v7724_v5 = vld [vmem:[%s9523_s3 + $0x254] ss:$8 sps:$4 sm:$0xff]  }
 0x459   : > { %v7727_v52 = vld [vmem:[%s9523_s3 + $0x264] ss:$8 sps:$4 sm:$0xff]   ;;  %v7725_v30 = vld [vmem:[%s9523_s3 + $0x260] ss:$8 sps:$4 sm:$0xff]  }
 0x45a   : > { %v3557_v32 = vpop.f32.mrb[108].mxu0  ;;  %4228 = vmatmul.mubr.bf16.gmra.mrb[124].mxu1 %v9604_v63 }
 0x45b   : > { %v6867_v34 = vadd.f32 %v3557_v32, %v8894_v53  ;;  %v3559_v9 = vpop.f32.mrb[109].mxu0  ;;  %4237 = vmatprep.mubr.bf16.mxu1 %v9570_v24  ;;  %4408 = vmatpush1.bf16.msra.mxu1 %v7677_v49  ;;  %v7730_v49 = vld [vmem:[%s9523_s3 + $0x274] ss:$8 sps:$4 sm:$0xff]   ;;  %v7823_v32 = vmov 0.0  }
 0x45c   : > { %v6868_v42 = vadd.f32 %v3559_v9, %v8898_v40  ;;  %v3561_v6 = vpop.f32.mrb[110].mxu0  ;;  %4409 = vmatprep.subr.bf16.mxu1 %v7682_v14  ;;  %v9606_v40 = vld [vmem:[#allocation30_spill] sm:$0xff]  ;;  %v7728_v14 = vld [vmem:[%s9523_s3 + $0x270] ss:$8 sps:$4 sm:$0xff]  }
 0x45d   : > { %v3730_v51 = vmax.f32 %v6863_v29, %v6867_v34  ;;  %v6869_v33 = vadd.f32 %v3561_v6, %v8901_v35  ;;  %v3563_v53 = vpop.f32.mrb[111].mxu0  ;;  %v7712_v29 = vld [vmem:[%s9523_s3 + $0x214] ss:$8 sps:$4 sm:$0xff]   ;;  %v7732_v34 = vld [vmem:[%s9525_s5 + $0x48] sm:$0xff]  }
 0x45e   : > { %v3731_v37 = vmax.f32 %v6864_v47, %v6868_v42  ;;  %v6870_v54 = vadd.f32 %v3563_v53, %v9605_v62  ;;  %v7713_v47 = vld [vmem:[%s9523_s3 + $0x220] ss:$8 sps:$4 sm:$0xff]   ;;  %v7733_v9 = vld [vmem:[%s9525_s5 + $0x50] sm:$0xff]  }
 0x45f   : > { %v3732_v39 = vmax.f32 %v6865_v26, %v6869_v33  ;;  %4410 = vmatpush1.bf16.msra.mxu1 %v7680_v2  ;;  %v7719_v26 = vld [vmem:[%s9523_s3 + $0x240] ss:$8 sps:$4 sm:$0xff]   ;;  %v7734_v2 = vld [vmem:[%s9525_s5 + $0x58] sm:$0xff]  }
 0x460   : > { %v3760_v17 = vmax.f32 %v3730_v51, %v3731_v37  ;;  %v3733_v25 = vmax.f32 %v6866_v1, %v6870_v54  ;;  %4665 = vmatprep.subr.bf16.mxu1 %v7685_v19  ;;  %v7722_v1 = vld [vmem:[%s9523_s3 + $0x250] ss:$8 sps:$4 sm:$0xff]   ;;  %v7735_v42 = vld [vmem:[%s9525_s5 + $0x60] sm:$0xff]  }
 0x461   : > { %v9277_v37 = vld [vmem:[%s9524_s4] ss:$0 sm:$0xff] }
 0x462   : > { %v3761_v55 = vmax.f32 %v3732_v39, %v3733_v25  ;;  %4238 = vmatmul.mubr.bf16.gmra.mrb[128].mxu1 %v9606_v40  ;;  %v3795_v27 = vadd.f32 %v8709_v12, %v3760_v17 }
 0x463   : > { %4247 = vmatprep.mubr.bf16.mxu1 %v9570_v24 }
 0x464   : > { %v3796_v60 = vadd.f32 %v8709_v12, %v3761_v55  ;;  %v3823_v15 = vmax.f32 %v3795_v27, 0.0  ;;  %v7683_v12 = vld [vmem:[%s9523_s3 + $0x180] ss:$8 sps:$4 sm:$0xff]  }
 0x466   : > { %v3824_v35 = vmax.f32 %v3796_v60, 0.0 }
 0x468   : > { %v9075_v44 = vpack.c.bf16 %v3824_v35, %v3823_v15 }
 0x46a   : > { %4248 = vmatmul.mubr.bf16.gmra.mrb[132].mxu1 %v9607_v48 }
 0x46b   : > { %4257 = vmatprep.mubr.bf16.mxu1 %v9570_v24 }
 0x472   : > { %4258 = vmatmul.mubr.bf16.gmra.mrb[136].mxu1 %v9608_v58 }
 0x473   : > { %4267 = vmatprep.mubr.bf16.mxu1 %v9570_v24 }
 0x47a   : > { %4268 = vmatmul.mubr.bf16.gmra.mrb[140].mxu1 %v8941_v59 }
 0x47b   : > { %4277 = vmatprep.mubr.bf16.mxu1 %v9570_v24 }
 0x482   : > { %4278 = vmatmul.mubr.bf16.gmra.mrb[144].mxu1 %v8955_v10 }
 0x483   : > { %4287 = vmatprep.mubr.bf16.mxu1 %v9570_v24 }
 0x48a   : > { %4288 = vmatmul.mubr.bf16.gmra.mrb[148].mxu1 %v8969_v0 }
 0x48b   : > { %4427 = vmatprep.mubr.bf16.mxu1 %v9570_v24 }
 0x492   : > { %4428 = vmatmul.mubr.bf16.vlgmr.msra.gmra.mrb[112].mxu1 %v9603_v23  ;;  %v7709_v23 = vld [vmem:[%s9523_s3 + $0x204] ss:$8 sps:$4 sm:$0xff]  }
 0x493   : > { %4666 = vmatpush1.bf16.msra.mxu1 %v7683_v12  ;;  %4437 = vmatprep.mubr.bf16.mxu1 %v9570_v24 }
 0x494   : > { %4667 = vmatprep.subr.bf16.mxu1 %v7688_v36 }
 0x497   : > { %4668 = vmatpush1.bf16.msra.mxu1 %v7686_v56 }
 0x498   : > { %4669 = vmatprep.subr.bf16.mxu1 %v7691_v11 }
 0x49a   : > { %4438 = vmatmul.mubr.bf16.gmra.mrb[116].mxu1 %v9604_v63 }
 0x49b   : > { %4447 = vmatprep.mubr.bf16.mxu1 %v9570_v24  ;;  %4670 = vmatpush1.bf16.msra.mxu1 %v7689_v8 }
 0x49c   : > { %4671 = vmatprep.subr.bf16.mxu1 %v7694_v28 }
 0x49f   : > { %4672 = vmatpush1.bf16.msra.mxu1 %v7692_v3 }
 0x4a0   : > { %4673 = vmatprep.subr.bf16.mxu1 %v7697_v50 }
 0x4a2   : > { %4448 = vmatmul.mubr.bf16.gmra.mrb[120].mxu1 %v9606_v40 }
 0x4a3   : > { %4457 = vmatprep.mubr.bf16.mxu1 %v9570_v24  ;;  %4674 = vmatpush1.bf16.msra.mxu1 %v7695_v13 }
 0x4a4   : > { %4675 = vmatprep.subr.bf16.mxu1 %v7700_v31 }
 0x4a7   : > { %4676 = vmatpush1.bf16.msra.mxu1 %v7698_v22 }
 0x4a8   : > { %4677 = vmatprep.subr.bf16.mxu1 %v7703_v21 }
 0x4aa   : > { %4458 = vmatmul.mubr.bf16.gmra.mrb[124].mxu1 %v9607_v48 }
 0x4ab   : > { %4467 = vmatprep.mubr.bf16.mxu1 %v9570_v24  ;;  %4678 = vmatpush1.bf16.msra.mxu1 %v7701_v45 }
 0x4ac   : > { %4679 = vmatprep.subr.bf16.mxu1 %v7706_v20 }
 0x4af   : > { %4680 = vmatpush1.bf16.msra.mxu1 %v7704_v16 }
 0x4b0   : > { %4935 = vmatprep.subr.bf16.mxu1 %v7709_v23 }
 0x4b2   : > { %4468 = vmatmul.mubr.bf16.gmra.mrb[128].mxu1 %v9608_v58 }
 0x4b3   : > { %4477 = vmatprep.mubr.bf16.mxu1 %v9570_v24 }
 0x4ba   : > { %4478 = vmatmul.mubr.bf16.gmra.mrb[132].mxu1 %v8941_v59 }
 0x4bb   : > { %4487 = vmatprep.mubr.bf16.mxu1 %v9570_v24 }
 0x4c2   : > { %4488 = vmatmul.mubr.bf16.gmra.mrb[136].mxu1 %v8955_v10 }
 0x4c3   : > { %4497 = vmatprep.mubr.bf16.mxu1 %v9570_v24 }
 0x4ca   : > { %4498 = vmatmul.mubr.bf16.gmra.mrb[140].mxu1 %v8969_v0 }
 0x4cb   : > { %4507 = vmatprep.mubr.bf16.mxu1 %v9570_v24 }
 0x4d2   : > { %4508 = vmatmul.mubr.bf16.gmra.mrb[144].mxu1 %v8983_v38 }
 0x4d3   : > { %4517 = vmatprep.mubr.bf16.mxu1 %v9570_v24 }
 0x4da   : > { %4518 = vmatmul.mubr.bf16.gmra.mrb[148].mxu1 %v9017_v41 }
 0x4db   : > { %4697 = vmatprep.mubr.bf16.mxu1 %v9570_v24 }
 0x4e2   : > { %4698 = vmatmul.mubr.bf16.vlgmr.msra.gmra.mrb[112].mxu1 %v9604_v63  ;;  %v7731_v63 = vld [vmem:[%s9525_s5 + $0x40] sm:$0xff]  }
 0x4e3   : > { %4936 = vmatpush1.bf16.msra.mxu1 %v7707_v43  ;;  %4707 = vmatprep.mubr.bf16.mxu1 %v9570_v24 }
 0x4e4   : > { %4937 = vmatprep.subr.bf16.mxu1 %v7712_v29 }
 0x4e7   : > { %4938 = vmatpush1.bf16.msra.mxu1 %v7710_v18  ;;  %v7739_v18 = vld [vmem:[%s9525_s5] sm:$0xff]  }
 0x4e8   : > { %4939 = vmatprep.subr.bf16.mxu1 %v7715_v4 }
 0x4ea   : > { %4708 = vmatmul.mubr.bf16.gmra.mrb[116].mxu1 %v9606_v40 }
 0x4eb   : > { %4717 = vmatprep.mubr.bf16.mxu1 %v9570_v24  ;;  %4940 = vmatpush1.bf16.msra.mxu1 %v7713_v47  ;;  %v7740_v47 = vld [vmem:[%s9525_s5 + $0x8] sm:$0xff]  }
 0x4ec   : > { %4941 = vmatprep.subr.bf16.mxu1 %v7718_v61 }
 0x4ef   : > { %4942 = vmatpush1.bf16.msra.mxu1 %v7716_v46 }
 0x4f0   : > { %4943 = vmatprep.subr.bf16.mxu1 %v7721_v7 }
 0x4f2   : > { %4718 = vmatmul.mubr.bf16.gmra.mrb[120].mxu1 %v9607_v48 }
 0x4f3   : > { %4727 = vmatprep.mubr.bf16.mxu1 %v9570_v24  ;;  %4944 = vmatpush1.bf16.msra.mxu1 %v7719_v26 }
 0x4f4   : > { %4945 = vmatprep.subr.bf16.mxu1 %v7724_v5 }
 0x4f7   : > { %4946 = vmatpush1.bf16.msra.mxu1 %v7722_v1 }
 0x4f8   : > { %4947 = vmatprep.subr.bf16.mxu1 %v7727_v52 }
 0x4fa   : > { %4728 = vmatmul.mubr.bf16.gmra.mrb[124].mxu1 %v9608_v58 }
 0x4fb   : > { %4737 = vmatprep.mubr.bf16.mxu1 %v9570_v24  ;;  %4948 = vmatpush1.bf16.msra.mxu1 %v7725_v30  ;;  %v7741_v30 = vld [vmem:[%s9525_s5 + $0x10] sm:$0xff]  }
 0x4fc   : > { %4949 = vmatprep.subr.bf16.mxu1 %v7730_v49 }
 0x4ff   : > { %4950 = vmatpush1.bf16.msra.mxu1 %v7728_v14 }
 0x500   : > { %6603 = vmatprep.subr.bf16.mxu1 %v7823_v32 }
 0x502   : > { %4738 = vmatmul.mubr.bf16.gmra.mrb[128].mxu1 %v8941_v59 }
 0x503   : > { %4747 = vmatprep.mubr.bf16.mxu1 %v9570_v24 }
 0x50a   : > { %4748 = vmatmul.mubr.bf16.gmra.mrb[132].mxu1 %v8955_v10 }
 0x50b   : > { %4757 = vmatprep.mubr.bf16.mxu1 %v9570_v24 }
 0x512   : > { %4758 = vmatmul.mubr.bf16.gmra.mrb[136].mxu1 %v8969_v0 }
 0x513   : > { %4767 = vmatprep.mubr.bf16.mxu1 %v9570_v24 }
 0x51a   : > { %4768 = vmatmul.mubr.bf16.gmra.mrb[140].mxu1 %v8983_v38 }
 0x51b   : > { %4777 = vmatprep.mubr.bf16.mxu1 %v9570_v24 }
 0x522   : > { %4778 = vmatmul.mubr.bf16.gmra.mrb[144].mxu1 %v9017_v41 }
 0x523   : > { %4787 = vmatprep.mubr.bf16.mxu1 %v9570_v24 }
 0x52a   : > { %4788 = vmatmul.mubr.bf16.gmra.mrb[148].mxu1 %v9057_v57 }
 0x52b   : > { %4967 = vmatprep.mubr.bf16.mxu1 %v9570_v24 }
 0x532   : > { %4968 = vmatmul.mubr.bf16.vlgmr.msra.gmra.mrb[112].mxu1 %v9606_v40 }
 0x533   : > { %4977 = vmatprep.mubr.bf16.mxu1 %v9570_v24  ;;  %6604 = vmatpush3.bf16.msra.mxu1 %v7731_v63 }
 0x534   : > { %6605 = vmatprep.subr.bf16.mxu1 %v7823_v32 }
 0x537   : > { %6606 = vmatpush3.bf16.msra.mxu1 %v7732_v34 }
 0x538   : > { %6607 = vmatprep.subr.bf16.mxu1 %v7823_v32 }
 0x53a   : > { %4978 = vmatmul.mubr.bf16.gmra.mrb[116].mxu1 %v9607_v48 }
 0x53b   : > { %4987 = vmatprep.mubr.bf16.mxu1 %v9570_v24  ;;  %6608 = vmatpush3.bf16.msra.mxu1 %v7733_v9  ;;  %v7742_v9 = vld [vmem:[%s9525_s5 + $0x18] sm:$0xff]  }
 0x53c   : > { %6609 = vmatprep.subr.bf16.mxu1 %v7823_v32 }
 0x53f   : > { %6610 = vmatpush3.bf16.msra.mxu1 %v7734_v2 }
 0x540   : > { %6611 = vmatprep.subr.bf16.mxu1 %v7823_v32 }
 0x542   : > { %4988 = vmatmul.mubr.bf16.gmra.mrb[120].mxu1 %v9608_v58 }
 0x543   : > { %4997 = vmatprep.mubr.bf16.mxu1 %v9570_v24  ;;  %6612 = vmatpush3.bf16.msra.mxu1 %v7735_v42 }
 0x544   : > { %6613 = vmatprep.subr.bf16.mxu1 %v7823_v32 }
 0x54a   : > { %4998 = vmatmul.mubr.bf16.gmra.mrb[124].mxu1 %v8941_v59  ;;  %v7736_v59 = vld [vmem:[%s9525_s5 + $0x68] sm:$0xff]  }
 0x54b   : > { %5007 = vmatprep.mubr.bf16.mxu1 %v9570_v24  ;;  %6614 = vmatpush3.bf16.msra.mxu1 %v7736_v59 }
 0x54c   : > { %6615 = vmatprep.subr.bf16.mxu1 %v7823_v32 }
 0x552   : > { %5008 = vmatmul.mubr.bf16.gmra.mrb[128].mxu1 %v8955_v10  ;;  %v7737_v10 = vld [vmem:[%s9525_s5 + $0x70] sm:$0xff]  }
 0x553   : > { %5017 = vmatprep.mubr.bf16.mxu1 %v9570_v24  ;;  %6616 = vmatpush3.bf16.msra.mxu1 %v7737_v10 }
 0x554   : > { %6617 = vmatprep.subr.bf16.mxu1 %v7823_v32 }
 0x55a   : > { %5018 = vmatmul.mubr.bf16.gmra.mrb[132].mxu1 %v8969_v0 }
 0x55b   : > { %5027 = vmatprep.mubr.bf16.mxu1 %v9570_v24 }
 0x562   : > { %5028 = vmatmul.mubr.bf16.gmra.mrb[136].mxu1 %v8983_v38 }
 0x563   : > { %5037 = vmatprep.mubr.bf16.mxu1 %v9570_v24 }
 0x56a   : > { %5038 = vmatmul.mubr.bf16.gmra.mrb[140].mxu1 %v9017_v41 }
 0x56b   : > { %5047 = vmatprep.mubr.bf16.mxu1 %v9570_v24 }
 0x572   : > { %5048 = vmatmul.mubr.bf16.gmra.mrb[144].mxu1 %v9057_v57 }
 0x573   : > { %5057 = vmatprep.mubr.bf16.mxu1 %v9570_v24  ;;  %v7738_v24 = vld [vmem:[%s9525_s5 + $0x78] sm:$0xff]  }
 0x574   : > { %6618 = vmatpush3.bf16.msra.mxu1 %v7738_v24 }
 0x575   : > { %6623 = vmatprep.subr.bf16.mxu1 %v7823_v32 }
 0x57a   : > { %5058 = vmatmul.mubr.bf16.gmra.mrb[148].mxu1 %v9075_v44 }
 0x57b   : > { %6619 = vmatprep.mubr.msk.bf16.mxu1 %vm7824_vm0, %v7823_v32 }
 0x605   : > { %v4969_v0 = vpop.f32.mrb[112].mxu1 }
 0x606   : > { %v4971_v38 = vpop.f32.mrb[113].mxu1 }
 0x607   : > { %v4973_v41 = vpop.f32.mrb[114].mxu1 }
 0x608   : > { %v4975_v57 = vpop.f32.mrb[115].mxu1 }
 0x60d   : > { %v4979_v6 = vpop.f32.mrb[116].mxu1 }
 0x60e   : > { %v5108_v19 = vmax.f32 %v4969_v0, %v4979_v6  ;;  %v4981_v51 = vpop.f32.mrb[117].mxu1  ;;  %v7744_v6 = vld [vmem:[%s9525_s5 + $0x28] sm:$0xff]  }
 0x60f   : > { %v5109_v33 = vmax.f32 %v4971_v38, %v4981_v51  ;;  %v4983_v53 = vpop.f32.mrb[118].mxu1 }
 0x610   : > { %v5110_v62 = vmax.f32 %v4973_v41, %v4983_v53  ;;  %v4985_v54 = vpop.f32.mrb[119].mxu1  ;;  %v7743_v41 = vld [vmem:[%s9525_s5 + $0x20] sm:$0xff]  }
 0x611   : > { %v5128_v39 = vmax.f32 %v5108_v19, %v5109_v33  ;;  %v5111_v17 = vmax.f32 %v4975_v57, %v4985_v54 }
 0x613   : > { %v5145_v25 = vadd.f32 %v9277_v37, %v5128_v39  ;;  %v5129_v55 = vmax.f32 %v5110_v62, %v5111_v17  ;;  %v7745_v17 = vld [vmem:[%s9525_s5 + $0x30] sm:$0xff]  }
 0x615   : > { %v5146_v40 = vadd.f32 %v9277_v37, %v5129_v55  ;;  %v4989_v27 = vpop.f32.mrb[120].mxu1  ;;  %v5155_v15 = vmax.f32 %v5145_v25, 0.0 }
 0x616   : > { %v4991_v60 = vpop.f32.mrb[121].mxu1 }
 0x617   : > { %v5156_v35 = vmax.f32 %v5146_v40, 0.0  ;;  %v4993_v44 = vpop.f32.mrb[122].mxu1 }
 0x618   : > { %v4995_v48 = vpop.f32.mrb[123].mxu1 }
 0x619   : > { %v9281_v58 = vpack.c.bf16 %v5156_v35, %v5155_v15 }
 0x61d   : > { %v4999_v12 = vpop.f32.mrb[124].mxu1 }
 0x61e   : > { %v5112_v36 = vmax.f32 %v4989_v27, %v4999_v12  ;;  %v5001_v56 = vpop.f32.mrb[125].mxu1 }
 0x61f   : > { %v5113_v11 = vmax.f32 %v4991_v60, %v5001_v56  ;;  %v5003_v8 = vpop.f32.mrb[126].mxu1  ;;  %v7746_v60 = vld [vmem:[%s9525_s5 + $0x38] sm:$0xff]  }
 0x620   : > { %v5114_v28 = vmax.f32 %v4993_v44, %v5003_v8  ;;  %v5005_v3 = vpop.f32.mrb[127].mxu1 }
 0x621   : > { %v5130_v50 = vmax.f32 %v5112_v36, %v5113_v11  ;;  %v5115_v13 = vmax.f32 %v4995_v48, %v5005_v3  ;;  %v7747_v11 = vld [vmem:[%s9525_s5 + $0x80] sm:$0xff]  }
 0x623   : > { %v5147_v31 = vadd.f32 %v9277_v37, %v5130_v50  ;;  %v5131_v22 = vmax.f32 %v5114_v28, %v5115_v13  ;;  %v7748_v28 = vld [vmem:[%s9525_s5 + $0x88] sm:$0xff]  }
 0x625   : > { %v5148_v21 = vadd.f32 %v9277_v37, %v5131_v22  ;;  %v5009_v45 = vpop.f32.mrb[128].mxu1  ;;  %v5157_v16 = vmax.f32 %v5147_v31, 0.0 }
 0x626   : > { %v5011_v20 = vpop.f32.mrb[129].mxu1 }
 0x627   : > { %v5158_v23 = vmax.f32 %v5148_v21, 0.0  ;;  %v5013_v43 = vpop.f32.mrb[130].mxu1 }
 0x628   : > { %v5015_v29 = vpop.f32.mrb[131].mxu1 }
 0x629   : > { %v5166_v4 = vpack.c.bf16 %v5158_v23, %v5157_v16 }
 0x62b   : > { %6620 = vmatmul.mubr.bf16.vlgmr.msra.gmra.mrb[152].mxu1 %v5166_v4 }
 0x62c   : > { %6624 = vmatpush3.bf16.msra.mxu1 %v7739_v18  ;;  %6639 = vmatprep.mubr.msk.bf16.mxu1 %vm7824_vm0, %v7823_v32 }
 0x62d   : > { %v5019_v61 = vpop.f32.mrb[132].mxu1  ;;  %6625 = vmatprep.subr.bf16.mxu1 %v7823_v32 }
 0x62e   : > { %v5116_v46 = vmax.f32 %v5009_v45, %v5019_v61  ;;  %v5021_v7 = vpop.f32.mrb[133].mxu1  ;;  %v7751_v61 = vld [vmem:[%s9525_s5 + $0xa0] sm:$0xff]  }
 0x62f   : > { %v5117_v26 = vmax.f32 %v5011_v20, %v5021_v7  ;;  %v5023_v5 = vpop.f32.mrb[134].mxu1  ;;  %v7752_v7 = vld [vmem:[%s9525_s5 + $0xa8] sm:$0xff]  }
 0x630   : > { %v5118_v1 = vmax.f32 %v5013_v43, %v5023_v5  ;;  %6626 = vmatpush3.bf16.msra.mxu1 %v7740_v47  ;;  %v5025_v52 = vpop.f32.mrb[135].mxu1  ;;  %v7755_v5 = vld [vmem:[%s9525_s5 + $0xc0] sm:$0xff]  }
 0x631   : > { %v5132_v49 = vmax.f32 %v5116_v46, %v5117_v26  ;;  %v5119_v14 = vmax.f32 %v5015_v29, %v5025_v52  ;;  %6627 = vmatprep.subr.bf16.mxu1 %v7823_v32  ;;  %v7750_v29 = vld [vmem:[%s9525_s5 + $0x98] sm:$0xff]   ;;  %v7757_v52 = vld [vmem:[%s9525_s5 + $0xd0] sm:$0xff]  }
 0x632   : > { %v7754_v26 = vld [vmem:[%s9525_s5 + $0xb8] sm:$0xff]  }
 0x633   : > { %v5149_v63 = vadd.f32 %v9277_v37, %v5132_v49  ;;  %v5133_v34 = vmax.f32 %v5118_v1, %v5119_v14  ;;  %v7756_v1 = vld [vmem:[%s9525_s5 + $0xc8] sm:$0xff]   ;;  %v7759_v49 = vld [vmem:[%s9525_s5 + $0xe0] sm:$0xff]  }
 0x634   : > { %6628 = vmatpush3.bf16.msra.mxu1 %v7741_v30  ;;  %v7758_v30 = vld [vmem:[%s9525_s5 + $0xd8] sm:$0xff]   ;;  %v7760_v14 = vld [vmem:[%s9525_s5 + $0xe8] sm:$0xff]  }
 0x635   : > { %v5150_v2 = vadd.f32 %v9277_v37, %v5133_v34  ;;  %v5029_v42 = vpop.f32.mrb[136].mxu1  ;;  %6629 = vmatprep.subr.bf16.mxu1 %v7823_v32  ;;  %v5159_v10 = vmax.f32 %v5149_v63, 0.0  ;;  %v7761_v63 = vld [vmem:[%s9525_s5 + $0xf0] sm:$0xff]   ;;  %v7762_v34 = vld [vmem:[%s9525_s5 + $0xf8] sm:$0xff]  }
 0x636   : > { %v5031_v59 = vpop.f32.mrb[137].mxu1 }
 0x637   : > { %v5160_v24 = vmax.f32 %v5150_v2, 0.0  ;;  %v5033_v0 = vpop.f32.mrb[138].mxu1  ;;  %v7764_v2 = vld [vmem:[%s9525_s5 + $0x108] sm:$0xff]  }
 0x638   : > { %6630 = vmatpush3.bf16.msra.mxu1 %v7742_v9  ;;  %v5035_v38 = vpop.f32.mrb[139].mxu1  ;;  %v7763_v9 = vld [vmem:[%s9525_s5 + $0x100] sm:$0xff]  }
 0x639   : > { %v9307_v57 = vpack.c.bf16 %v5160_v24, %v5159_v10  ;;  %6631 = vmatprep.subr.bf16.mxu1 %v7823_v32  ;;  %v7767_v10 = vld [vmem:[%s9525_s5 + $0x120] sm:$0xff]   ;;  %v7768_v24 = vld [vmem:[%s9525_s5 + $0x128] sm:$0xff]  }
 0x63c   : > { %6632 = vmatpush3.bf16.msra.mxu1 %v7743_v41  ;;  %v7771_v41 = vld [vmem:[%s9527_s7] sm:$0xff]  }
 0x63d   : > { %v5039_v19 = vpop.f32.mrb[140].mxu1  ;;  %6633 = vmatprep.subr.bf16.mxu1 %v7823_v32 }
 0x63e   : > { %v5120_v51 = vmax.f32 %v5029_v42, %v5039_v19  ;;  %v5041_v33 = vpop.f32.mrb[141].mxu1  ;;  %v7765_v42 = vld [vmem:[%s9525_s5 + $0x110] sm:$0xff]   ;;  %v7774_v19 = vld [vmem:[%s9527_s7 + $0x18] sm:$0xff]  }
 0x63f   : > { %v5121_v53 = vmax.f32 %v5031_v59, %v5041_v33  ;;  %v5043_v62 = vpop.f32.mrb[142].mxu1  ;;  %v7766_v59 = vld [vmem:[%s9525_s5 + $0x118] sm:$0xff]   ;;  %v7776_v33 = vld [vmem:[%s9527_s7 + $0x28] sm:$0xff]  }
 0x640   : > { %v5122_v54 = vmax.f32 %v5033_v0, %v5043_v62  ;;  %6634 = vmatpush3.bf16.msra.mxu1 %v7744_v6  ;;  %v5045_v39 = vpop.f32.mrb[143].mxu1  ;;  %v7769_v0 = vld [vmem:[%s9525_s5 + $0x130] sm:$0xff]  }
 0x641   : > { %v5134_v25 = vmax.f32 %v5120_v51, %v5121_v53  ;;  %v5123_v55 = vmax.f32 %v5035_v38, %v5045_v39  ;;  %6635 = vmatprep.subr.bf16.mxu1 %v7823_v32  ;;  %v7770_v38 = vld [vmem:[%s9525_s5 + $0x138] sm:$0xff]   ;;  %v7773_v6 = vld [vmem:[%s9527_s7 + $0x10] sm:$0xff]   ;;  %v7775_v51 = vld [vmem:[%s9527_s7 + $0x20] sm:$0xff]  }
 0x642   : > { %v7777_v39 = vld [vmem:[%s9527_s7 + $0x30] sm:$0xff]  }
 0x643   : > { %v5151_v40 = vadd.f32 %v9277_v37, %v5134_v25  ;;  %v5135_v27 = vmax.f32 %v5122_v54, %v5123_v55  ;;  %v7778_v25 = vld [vmem:[%s9527_s7 + $0x38] sm:$0xff]  }
 0x644   : > { %6636 = vmatpush3.bf16.msra.mxu1 %v7745_v17 }
 0x645   : > { %v5152_v15 = vadd.f32 %v9277_v37, %v5135_v27  ;;  %v5049_v35 = vpop.f32.mrb[144].mxu1  ;;  %6637 = vmatprep.subr.bf16.mxu1 %v7823_v32  ;;  %v5161_v48 = vmax.f32 %v5151_v40, 0.0 }
 0x646   : > { %v5051_v44 = vpop.f32.mrb[145].mxu1 }
 0x647   : > { %v5162_v12 = vmax.f32 %v5152_v15, 0.0  ;;  %v5053_v36 = vpop.f32.mrb[146].mxu1 }
 0x648   : > { %6638 = vmatpush3.bf16.msra.mxu1 %v7746_v60  ;;  %v5055_v56 = vpop.f32.mrb[147].mxu1 }
 0x649   : > { %v9327_v8 = vpack.c.bf16 %v5162_v12, %v5161_v48  ;;  %6643 = vmatprep.subr.bf16.mxu1 %v7823_v32 }
 0x64b   : > { %6640 = vmatmul.mubr.bf16.vlgmr.msra.gmra.mrb[156].mxu1 %v9281_v58  ;;  %v7749_v58 = vld [vmem:[%s9525_s5 + $0x90] sm:$0xff]  }
 0x64c   : > { %6644 = vmatpush3.bf16.msra.mxu1 %v7747_v11  ;;  %6659 = vmatprep.mubr.msk.bf16.mxu1 %vm7824_vm0, %v7823_v32 }
 0x64d   : > { %v5059_v3 = vpop.f32.mrb[148].mxu1  ;;  %6645 = vmatprep.subr.bf16.mxu1 %v7823_v32 }
 0x64e   : > { %v5124_v50 = vmax.f32 %v5049_v35, %v5059_v3  ;;  %v5061_v13 = vpop.f32.mrb[149].mxu1 }
 0x64f   : > { %v5125_v31 = vmax.f32 %v5051_v44, %v5061_v13  ;;  %v5063_v22 = vpop.f32.mrb[150].mxu1 }
 0x650   : > { %v5126_v21 = vmax.f32 %v5053_v36, %v5063_v22  ;;  %6646 = vmatpush3.bf16.msra.mxu1 %v7748_v28  ;;  %v5065_v45 = vpop.f32.mrb[151].mxu1 }
 0x651   : > { %v5136_v20 = vmax.f32 %v5124_v50, %v5125_v31  ;;  %v5127_v16 = vmax.f32 %v5055_v56, %v5065_v45  ;;  %6647 = vmatprep.subr.bf16.mxu1 %v7823_v32 }
 0x653   : > { %v5153_v23 = vadd.f32 %v9277_v37, %v5136_v20  ;;  %v5137_v43 = vmax.f32 %v5126_v21, %v5127_v16  ;;  %v6518_v21 = vld [vmem:[%s9526_s6] ss:$0 sm:$0xff] }
 0x654   : > { %6648 = vmatpush3.bf16.msra.mxu1 %v7749_v58 }
 0x655   : > { %v5154_v18 = vadd.f32 %v9277_v37, %v5137_v43  ;;  %6649 = vmatprep.subr.bf16.mxu1 %v7823_v32  ;;  %v5163_v4 = vmax.f32 %v5153_v23, 0.0  ;;  %v7753_v37 = vld [vmem:[%s9525_s5 + $0xb0] sm:$0xff]  }
 0x657   : > { %v5164_v47 = vmax.f32 %v5154_v18, 0.0 }
 0x658   : > { %6650 = vmatpush3.bf16.msra.mxu1 %v7750_v29 }
 0x659   : > { %v9350_v46 = vpack.c.bf16 %v5164_v47, %v5163_v4  ;;  %6651 = vmatprep.subr.bf16.mxu1 %v7823_v32  ;;  %v7779_v47 = vld [vmem:[%s9529_s9] sm:$0xff]  }
 0x65c   : > { %6652 = vmatpush3.bf16.msra.mxu1 %v7751_v61 }
 0x65d   : > { %6653 = vmatprep.subr.bf16.mxu1 %v7823_v32 }
 0x660   : > { %6654 = vmatpush3.bf16.msra.mxu1 %v7752_v7  ;;  %v7781_v7 = vld [vmem:[%s9529_s9 + $0x10] sm:$0xff]  }
 0x661   : > { %6655 = vmatprep.subr.bf16.mxu1 %v7823_v32 }
 0x664   : > { %6656 = vmatpush3.bf16.msra.mxu1 %v7753_v37  ;;  %v7782_v37 = vld [vmem:[%s9529_s9 + $0x18] sm:$0xff]  }
 0x665   : > { %6657 = vmatprep.subr.bf16.mxu1 %v7823_v32 }
 0x668   : > { %6658 = vmatpush3.bf16.msra.mxu1 %v7754_v26  ;;  %v7783_v26 = vld [vmem:[%s9529_s9 + $0x20] sm:$0xff]  }
 0x669   : > { %6663 = vmatprep.subr.bf16.mxu1 %v7823_v32 }
 0x66b   : > { %6660 = vmatmul.mubr.bf16.vlgmr.msra.gmra.mrb[160].mxu1 %v9307_v57  ;;  %v7772_v57 = vld [vmem:[%s9527_s7 + $0x8] sm:$0xff]  }
 0x66c   : > { %6664 = vmatpush3.bf16.msra.mxu1 %v7755_v5  ;;  %6679 = vmatprep.mubr.msk.bf16.mxu1 %vm7824_vm0, %v7823_v32  ;;  %v7784_v5 = vld [vmem:[%s9529_s9 + $0x28] sm:$0xff]  }
 0x66d   : > { %6665 = vmatprep.subr.bf16.mxu1 %v7823_v32 }
 0x670   : > { %6666 = vmatpush3.bf16.msra.mxu1 %v7756_v1  ;;  %v7785_v1 = vld [vmem:[%s9529_s9 + $0x30] sm:$0xff]  }
 0x671   : > { %6667 = vmatprep.subr.bf16.mxu1 %v7823_v32 }
 0x674   : > { %6668 = vmatpush3.bf16.msra.mxu1 %v7757_v52  ;;  %v7786_v52 = vld [vmem:[%s9529_s9 + $0x38] sm:$0xff]  }
 0x675   : > { %6669 = vmatprep.subr.bf16.mxu1 %v7823_v32 }
 0x678   : > { %6670 = vmatpush3.bf16.msra.mxu1 %v7758_v30  ;;  %v6519_v30 = vld [vmem:[%s9528_s8] ss:$0 sm:$0xff] }
 0x679   : > { %6671 = vmatprep.subr.bf16.mxu1 %v7823_v32 }
 0x67c   : > { %6672 = vmatpush3.bf16.msra.mxu1 %v7759_v49 }
 0x67d   : > { %6673 = vmatprep.subr.bf16.mxu1 %v7823_v32 }
 0x680   : > { %6674 = vmatpush3.bf16.msra.mxu1 %v7760_v14 }
 0x681   : > { %6675 = vmatprep.subr.bf16.mxu1 %v7823_v32 }
 0x684   : > { %6676 = vmatpush3.bf16.msra.mxu1 %v7761_v63 }
 0x685   : > { %6677 = vmatprep.subr.bf16.mxu1 %v7823_v32 }
 0x688   : > { %6678 = vmatpush3.bf16.msra.mxu1 %v7762_v34 }
 0x689   : > { %6683 = vmatprep.subr.bf16.mxu1 %v7823_v32 }
 0x68b   : > { %6680 = vmatmul.mubr.bf16.vlgmr.msra.gmra.mrb[164].mxu1 %v9327_v8 }
 0x68c   : > { %6684 = vmatpush3.bf16.msra.mxu1 %v7763_v9  ;;  %6699 = vmatprep.mubr.msk.bf16.mxu1 %vm7824_vm0, %v7823_v32 }
 0x68d   : > { %6685 = vmatprep.subr.bf16.mxu1 %v7823_v32 }
 0x690   : > { %6686 = vmatpush3.bf16.msra.mxu1 %v7764_v2 }
 0x691   : > { %6687 = vmatprep.subr.bf16.mxu1 %v7823_v32 }
 0x694   : > { %6688 = vmatpush3.bf16.msra.mxu1 %v7765_v42 }
 0x695   : > { %6689 = vmatprep.subr.bf16.mxu1 %v7823_v32 }
 0x698   : > { %6690 = vmatpush3.bf16.msra.mxu1 %v7766_v59 }
 0x699   : > { %6691 = vmatprep.subr.bf16.mxu1 %v7823_v32 }
 0x69c   : > { %6692 = vmatpush3.bf16.msra.mxu1 %v7767_v10 }
 0x69d   : > { %6693 = vmatprep.subr.bf16.mxu1 %v7823_v32 }
 0x6a0   : > { %6694 = vmatpush3.bf16.msra.mxu1 %v7768_v24 }
 0x6a1   : > { %6695 = vmatprep.subr.bf16.mxu1 %v7823_v32 }
 0x6a4   : > { %6696 = vmatpush3.bf16.msra.mxu1 %v7769_v0 }
 0x6a5   : > { %6697 = vmatprep.subr.bf16.mxu1 %v7823_v32 }
 0x6a8   : > { %6698 = vmatpush3.bf16.msra.mxu1 %v7770_v38 }
 0x6a9   : > { %6703 = vmatprep.subr.bf16.mxu1 %v7823_v32 }
 0x6ab   : > { %6700 = vmatmul.mubr.bf16.vlgmr.msra.gmra.mrb[168].mxu1 %v9350_v46  ;;  %v7780_v46 = vld [vmem:[%s9529_s9 + $0x8] sm:$0xff]  }
 0x6ac   : > { %6719 = vmatprep.mubr.msk.bf16.mxu1 %vm7824_vm0, %v7823_v32  ;;  %6704 = vmatpush3.bf16.msra.mxu1 %v7771_v41 }
 0x6ad   : > { %6705 = vmatprep.subr.bf16.mxu1 %v7823_v32 }
 0x6b0   : > { %6706 = vmatpush3.bf16.msra.mxu1 %v7772_v57 }
 0x6b1   : > { %6707 = vmatprep.subr.bf16.mxu1 %v7823_v32 }
 0x6b4   : > { %6708 = vmatpush3.bf16.msra.mxu1 %v7773_v6 }
 0x6b5   : > { %6709 = vmatprep.subr.bf16.mxu1 %v7823_v32 }
 0x6b8   : > { %6710 = vmatpush3.bf16.msra.mxu1 %v7774_v19 }
 0x6b9   : > { %6711 = vmatprep.subr.bf16.mxu1 %v7823_v32 }
 0x6bc   : > { %6712 = vmatpush3.bf16.msra.mxu1 %v7775_v51 }
 0x6bd   : > { %6713 = vmatprep.subr.bf16.mxu1 %v7823_v32 }
 0x6c0   : > { %6714 = vmatpush3.bf16.msra.mxu1 %v7776_v33 }
 0x6c1   : > { %6715 = vmatprep.subr.bf16.mxu1 %v7823_v32 }
 0x6c4   : > { %6716 = vmatpush3.bf16.msra.mxu1 %v7777_v39 }
 0x6c5   : > { %6717 = vmatprep.subr.bf16.mxu1 %v7823_v32 }
 0x6c8   : > { %6718 = vmatpush3.bf16.msra.mxu1 %v7778_v25 }
 0x6c9   : > { %6723 = vmatprep.subr.bf16.mxu1 %v7823_v32 }
 0x6fe   : > { %v5285_v53 = vpop.f32.mrb[152].mxu1 }
 0x6ff   : > { %v6621_v62 = vpop.f32.mrb[153].mxu1 }
 0x700   : > { %v5288_v54 = vpop.f32.mrb[154].mxu1 }
 0x701   : > { %v6622_v17 = vpop.f32.mrb[155].mxu1 }
 0x71e   : > { %v5374_v55 = vpop.f32.mrb[156].mxu1 }
 0x71f   : > { %v5375_v40 = vadd.f32 %v5374_v55, %v5285_v53  ;;  %v6641_v27 = vpop.f32.mrb[157].mxu1 }
 0x720   : > { %v5377_v60 = vpop.f32.mrb[158].mxu1 }
 0x721   : > { %v5378_v15 = vadd.f32 %v5377_v60, %v5288_v54  ;;  %v6642_v35 = vpop.f32.mrb[159].mxu1 }
 0x73e   : > { %v5480_v44 = vpop.f32.mrb[160].mxu1 }
 0x73f   : > { %v5487_v48 = vadd.f32 %v5480_v44, %v5375_v40  ;;  %v6661_v12 = vpop.f32.mrb[161].mxu1 }
 0x740   : > { %v5483_v36 = vpop.f32.mrb[162].mxu1 }
 0x741   : > { %v5488_v56 = vadd.f32 %v5483_v36, %v5378_v15  ;;  %v6662_v11 = vpop.f32.mrb[163].mxu1 }
 0x75e   : > { %v5588_v8 = vpop.f32.mrb[164].mxu1 }
 0x75f   : > { %v5595_v28 = vadd.f32 %v5588_v8, %v5487_v48  ;;  %v6681_v3 = vpop.f32.mrb[165].mxu1 }
 0x760   : > { %v5591_v50 = vpop.f32.mrb[166].mxu1 }
 0x761   : > { %v5596_v13 = vadd.f32 %v5591_v50, %v5488_v56  ;;  %v6682_v31 = vpop.f32.mrb[167].mxu1 }
 0x77e   : > { %v5696_v22 = vpop.f32.mrb[168].mxu1 }
 0x77f   : > { %v5703_v45 = vadd.f32 %v5696_v22, %v5595_v28  ;;  %v6701_v58 = vpop.f32.mrb[169].mxu1 }
 0x780   : > { %v5699_v20 = vpop.f32.mrb[170].mxu1 }
 0x781   : > { %v5712_v16 = vadd.f32 %v6518_v21, %v5703_v45  ;;  %v5704_v23 = vadd.f32 %v5699_v20, %v5596_v13  ;;  %v6702_v43 = vpop.f32.mrb[171].mxu1 }
 0x783   : > { %v5713_v29 = vadd.f32 %v6518_v21, %v5704_v23  ;;  %v5714_v18 = vmax.f32 %v5712_v16, 0.0 }
 0x785   : > { %v5715_v4 = vmax.f32 %v5713_v29, 0.0 }
 0x787   : > { %v5716_v61 = vpack.c.bf16 %v5715_v4, %v5714_v18 }
 0x789   : > { %6720 = vmatmul.mubr.bf16.vlgmr.msra.gmra.mrb[172].mxu1 %v5716_v61 }
 0x78a   : > { %6724 = vmatpush3.bf16.msra.mxu1 %v7779_v47  ;;  %6739 = vmatprep.mubr.msk.bf16.mxu1 %vm7824_vm0, %v7823_v32 }
 0x78b   : > { %6725 = vmatprep.subr.bf16.mxu1 %v7823_v32 }
 0x78e   : > { %6726 = vmatpush3.bf16.msra.mxu1 %v7780_v46 }
 0x78f   : > { %6727 = vmatprep.subr.bf16.mxu1 %v7823_v32 }
 0x792   : > { %6728 = vmatpush3.bf16.msra.mxu1 %v7781_v7 }
 0x793   : > { %6729 = vmatprep.subr.bf16.mxu1 %v7823_v32 }
 0x796   : > { %6730 = vmatpush3.bf16.msra.mxu1 %v7782_v37 }
 0x797   : > { %6731 = vmatprep.subr.bf16.mxu1 %v7823_v32 }
 0x79a   : > { %6732 = vmatpush3.bf16.msra.mxu1 %v7783_v26 }
 0x79b   : > { %6733 = vmatprep.subr.bf16.mxu1 %v7823_v32 }
 0x79e   : > { %6734 = vmatpush3.bf16.msra.mxu1 %v7784_v5 }
 0x79f   : > { %6735 = vmatprep.subr.bf16.mxu1 %v7823_v32 }
 0x7a2   : > { %6736 = vmatpush3.bf16.msra.mxu1 %v7785_v1 }
 0x7a3   : > { %6737 = vmatprep.subr.bf16.mxu1 %v7823_v32  ;;  %v6528_v32 = vld [vmem:[%s9530_s10] ss:$0 sm:$0xff] }
 0x7a6   : > { %6738 = vmatpush3.bf16.msra.mxu1 %v7786_v52 }
 0x85c   : > { %v5822_v49 = vpop.f32.mrb[172].mxu1 }
 0x85d   : > { %v5823_v14 = vadd.f32 %v6519_v30, %v5822_v49  ;;  %v6721_v63 = vpop.f32.mrb[173].mxu1 }
 0x85e   : > { %v5825_v34 = vpop.f32.mrb[174].mxu1 }
 0x85f   : > { %v5826_v9 = vadd.f32 %v6519_v30, %v5825_v34  ;;  %v6722_v2 = vpop.f32.mrb[175].mxu1  ;;  %v5829_v42 = vmax.f32 %v5823_v14, 0.0 }
 0x861   : > { %v5830_v59 = vmax.f32 %v5826_v9, 0.0 }
 0x863   : > { %v5831_v10 = vpack.c.bf16 %v5830_v59, %v5829_v42 }
 0x865   : > { %6740 = vmatmul.mubr.bf16.vlgmr.msra.gmra.mrb[176].mxu1 %v5831_v10 }
 0x938   : > { %v5937_v24 = vpop.f32.mrb[176].mxu1 }
 0x939   : > { %v5938_v0 = vadd.f32 %v6528_v32, %v5937_v24  ;;  %v6741_v38 = vpop.f32.mrb[177].mxu1 }
 0x93a   : > { %v5940_v41 = vpop.f32.mrb[178].mxu1 }
 0x93b   : > { %5944 = vst [vmem:[%s386_s22] sm:$0xff] %v5938_v0  ;;  %v5941_v57 = vadd.f32 %v6528_v32, %v5940_v41  ;;  %v6742_v6 = vpop.f32.mrb[179].mxu1 }
 0x93d   : > { %5945 = vst [vmem:[%s386_s22 + $0x8] sm:$0xff] %v5941_v57 }
 0x93e PF: > { %s21_s17 = sadd.s32 1, %s7820_s17  }
 0x93f   : > { %p18_p5 = scmp.ge.s32.totalorder %s21_s17, 4  }
 0x941   :  { %20 = sbr.rel (!%p18_p5) target bundleno = 1 (0x1), region = 106 }

</bundles_post_ra>
